<compile_context>
chip_gen: v6e
topology: v6e:2x2x1
jax: 0.10.0
libtpu: 0.0.40
codegen_flags: <defaults>
</compile_context>

<pallas_src>
import numpy as np

import jax
import jax.numpy as jnp
from jax.experimental import pallas as pl
from jax.experimental.pallas import tpu as pltpu

# ---- fixed synthetic configuration -----------------------------------------
CIN, C1, C2 = 3, 8, 4          # image channels, conv1 out, conv2 out
S, S1, S2 = 16, 8, 4           # spatial sizes: input, after conv1, after conv2
P1, P2 = S1 * S1, S2 * S2      # spatial positions per feature map
K2 = 9                         # 3x3 kernel offsets
DIM = C2 * P2                  # flattened hooked representation dim = 64
HID, PROJ = 64, 32             # projection_hidden_size, projection_size

EPS_BN = 1e-5                  # nn.BatchNorm1d eps
EPS_NORM = 1e-12               # F.normalize eps


# ----------------------------------------------------------------------------
# Fused BYOL forward kernel
# ----------------------------------------------------------------------------
def _byol_kernel(
    # shared data / constants
    x_ref, g1_ref, g2_ref, mavg_ref, swap_ref,
    # online encoder (conv weights + projector MLP)
    ow1_ref, ob1_ref, ow2_ref, ob2_ref,
    opw1_ref, opb1_ref, opg_ref, opbt_ref, opw2_ref, opb2_ref,
    # target encoder
    tw1_ref, tb1_ref, tw2_ref, tb2_ref,
    tpw1_ref, tpb1_ref, tpg_ref, tpbt_ref, tpw2_ref, tpb2_ref,
    # online predictor MLP
    qw1_ref, qb1_ref, qg_ref, qbt_ref, qw2_ref, qb2_ref,
    # output
    loss_ref,
    # VMEM scratch
    p1t_ref, p2t_ref, rep_ref,
):
    f32 = jnp.float32
    nimg = mavg_ref.shape[0]          # 2 * batch (view1 rows first, then view2)
    batch = nimg // 2
    mavg = mavg_ref[...]              # per-view averaging matrix (block diagonal)

    # ---- conv1 im2col for all 2B images at once (shared by online & target) ----
    # a1[img*CIN + c, t*P1 + p] = x[img, c, src_pixel(p, t)]  (0 where padded)
    a1 = jnp.dot(x_ref[...], g1_ref[...], preferred_element_type=f32)   # (nimg*CIN, 9*P1)
    for t in range(K2):
        for img in range(nimg):
            p1t_ref[t * CIN:(t + 1) * CIN, img * P1:(img + 1) * P1] = (
                a1[img * CIN:(img + 1) * CIN, t * P1:(t + 1) * P1])

    def mlp(x, w1_ref, b1_ref, g_ref, bt_ref, w2_ref, b2_ref):
        # Linear -> BatchNorm1d (training mode: per-view batch mean, biased var)
        # -> ReLU -> Linear
        h = jnp.dot(x, w1_ref[...], preferred_element_type=f32) + b1_ref[...]
        mean = jnp.dot(mavg, h, preferred_element_type=f32)
        var = jnp.dot(mavg, jnp.square(h - mean), preferred_element_type=f32)
        hn = (h - mean) * jax.lax.rsqrt(var + EPS_BN) * g_ref[...] + bt_ref[...]
        hn = jnp.maximum(hn, 0.0)
        return jnp.dot(hn, w2_ref[...], preferred_element_type=f32) + b2_ref[...]

    def encode(w1_ref, b1_ref, w2_ref, b2_ref,
               pw1_ref, pb1_ref, pg_ref, pbt_ref, pw2_ref, pb2_ref):
        # conv1 + ReLU, feature-major layout: h1t[c1, img*P1 + p1]
        h1t = jnp.maximum(
            jnp.dot(w1_ref[...], p1t_ref[...], preferred_element_type=f32)
            + b1_ref[...], 0.0)                                          # (C1, nimg*P1)
        # conv2 im2col via a block-diagonal gather matmul
        a2 = jnp.dot(h1t, g2_ref[...], preferred_element_type=f32)       # (C1, 9*nimg*P2)
        for t in range(K2):
            p2t_ref[t * C1:(t + 1) * C1, :] = a2[:, t * nimg * P2:(t + 1) * nimg * P2]
        # conv2 (the hooked layer children[-2]; no activation on its raw output)
        h2t = (jnp.dot(w2_ref[...], p2t_ref[...], preferred_element_type=f32)
               + b2_ref[...])                                            # (C2, nimg*P2)
        # torch-style NCHW flatten: rep[img, c2*P2 + p2] = conv2_out[img, c2, p2]
        for img in range(nimg):
            for c2 in range(C2):
                rep_ref[img:img + 1, c2 * P2:(c2 + 1) * P2] = (
                    h2t[c2:c2 + 1, img * P2:(img + 1) * P2])
        # projector MLP (per-view BN statistics, exactly like running it per view)
        return mlp(rep_ref[...], pw1_ref, pb1_ref, pg_ref, pbt_ref, pw2_ref, pb2_ref)

    z_on = encode(ow1_ref, ob1_ref, ow2_ref, ob2_ref,
                  opw1_ref, opb1_ref, opg_ref, opbt_ref, opw2_ref, opb2_ref)
    z_tg = encode(tw1_ref, tb1_ref, tw2_ref, tb2_ref,
                  tpw1_ref, tpb1_ref, tpg_ref, tpbt_ref, tpw2_ref, tpb2_ref)
    pred = mlp(z_on, qw1_ref, qb1_ref, qg_ref, qbt_ref, qw2_ref, qb2_ref)

    # pair predictions of view 1 with target projections of view 2 and vice versa
    tgt = jnp.dot(swap_ref[...], z_tg, preferred_element_type=f32)

    def nrm(v):
        n = jnp.sqrt(jnp.sum(v * v, axis=-1, keepdims=True))
        return v / jnp.maximum(n, EPS_NORM)

    cos = jnp.sum(nrm(pred) * nrm(tgt), axis=-1, keepdims=True)          # (nimg, 1)
    per_pair = 2.0 - 2.0 * cos
    # (loss_one + loss_two).mean()  ==  sum over the 2B pairs / B
    loss_ref[...] = jnp.sum(per_pair, axis=0, keepdims=True) * (1.0 / batch)


# ----------------------------------------------------------------------------
# Constant gather matrices (numpy, built at trace time; exact 0/1 selection)
# ----------------------------------------------------------------------------
def _conv_gather(s_in, s_out, stride=2, pad=1, k=3):
    """g[src_flat, t*P_out + p] = 1 iff padded-conv source pixel of output
    position p with kernel offset t is in-bounds and equals src_flat."""
    p_out = s_out * s_out
    g = np.zeros((s_in * s_in, k * k * p_out), np.float32)
    for ki in range(k):
        for kj in range(k):
            t = ki * k + kj
            for ho in range(s_out):
                for wo in range(s_out):
                    hi = stride * ho + ki - pad
                    wi = stride * wo + kj - pad
                    if 0 <= hi < s_in and 0 <= wi < s_in:
                        g[hi * s_in + wi, t * p_out + ho * s_out + wo] = 1.0
    return g


def _blockdiag_gather(s_in, s_out, nimg):
    """conv2 gather, block-diagonal over images: consumes h1t (C1, nimg*P1) and
    yields columns ordered (t, img, p2)."""
    base = _conv_gather(s_in, s_out)
    p_in, p_out = s_in * s_in, s_out * s_out
    g = np.zeros((nimg * p_in, K2 * nimg * p_out), np.float32)
    for t in range(K2):
        for img in range(nimg):
            g[img * p_in:(img + 1) * p_in,
              t * nimg * p_out + img * p_out: t * nimg * p_out + (img + 1) * p_out] = \
                base[:, t * p_out:(t + 1) * p_out]
    return g


# ----------------------------------------------------------------------------
# Parameter init (deterministic synthetic, torch-like layouts) + operand prep
# ----------------------------------------------------------------------------
def init_params(key):
    ks = jax.random.split(key, 6)

    def rnd(k, shape, scale=0.1):
        return scale * jax.random.normal(k, shape, jnp.float32)

    p = {
        # backbone convs (torch layout: (Cout, Cin, kH, kW))
        'c1w': rnd(ks[0], (C1, CIN, 3, 3)), 'c1b': jnp.zeros((C1,), jnp.float32),
        'c2w': rnd(ks[1], (C2, C1, 3, 3)),  'c2b': jnp.zeros((C2,), jnp.float32),
        # online projector MLP(dim -> hidden -> projection_size), weights stored (in, out)
        'pw1': rnd(ks[2], (DIM, HID)), 'pb1': jnp.zeros((HID,), jnp.float32),
        'pg': jnp.ones((HID,), jnp.float32), 'pbeta': jnp.zeros((HID,), jnp.float32),
        'pw2': rnd(ks[3], (HID, PROJ)), 'pb2': jnp.zeros((PROJ,), jnp.float32),
        # online predictor MLP(projection_size -> hidden -> projection_size)
        'qw1': rnd(ks[4], (PROJ, HID)), 'qb1': jnp.zeros((HID,), jnp.float32),
        'qg': jnp.ones((HID,), jnp.float32), 'qbeta': jnp.zeros((HID,), jnp.float32),
        'qw2': rnd(ks[5], (HID, PROJ)), 'qb2': jnp.zeros((PROJ,), jnp.float32),
    }
    # target encoder = copy.deepcopy(online_encoder): identical weights at construction
    enc_keys = ('c1w', 'c1b', 'c2w', 'c2b', 'pw1', 'pb1', 'pg', 'pbeta', 'pw2', 'pb2')
    p_target = {k: p[k] for k in enc_keys}
    return p, p_target


def _encoder_operands(q):
    # conv weights in (Cout, t*Cin + cin) im2col layout with t = ki*3 + kj
    w1 = jnp.transpose(q['c1w'], (0, 2, 3, 1)).reshape(C1, K2 * CIN)
    w2 = jnp.transpose(q['c2w'], (0, 2, 3, 1)).reshape(C2, K2 * C1)
    return (w1, q['c1b'].reshape(C1, 1), w2, q['c2b'].reshape(C2, 1),
            q['pw1'], q['pb1'].reshape(1, HID), q['pg'].reshape(1, HID),
            q['pbeta'].reshape(1, HID), q['pw2'], q['pb2'].reshape(1, PROJ))


def _predictor_operands(p):
    return (p['qw1'], p['qb1'].reshape(1, HID), p['qg'].reshape(1, HID),
            p['qbeta'].reshape(1, HID), p['qw2'], p['qb2'].reshape(1, PROJ))


# ----------------------------------------------------------------------------
# BYOL forward (single fused pallas_call)
# ----------------------------------------------------------------------------
def byol_forward(x1_nchw, x2_nchw, params, target_params):
    # Note: DEFAULT_AUG (ColorJitter / GaussianBlur / crops) is built in __init__
    # but never applied inside forward(), so no augmentation here.
    batch = x1_nchw.shape[0]
    nimg = 2 * batch

    # raw NCHW images, flattened to (2B*CIN, S*S); rows 0..B-1 are view 1.
    x_all = jnp.concatenate([x1_nchw, x2_nchw], axis=0)
    x_all = x_all.reshape(nimg * CIN, S * S).astype(jnp.float32)

    # constant matrices: conv gathers, per-view BN averaging, view-swap for the loss
    g1 = jnp.asarray(_conv_gather(S, S1))                       # (256, 576)
    g2 = jnp.asarray(_blockdiag_gather(S1, S2, nimg))           # (nimg*P1, 9*nimg*P2)
    mavg = jnp.asarray(np.kron(np.eye(2, dtype=np.float32),
                               np.full((batch, batch), 1.0 / batch, np.float32)))
    swap = jnp.asarray(np.kron(np.array([[0.0, 1.0], [1.0, 0.0]], np.float32),
                               np.eye(batch, dtype=np.float32)))

    inputs = (x_all, g1, g2, mavg, swap,
              *_encoder_operands(params),          # online encoder
              *_encoder_operands(target_params),   # target encoder (stop-grad irrelevant fwd-only)
              *_predictor_operands(params))        # online predictor

    loss = pl.pallas_call(
        _byol_kernel,
        out_shape=jax.ShapeDtypeStruct((1, 1), jnp.float32),
        in_specs=[pl.BlockSpec(memory_space=pltpu.MemorySpace.VMEM) for _ in inputs],
        out_specs=pl.BlockSpec(memory_space=pltpu.MemorySpace.VMEM),
        scratch_shapes=[
            pltpu.VMEM((K2 * CIN, nimg * P1), jnp.float32),   # conv1 patches (transposed)
            pltpu.VMEM((K2 * C1, nimg * P2), jnp.float32),    # conv2 patches (transposed)
            pltpu.VMEM((nimg, DIM), jnp.float32),             # NCHW-flattened representation
        ],
    )(*inputs)
    # TODO(synk): the backbone's final child (output discarded by the forward hook),
    # BatchNorm running-stat updates and the EMA target update are training-state
    # side effects with no forward-output effect and are not computed here.
    return loss[0, 0]


if __name__ == "__main__":
    key = jax.random.PRNGKey(0)
    k1, k2, kp = jax.random.split(key, 3)
    B, C, SZ = 2, 3, 16                       # batch=2, 3-channel images, image_size=16
    x1 = jax.random.normal(k1, (B, C, SZ, SZ), jnp.float32)
    x2 = jax.random.normal(k2, (B, C, SZ, SZ), jnp.float32)

    params, target_params = init_params(kp)
    loss = jax.jit(byol_forward)(x1, x2, params, target_params)
    jax.block_until_ready(loss)
    assert loss.shape == () and jnp.isfinite(loss)
    print("KERNEL_OK")
</pallas_src>

<mosaic_0001>
module attributes {stable_mosaic.version = 11 : i64} {
  func.func @_byol_kernel(%arg0: memref<12x256xf32, #tpu.memory_space<vmem>>, %arg1: memref<256x576xf32, #tpu.memory_space<vmem>>, %arg2: memref<256x576xf32, #tpu.memory_space<vmem>>, %arg3: memref<4x4xf32, #tpu.memory_space<vmem>>, %arg4: memref<4x4xf32, #tpu.memory_space<vmem>>, %arg5: memref<8x27xf32, #tpu.memory_space<vmem>>, %arg6: memref<8x1xf32, #tpu.memory_space<vmem>>, %arg7: memref<4x72xf32, #tpu.memory_space<vmem>>, %arg8: memref<4x1xf32, #tpu.memory_space<vmem>>, %arg9: memref<64x64xf32, #tpu.memory_space<vmem>>, %arg10: memref<1x64xf32, #tpu.memory_space<vmem>>, %arg11: memref<1x64xf32, #tpu.memory_space<vmem>>, %arg12: memref<1x64xf32, #tpu.memory_space<vmem>>, %arg13: memref<64x32xf32, #tpu.memory_space<vmem>>, %arg14: memref<1x32xf32, #tpu.memory_space<vmem>>, %arg15: memref<8x27xf32, #tpu.memory_space<vmem>>, %arg16: memref<8x1xf32, #tpu.memory_space<vmem>>, %arg17: memref<4x72xf32, #tpu.memory_space<vmem>>, %arg18: memref<4x1xf32, #tpu.memory_space<vmem>>, %arg19: memref<64x64xf32, #tpu.memory_space<vmem>>, %arg20: memref<1x64xf32, #tpu.memory_space<vmem>>, %arg21: memref<1x64xf32, #tpu.memory_space<vmem>>, %arg22: memref<1x64xf32, #tpu.memory_space<vmem>>, %arg23: memref<64x32xf32, #tpu.memory_space<vmem>>, %arg24: memref<1x32xf32, #tpu.memory_space<vmem>>, %arg25: memref<32x64xf32, #tpu.memory_space<vmem>>, %arg26: memref<1x64xf32, #tpu.memory_space<vmem>>, %arg27: memref<1x64xf32, #tpu.memory_space<vmem>>, %arg28: memref<1x64xf32, #tpu.memory_space<vmem>>, %arg29: memref<64x32xf32, #tpu.memory_space<vmem>>, %arg30: memref<1x32xf32, #tpu.memory_space<vmem>>, %arg31: memref<1x1xf32, #tpu.memory_space<vmem>>, %arg32: memref<27x256xf32, #tpu.memory_space<vmem>>, %arg33: memref<72x64xf32, #tpu.memory_space<vmem>>, %arg34: memref<4x64xf32, #tpu.memory_space<vmem>>) attributes {dimension_semantics = [], scalar_prefetch = 0 : i64, scratch_operands = 3 : i64, tpu.core_type = #tpu.core_type<tc>} {
    %c0 = arith.constant 0 : index
    %c0_0 = arith.constant 0 : index
    %0 = vector.load %arg3[%c0, %c0_0] : memref<4x4xf32, #tpu.memory_space<vmem>>, vector<4x4xf32>
    %c0_1 = arith.constant 0 : index
    %c0_2 = arith.constant 0 : index
    %1 = vector.load %arg0[%c0_1, %c0_2] : memref<12x256xf32, #tpu.memory_space<vmem>>, vector<12x256xf32>
    %c0_3 = arith.constant 0 : index
    %c0_4 = arith.constant 0 : index
    %2 = vector.load %arg1[%c0_3, %c0_4] : memref<256x576xf32, #tpu.memory_space<vmem>>, vector<256x576xf32>
    %cst = arith.constant dense<0.000000e+00> : vector<12x576xf32>
    %3 = tpu.matmul %1, %2, %cst {dimension_numbers = #tpu.dot_dimension_numbers<[1], [0], [0], [1], [0, 0, 1, 1], [], []>} : vector<12x256xf32>, vector<256x576xf32>, vector<12x576xf32> -> vector<12x576xf32>
    %4 = vector.extract_strided_slice %3 {offsets = [0, 0], sizes = [3, 64], strides = [1, 1]} : vector<12x576xf32> to vector<3x64xf32>
    %c0_5 = arith.constant 0 : index
    %c0_6 = arith.constant 0 : index
    %5 = vector.load %arg32[%c0_5, %c0_6] : memref<27x256xf32, #tpu.memory_space<vmem>>, vector<3x64xf32>
    tpu.vector_store %arg32[%c0_5, %c0_6], %4 {strides = array<i32>} : memref<27x256xf32, #tpu.memory_space<vmem>>, vector<3x64xf32>,
    %6 = vector.extract_strided_slice %3 {offsets = [3, 0], sizes = [3, 64], strides = [1, 1]} : vector<12x576xf32> to vector<3x64xf32>
    %c0_7 = arith.constant 0 : index
    %c64 = arith.constant 64 : index
    %7 = vector.load %arg32[%c0_7, %c64] : memref<27x256xf32, #tpu.memory_space<vmem>>, vector<3x64xf32>
    tpu.vector_store %arg32[%c0_7, %c64], %6 {strides = array<i32>} : memref<27x256xf32, #tpu.memory_space<vmem>>, vector<3x64xf32>,
    %8 = vector.extract_strided_slice %3 {offsets = [6, 0], sizes = [3, 64], strides = [1, 1]} : vector<12x576xf32> to vector<3x64xf32>
    %c0_8 = arith.constant 0 : index
    %c128 = arith.constant 128 : index
    %9 = vector.load %arg32[%c0_8, %c128] : memref<27x256xf32, #tpu.memory_space<vmem>>, vector<3x64xf32>
    tpu.vector_store %arg32[%c0_8, %c128], %8 {strides = array<i32>} : memref<27x256xf32, #tpu.memory_space<vmem>>, vector<3x64xf32>,
    %10 = vector.extract_strided_slice %3 {offsets = [9, 0], sizes = [3, 64], strides = [1, 1]} : vector<12x576xf32> to vector<3x64xf32>
    %c0_9 = arith.constant 0 : index
    %c192 = arith.constant 192 : index
    %11 = vector.load %arg32[%c0_9, %c192] : memref<27x256xf32, #tpu.memory_space<vmem>>, vector<3x64xf32>
    tpu.vector_store %arg32[%c0_9, %c192], %10 {strides = array<i32>} : memref<27x256xf32, #tpu.memory_space<vmem>>, vector<3x64xf32>,
    %12 = vector.extract_strided_slice %3 {offsets = [0, 64], sizes = [3, 64], strides = [1, 1]} : vector<12x576xf32> to vector<3x64xf32>
    %c3 = arith.constant 3 : index
    %c0_10 = arith.constant 0 : index
    %13 = vector.load %arg32[%c3, %c0_10] : memref<27x256xf32, #tpu.memory_space<vmem>>, vector<3x64xf32>
    tpu.vector_store %arg32[%c3, %c0_10], %12 {strides = array<i32>} : memref<27x256xf32, #tpu.memory_space<vmem>>, vector<3x64xf32>,
    %14 = vector.extract_strided_slice %3 {offsets = [3, 64], sizes = [3, 64], strides = [1, 1]} : vector<12x576xf32> to vector<3x64xf32>
    %c3_11 = arith.constant 3 : index
    %c64_12 = arith.constant 64 : index
    %15 = vector.load %arg32[%c3_11, %c64_12] : memref<27x256xf32, #tpu.memory_space<vmem>>, vector<3x64xf32>
    tpu.vector_store %arg32[%c3_11, %c64_12], %14 {strides = array<i32>} : memref<27x256xf32, #tpu.memory_space<vmem>>, vector<3x64xf32>,
    %16 = vector.extract_strided_slice %3 {offsets = [6, 64], sizes = [3, 64], strides = [1, 1]} : vector<12x576xf32> to vector<3x64xf32>
    %c3_13 = arith.constant 3 : index
    %c128_14 = arith.constant 128 : index
    %17 = vector.load %arg32[%c3_13, %c128_14] : memref<27x256xf32, #tpu.memory_space<vmem>>, vector<3x64xf32>
    tpu.vector_store %arg32[%c3_13, %c128_14], %16 {strides = array<i32>} : memref<27x256xf32, #tpu.memory_space<vmem>>, vector<3x64xf32>,
    %18 = vector.extract_strided_slice %3 {offsets = [9, 64], sizes = [3, 64], strides = [1, 1]} : vector<12x576xf32> to vector<3x64xf32>
    %c3_15 = arith.constant 3 : index
    %c192_16 = arith.constant 192 : index
    %19 = vector.load %arg32[%c3_15, %c192_16] : memref<27x256xf32, #tpu.memory_space<vmem>>, vector<3x64xf32>
    tpu.vector_store %arg32[%c3_15, %c192_16], %18 {strides = array<i32>} : memref<27x256xf32, #tpu.memory_space<vmem>>, vector<3x64xf32>,
    %20 = vector.extract_strided_slice %3 {offsets = [0, 128], sizes = [3, 64], strides = [1, 1]} : vector<12x576xf32> to vector<3x64xf32>
    %c6 = arith.constant 6 : index
    %c0_17 = arith.constant 0 : index
    %21 = vector.load %arg32[%c6, %c0_17] : memref<27x256xf32, #tpu.memory_space<vmem>>, vector<3x64xf32>
    tpu.vector_store %arg32[%c6, %c0_17], %20 {strides = array<i32>} : memref<27x256xf32, #tpu.memory_space<vmem>>, vector<3x64xf32>,
    %22 = vector.extract_strided_slice %3 {offsets = [3, 128], sizes = [3, 64], strides = [1, 1]} : vector<12x576xf32> to vector<3x64xf32>
    %c6_18 = arith.constant 6 : index
    %c64_19 = arith.constant 64 : index
    %23 = vector.load %arg32[%c6_18, %c64_19] : memref<27x256xf32, #tpu.memory_space<vmem>>, vector<3x64xf32>
    tpu.vector_store %arg32[%c6_18, %c64_19], %22 {strides = array<i32>} : memref<27x256xf32, #tpu.memory_space<vmem>>, vector<3x64xf32>,
    %24 = vector.extract_strided_slice %3 {offsets = [6, 128], sizes = [3, 64], strides = [1, 1]} : vector<12x576xf32> to vector<3x64xf32>
    %c6_20 = arith.constant 6 : index
    %c128_21 = arith.constant 128 : index
    %25 = vector.load %arg32[%c6_20, %c128_21] : memref<27x256xf32, #tpu.memory_space<vmem>>, vector<3x64xf32>
    tpu.vector_store %arg32[%c6_20, %c128_21], %24 {strides = array<i32>} : memref<27x256xf32, #tpu.memory_space<vmem>>, vector<3x64xf32>,
    %26 = vector.extract_strided_slice %3 {offsets = [9, 128], sizes = [3, 64], strides = [1, 1]} : vector<12x576xf32> to vector<3x64xf32>
    %c6_22 = arith.constant 6 : index
    %c192_23 = arith.constant 192 : index
    %27 = vector.load %arg32[%c6_22, %c192_23] : memref<27x256xf32, #tpu.memory_space<vmem>>, vector<3x64xf32>
    tpu.vector_store %arg32[%c6_22, %c192_23], %26 {strides = array<i32>} : memref<27x256xf32, #tpu.memory_space<vmem>>, vector<3x64xf32>,
    %28 = vector.extract_strided_slice %3 {offsets = [0, 192], sizes = [3, 64], strides = [1, 1]} : vector<12x576xf32> to vector<3x64xf32>
    %c9 = arith.constant 9 : index
    %c0_24 = arith.constant 0 : index
    %29 = vector.load %arg32[%c9, %c0_24] : memref<27x256xf32, #tpu.memory_space<vmem>>, vector<3x64xf32>
    tpu.vector_store %arg32[%c9, %c0_24], %28 {strides = array<i32>} : memref<27x256xf32, #tpu.memory_space<vmem>>, vector<3x64xf32>,
    %30 = vector.extract_strided_slice %3 {offsets = [3, 192], sizes = [3, 64], strides = [1, 1]} : vector<12x576xf32> to vector<3x64xf32>
    %c9_25 = arith.constant 9 : index
    %c64_26 = arith.constant 64 : index
    %31 = vector.load %arg32[%c9_25, %c64_26] : memref<27x256xf32, #tpu.memory_space<vmem>>, vector<3x64xf32>
    tpu.vector_store %arg32[%c9_25, %c64_26], %30 {strides = array<i32>} : memref<27x256xf32, #tpu.memory_space<vmem>>, vector<3x64xf32>,
    %32 = vector.extract_strided_slice %3 {offsets = [6, 192], sizes = [3, 64], strides = [1, 1]} : vector<12x576xf32> to vector<3x64xf32>
    %c9_27 = arith.constant 9 : index
    %c128_28 = arith.constant 128 : index
    %33 = vector.load %arg32[%c9_27, %c128_28] : memref<27x256xf32, #tpu.memory_space<vmem>>, vector<3x64xf32>
    tpu.vector_store %arg32[%c9_27, %c128_28], %32 {strides = array<i32>} : memref<27x256xf32, #tpu.memory_space<vmem>>, vector<3x64xf32>,
    %34 = vector.extract_strided_slice %3 {offsets = [9, 192], sizes = [3, 64], strides = [1, 1]} : vector<12x576xf32> to vector<3x64xf32>
    %c9_29 = arith.constant 9 : index
    %c192_30 = arith.constant 192 : index
    %35 = vector.load %arg32[%c9_29, %c192_30] : memref<27x256xf32, #tpu.memory_space<vmem>>, vector<3x64xf32>
    tpu.vector_store %arg32[%c9_29, %c192_30], %34 {strides = array<i32>} : memref<27x256xf32, #tpu.memory_space<vmem>>, vector<3x64xf32>,
    %36 = vector.extract_strided_slice %3 {offsets = [0, 256], sizes = [3, 64], strides = [1, 1]} : vector<12x576xf32> to vector<3x64xf32>
    %c12 = arith.constant 12 : index
    %c0_31 = arith.constant 0 : index
    %37 = vector.load %arg32[%c12, %c0_31] : memref<27x256xf32, #tpu.memory_space<vmem>>, vector<3x64xf32>
    tpu.vector_store %arg32[%c12, %c0_31], %36 {strides = array<i32>} : memref<27x256xf32, #tpu.memory_space<vmem>>, vector<3x64xf32>,
    %38 = vector.extract_strided_slice %3 {offsets = [3, 256], sizes = [3, 64], strides = [1, 1]} : vector<12x576xf32> to vector<3x64xf32>
    %c12_32 = arith.constant 12 : index
    %c64_33 = arith.constant 64 : index
    %39 = vector.load %arg32[%c12_32, %c64_33] : memref<27x256xf32, #tpu.memory_space<vmem>>, vector<3x64xf32>
    tpu.vector_store %arg32[%c12_32, %c64_33], %38 {strides = array<i32>} : memref<27x256xf32, #tpu.memory_space<vmem>>, vector<3x64xf32>,
    %40 = vector.extract_strided_slice %3 {offsets = [6, 256], sizes = [3, 64], strides = [1, 1]} : vector<12x576xf32> to vector<3x64xf32>
    %c12_34 = arith.constant 12 : index
    %c128_35 = arith.constant 128 : index
    %41 = vector.load %arg32[%c12_34, %c128_35] : memref<27x256xf32, #tpu.memory_space<vmem>>, vector<3x64xf32>
    tpu.vector_store %arg32[%c12_34, %c128_35], %40 {strides = array<i32>} : memref<27x256xf32, #tpu.memory_space<vmem>>, vector<3x64xf32>,
    %42 = vector.extract_strided_slice %3 {offsets = [9, 256], sizes = [3, 64], strides = [1, 1]} : vector<12x576xf32> to vector<3x64xf32>
    %c12_36 = arith.constant 12 : index
    %c192_37 = arith.constant 192 : index
    %43 = vector.load %arg32[%c12_36, %c192_37] : memref<27x256xf32, #tpu.memory_space<vmem>>, vector<3x64xf32>
    tpu.vector_store %arg32[%c12_36, %c192_37], %42 {strides = array<i32>} : memref<27x256xf32, #tpu.memory_space<vmem>>, vector<3x64xf32>,
    %44 = vector.extract_strided_slice %3 {offsets = [0, 320], sizes = [3, 64], strides = [1, 1]} : vector<12x576xf32> to vector<3x64xf32>
    %c15 = arith.constant 15 : index
    %c0_38 = arith.constant 0 : index
    %45 = vector.load %arg32[%c15, %c0_38] : memref<27x256xf32, #tpu.memory_space<vmem>>, vector<3x64xf32>
    tpu.vector_store %arg32[%c15, %c0_38], %44 {strides = array<i32>} : memref<27x256xf32, #tpu.memory_space<vmem>>, vector<3x64xf32>,
    %46 = vector.extract_strided_slice %3 {offsets = [3, 320], sizes = [3, 64], strides = [1, 1]} : vector<12x576xf32> to vector<3x64xf32>
    %c15_39 = arith.constant 15 : index
    %c64_40 = arith.constant 64 : index
    %47 = vector.load %arg32[%c15_39, %c64_40] : memref<27x256xf32, #tpu.memory_space<vmem>>, vector<3x64xf32>
    tpu.vector_store %arg32[%c15_39, %c64_40], %46 {strides = array<i32>} : memref<27x256xf32, #tpu.memory_space<vmem>>, vector<3x64xf32>,
    %48 = vector.extract_strided_slice %3 {offsets = [6, 320], sizes = [3, 64], strides = [1, 1]} : vector<12x576xf32> to vector<3x64xf32>
    %c15_41 = arith.constant 15 : index
    %c128_42 = arith.constant 128 : index
    %49 = vector.load %arg32[%c15_41, %c128_42] : memref<27x256xf32, #tpu.memory_space<vmem>>, vector<3x64xf32>
    tpu.vector_store %arg32[%c15_41, %c128_42], %48 {strides = array<i32>} : memref<27x256xf32, #tpu.memory_space<vmem>>, vector<3x64xf32>,
    %50 = vector.extract_strided_slice %3 {offsets = [9, 320], sizes = [3, 64], strides = [1, 1]} : vector<12x576xf32> to vector<3x64xf32>
    %c15_43 = arith.constant 15 : index
    %c192_44 = arith.constant 192 : index
    %51 = vector.load %arg32[%c15_43, %c192_44] : memref<27x256xf32, #tpu.memory_space<vmem>>, vector<3x64xf32>
    tpu.vector_store %arg32[%c15_43, %c192_44], %50 {strides = array<i32>} : memref<27x256xf32, #tpu.memory_space<vmem>>, vector<3x64xf32>,
    %52 = vector.extract_strided_slice %3 {offsets = [0, 384], sizes = [3, 64], strides = [1, 1]} : vector<12x576xf32> to vector<3x64xf32>
    %c18 = arith.constant 18 : index
    %c0_45 = arith.constant 0 : index
    %53 = vector.load %arg32[%c18, %c0_45] : memref<27x256xf32, #tpu.memory_space<vmem>>, vector<3x64xf32>
    tpu.vector_store %arg32[%c18, %c0_45], %52 {strides = array<i32>} : memref<27x256xf32, #tpu.memory_space<vmem>>, vector<3x64xf32>,
    %54 = vector.extract_strided_slice %3 {offsets = [3, 384], sizes = [3, 64], strides = [1, 1]} : vector<12x576xf32> to vector<3x64xf32>
    %c18_46 = arith.constant 18 : index
    %c64_47 = arith.constant 64 : index
    %55 = vector.load %arg32[%c18_46, %c64_47] : memref<27x256xf32, #tpu.memory_space<vmem>>, vector<3x64xf32>
    tpu.vector_store %arg32[%c18_46, %c64_47], %54 {strides = array<i32>} : memref<27x256xf32, #tpu.memory_space<vmem>>, vector<3x64xf32>,
    %56 = vector.extract_strided_slice %3 {offsets = [6, 384], sizes = [3, 64], strides = [1, 1]} : vector<12x576xf32> to vector<3x64xf32>
    %c18_48 = arith.constant 18 : index
    %c128_49 = arith.constant 128 : index
    %57 = vector.load %arg32[%c18_48, %c128_49] : memref<27x256xf32, #tpu.memory_space<vmem>>, vector<3x64xf32>
    tpu.vector_store %arg32[%c18_48, %c128_49], %56 {strides = array<i32>} : memref<27x256xf32, #tpu.memory_space<vmem>>, vector<3x64xf32>,
    %58 = vector.extract_strided_slice %3 {offsets = [9, 384], sizes = [3, 64], strides = [1, 1]} : vector<12x576xf32> to vector<3x64xf32>
    %c18_50 = arith.constant 18 : index
    %c192_51 = arith.constant 192 : index
    %59 = vector.load %arg32[%c18_50, %c192_51] : memref<27x256xf32, #tpu.memory_space<vmem>>, vector<3x64xf32>
    tpu.vector_store %arg32[%c18_50, %c192_51], %58 {strides = array<i32>} : memref<27x256xf32, #tpu.memory_space<vmem>>, vector<3x64xf32>,
    %60 = vector.extract_strided_slice %3 {offsets = [0, 448], sizes = [3, 64], strides = [1, 1]} : vector<12x576xf32> to vector<3x64xf32>
    %c21 = arith.constant 21 : index
    %c0_52 = arith.constant 0 : index
    %61 = vector.load %arg32[%c21, %c0_52] : memref<27x256xf32, #tpu.memory_space<vmem>>, vector<3x64xf32>
    tpu.vector_store %arg32[%c21, %c0_52], %60 {strides = array<i32>} : memref<27x256xf32, #tpu.memory_space<vmem>>, vector<3x64xf32>,
    %62 = vector.extract_strided_slice %3 {offsets = [3, 448], sizes = [3, 64], strides = [1, 1]} : vector<12x576xf32> to vector<3x64xf32>
    %c21_53 = arith.constant 21 : index
    %c64_54 = arith.constant 64 : index
    %63 = vector.load %arg32[%c21_53, %c64_54] : memref<27x256xf32, #tpu.memory_space<vmem>>, vector<3x64xf32>
    tpu.vector_store %arg32[%c21_53, %c64_54], %62 {strides = array<i32>} : memref<27x256xf32, #tpu.memory_space<vmem>>, vector<3x64xf32>,
    %64 = vector.extract_strided_slice %3 {offsets = [6, 448], sizes = [3, 64], strides = [1, 1]} : vector<12x576xf32> to vector<3x64xf32>
    %c21_55 = arith.constant 21 : index
    %c128_56 = arith.constant 128 : index
    %65 = vector.load %arg32[%c21_55, %c128_56] : memref<27x256xf32, #tpu.memory_space<vmem>>, vector<3x64xf32>
    tpu.vector_store %arg32[%c21_55, %c128_56], %64 {strides = array<i32>} : memref<27x256xf32, #tpu.memory_space<vmem>>, vector<3x64xf32>,
    %66 = vector.extract_strided_slice %3 {offsets = [9, 448], sizes = [3, 64], strides = [1, 1]} : vector<12x576xf32> to vector<3x64xf32>
    %c21_57 = arith.constant 21 : index
    %c192_58 = arith.constant 192 : index
    %67 = vector.load %arg32[%c21_57, %c192_58] : memref<27x256xf32, #tpu.memory_space<vmem>>, vector<3x64xf32>
    tpu.vector_store %arg32[%c21_57, %c192_58], %66 {strides = array<i32>} : memref<27x256xf32, #tpu.memory_space<vmem>>, vector<3x64xf32>,
    %68 = vector.extract_strided_slice %3 {offsets = [0, 512], sizes = [3, 64], strides = [1, 1]} : vector<12x576xf32> to vector<3x64xf32>
    %c24 = arith.constant 24 : index
    %c0_59 = arith.constant 0 : index
    %69 = vector.load %arg32[%c24, %c0_59] : memref<27x256xf32, #tpu.memory_space<vmem>>, vector<3x64xf32>
    tpu.vector_store %arg32[%c24, %c0_59], %68 {strides = array<i32>} : memref<27x256xf32, #tpu.memory_space<vmem>>, vector<3x64xf32>,
    %70 = vector.extract_strided_slice %3 {offsets = [3, 512], sizes = [3, 64], strides = [1, 1]} : vector<12x576xf32> to vector<3x64xf32>
    %c24_60 = arith.constant 24 : index
    %c64_61 = arith.constant 64 : index
    %71 = vector.load %arg32[%c24_60, %c64_61] : memref<27x256xf32, #tpu.memory_space<vmem>>, vector<3x64xf32>
    tpu.vector_store %arg32[%c24_60, %c64_61], %70 {strides = array<i32>} : memref<27x256xf32, #tpu.memory_space<vmem>>, vector<3x64xf32>,
    %72 = vector.extract_strided_slice %3 {offsets = [6, 512], sizes = [3, 64], strides = [1, 1]} : vector<12x576xf32> to vector<3x64xf32>
    %c24_62 = arith.constant 24 : index
    %c128_63 = arith.constant 128 : index
    %73 = vector.load %arg32[%c24_62, %c128_63] : memref<27x256xf32, #tpu.memory_space<vmem>>, vector<3x64xf32>
    tpu.vector_store %arg32[%c24_62, %c128_63], %72 {strides = array<i32>} : memref<27x256xf32, #tpu.memory_space<vmem>>, vector<3x64xf32>,
    %74 = vector.extract_strided_slice %3 {offsets = [9, 512], sizes = [3, 64], strides = [1, 1]} : vector<12x576xf32> to vector<3x64xf32>
    %c24_64 = arith.constant 24 : index
    %c192_65 = arith.constant 192 : index
    %75 = vector.load %arg32[%c24_64, %c192_65] : memref<27x256xf32, #tpu.memory_space<vmem>>, vector<3x64xf32>
    tpu.vector_store %arg32[%c24_64, %c192_65], %74 {strides = array<i32>} : memref<27x256xf32, #tpu.memory_space<vmem>>, vector<3x64xf32>,
    %c0_66 = arith.constant 0 : index
    %c0_67 = arith.constant 0 : index
    %76 = vector.load %arg5[%c0_66, %c0_67] : memref<8x27xf32, #tpu.memory_space<vmem>>, vector<8x27xf32>
    %c0_68 = arith.constant 0 : index
    %c0_69 = arith.constant 0 : index
    %77 = vector.load %arg32[%c0_68, %c0_69] : memref<27x256xf32, #tpu.memory_space<vmem>>, vector<27x256xf32>
    %cst_70 = arith.constant dense<0.000000e+00> : vector<8x256xf32>
    %78 = tpu.matmul %76, %77, %cst_70 {dimension_numbers = #tpu.dot_dimension_numbers<[1], [0], [0], [1], [0, 0, 1, 1], [], []>} : vector<8x27xf32>, vector<27x256xf32>, vector<8x256xf32> -> vector<8x256xf32>
    %c0_71 = arith.constant 0 : index
    %c0_72 = arith.constant 0 : index
    %79 = vector.load %arg6[%c0_71, %c0_72] : memref<8x1xf32, #tpu.memory_space<vmem>>, vector<8x1xf32>
    %80 = vector.broadcast %79 : vector<8x1xf32> to vector<8x256xf32>
    %81 = arith.addf %78, %80 : vector<8x256xf32>
    %cst_73 = arith.constant 0.000000e+00 : f32
    %82 = vector.broadcast %cst_73 : f32 to vector<8x256xf32>
    %83 = arith.maximumf %81, %82 : vector<8x256xf32>
    %c0_74 = arith.constant 0 : index
    %c0_75 = arith.constant 0 : index
    %84 = vector.load %arg2[%c0_74, %c0_75] : memref<256x576xf32, #tpu.memory_space<vmem>>, vector<256x576xf32>
    %cst_76 = arith.constant dense<0.000000e+00> : vector<8x576xf32>
    %85 = tpu.matmul %83, %84, %cst_76 {dimension_numbers = #tpu.dot_dimension_numbers<[1], [0], [0], [1], [0, 0, 1, 1], [], []>} : vector<8x256xf32>, vector<256x576xf32>, vector<8x576xf32> -> vector<8x576xf32>
    %86 = vector.extract_strided_slice %85 {offsets = [0, 0], sizes = [8, 64], strides = [1, 1]} : vector<8x576xf32> to vector<8x64xf32>
    %c0_77 = arith.constant 0 : index
    %c0_78 = arith.constant 0 : index
    %87 = vector.load %arg33[%c0_77, %c0_78] : memref<72x64xf32, #tpu.memory_space<vmem>>, vector<8x64xf32>
    tpu.vector_store %arg33[%c0_77, %c0_78], %86 {strides = array<i32>} : memref<72x64xf32, #tpu.memory_space<vmem>>, vector<8x64xf32>,
    %88 = vector.extract_strided_slice %85 {offsets = [0, 64], sizes = [8, 64], strides = [1, 1]} : vector<8x576xf32> to vector<8x64xf32>
    %c8 = arith.constant 8 : index
    %c0_79 = arith.constant 0 : index
    %89 = vector.load %arg33[%c8, %c0_79] : memref<72x64xf32, #tpu.memory_space<vmem>>, vector<8x64xf32>
    tpu.vector_store %arg33[%c8, %c0_79], %88 {strides = array<i32>} : memref<72x64xf32, #tpu.memory_space<vmem>>, vector<8x64xf32>,
    %90 = vector.extract_strided_slice %85 {offsets = [0, 128], sizes = [8, 64], strides = [1, 1]} : vector<8x576xf32> to vector<8x64xf32>
    %c16 = arith.constant 16 : index
    %c0_80 = arith.constant 0 : index
    %91 = vector.load %arg33[%c16, %c0_80] : memref<72x64xf32, #tpu.memory_space<vmem>>, vector<8x64xf32>
    tpu.vector_store %arg33[%c16, %c0_80], %90 {strides = array<i32>} : memref<72x64xf32, #tpu.memory_space<vmem>>, vector<8x64xf32>,
    %92 = vector.extract_strided_slice %85 {offsets = [0, 192], sizes = [8, 64], strides = [1, 1]} : vector<8x576xf32> to vector<8x64xf32>
    %c24_81 = arith.constant 24 : index
    %c0_82 = arith.constant 0 : index
    %93 = vector.load %arg33[%c24_81, %c0_82] : memref<72x64xf32, #tpu.memory_space<vmem>>, vector<8x64xf32>
    tpu.vector_store %arg33[%c24_81, %c0_82], %92 {strides = array<i32>} : memref<72x64xf32, #tpu.memory_space<vmem>>, vector<8x64xf32>,
    %94 = vector.extract_strided_slice %85 {offsets = [0, 256], sizes = [8, 64], strides = [1, 1]} : vector<8x576xf32> to vector<8x64xf32>
    %c32 = arith.constant 32 : index
    %c0_83 = arith.constant 0 : index
    %95 = vector.load %arg33[%c32, %c0_83] : memref<72x64xf32, #tpu.memory_space<vmem>>, vector<8x64xf32>
    tpu.vector_store %arg33[%c32, %c0_83], %94 {strides = array<i32>} : memref<72x64xf32, #tpu.memory_space<vmem>>, vector<8x64xf32>,
    %96 = vector.extract_strided_slice %85 {offsets = [0, 320], sizes = [8, 64], strides = [1, 1]} : vector<8x576xf32> to vector<8x64xf32>
    %c40 = arith.constant 40 : index
    %c0_84 = arith.constant 0 : index
    %97 = vector.load %arg33[%c40, %c0_84] : memref<72x64xf32, #tpu.memory_space<vmem>>, vector<8x64xf32>
    tpu.vector_store %arg33[%c40, %c0_84], %96 {strides = array<i32>} : memref<72x64xf32, #tpu.memory_space<vmem>>, vector<8x64xf32>,
    %98 = vector.extract_strided_slice %85 {offsets = [0, 384], sizes = [8, 64], strides = [1, 1]} : vector<8x576xf32> to vector<8x64xf32>
    %c48 = arith.constant 48 : index
    %c0_85 = arith.constant 0 : index
    %99 = vector.load %arg33[%c48, %c0_85] : memref<72x64xf32, #tpu.memory_space<vmem>>, vector<8x64xf32>
    tpu.vector_store %arg33[%c48, %c0_85], %98 {strides = array<i32>} : memref<72x64xf32, #tpu.memory_space<vmem>>, vector<8x64xf32>,
    %100 = vector.extract_strided_slice %85 {offsets = [0, 448], sizes = [8, 64], strides = [1, 1]} : vector<8x576xf32> to vector<8x64xf32>
    %c56 = arith.constant 56 : index
    %c0_86 = arith.constant 0 : index
    %101 = vector.load %arg33[%c56, %c0_86] : memref<72x64xf32, #tpu.memory_space<vmem>>, vector<8x64xf32>
    tpu.vector_store %arg33[%c56, %c0_86], %100 {strides = array<i32>} : memref<72x64xf32, #tpu.memory_space<vmem>>, vector<8x64xf32>,
    %102 = vector.extract_strided_slice %85 {offsets = [0, 512], sizes = [8, 64], strides = [1, 1]} : vector<8x576xf32> to vector<8x64xf32>
    %c64_87 = arith.constant 64 : index
    %c0_88 = arith.constant 0 : index
    %103 = vector.load %arg33[%c64_87, %c0_88] : memref<72x64xf32, #tpu.memory_space<vmem>>, vector<8x64xf32>
    tpu.vector_store %arg33[%c64_87, %c0_88], %102 {strides = array<i32>} : memref<72x64xf32, #tpu.memory_space<vmem>>, vector<8x64xf32>,
    %c0_89 = arith.constant 0 : index
    %c0_90 = arith.constant 0 : index
    %104 = vector.load %arg7[%c0_89, %c0_90] : memref<4x72xf32, #tpu.memory_space<vmem>>, vector<4x72xf32>
    %c0_91 = arith.constant 0 : index
    %c0_92 = arith.constant 0 : index
    %105 = vector.load %arg33[%c0_91, %c0_92] : memref<72x64xf32, #tpu.memory_space<vmem>>, vector<72x64xf32>
    %cst_93 = arith.constant dense<0.000000e+00> : vector<4x64xf32>
    %106 = tpu.matmul %104, %105, %cst_93 {dimension_numbers = #tpu.dot_dimension_numbers<[1], [0], [0], [1], [0, 0, 1, 1], [], []>} : vector<4x72xf32>, vector<72x64xf32>, vector<4x64xf32> -> vector<4x64xf32>
    %c0_94 = arith.constant 0 : index
    %c0_95 = arith.constant 0 : index
    %107 = vector.load %arg8[%c0_94, %c0_95] : memref<4x1xf32, #tpu.memory_space<vmem>>, vector<4x1xf32>
    %108 = vector.broadcast %107 : vector<4x1xf32> to vector<4x64xf32>
    %109 = arith.addf %106, %108 : vector<4x64xf32>
    %110 = vector.extract_strided_slice %109 {offsets = [0, 0], sizes = [1, 16], strides = [1, 1]} : vector<4x64xf32> to vector<1x16xf32>
    %c0_96 = arith.constant 0 : index
    %c0_97 = arith.constant 0 : index
    %111 = vector.load %arg34[%c0_96, %c0_97] : memref<4x64xf32, #tpu.memory_space<vmem>>, vector<1x16xf32>
    tpu.vector_store %arg34[%c0_96, %c0_97], %110 {strides = array<i32>} : memref<4x64xf32, #tpu.memory_space<vmem>>, vector<1x16xf32>,
    %112 = vector.extract_strided_slice %109 {offsets = [1, 0], sizes = [1, 16], strides = [1, 1]} : vector<4x64xf32> to vector<1x16xf32>
    %c0_98 = arith.constant 0 : index
    %c16_99 = arith.constant 16 : index
    %113 = vector.load %arg34[%c0_98, %c16_99] : memref<4x64xf32, #tpu.memory_space<vmem>>, vector<1x16xf32>
    tpu.vector_store %arg34[%c0_98, %c16_99], %112 {strides = array<i32>} : memref<4x64xf32, #tpu.memory_space<vmem>>, vector<1x16xf32>,
    %114 = vector.extract_strided_slice %109 {offsets = [2, 0], sizes = [1, 16], strides = [1, 1]} : vector<4x64xf32> to vector<1x16xf32>
    %c0_100 = arith.constant 0 : index
    %c32_101 = arith.constant 32 : index
    %115 = vector.load %arg34[%c0_100, %c32_101] : memref<4x64xf32, #tpu.memory_space<vmem>>, vector<1x16xf32>
    tpu.vector_store %arg34[%c0_100, %c32_101], %114 {strides = array<i32>} : memref<4x64xf32, #tpu.memory_space<vmem>>, vector<1x16xf32>,
    %116 = vector.extract_strided_slice %109 {offsets = [3, 0], sizes = [1, 16], strides = [1, 1]} : vector<4x64xf32> to vector<1x16xf32>
    %c0_102 = arith.constant 0 : index
    %c48_103 = arith.constant 48 : index
    %117 = vector.load %arg34[%c0_102, %c48_103] : memref<4x64xf32, #tpu.memory_space<vmem>>, vector<1x16xf32>
    tpu.vector_store %arg34[%c0_102, %c48_103], %116 {strides = array<i32>} : memref<4x64xf32, #tpu.memory_space<vmem>>, vector<1x16xf32>,
    %118 = vector.extract_strided_slice %109 {offsets = [0, 16], sizes = [1, 16], strides = [1, 1]} : vector<4x64xf32> to vector<1x16xf32>
    %c1 = arith.constant 1 : index
    %c0_104 = arith.constant 0 : index
    %119 = vector.load %arg34[%c1, %c0_104] : memref<4x64xf32, #tpu.memory_space<vmem>>, vector<1x16xf32>
    tpu.vector_store %arg34[%c1, %c0_104], %118 {strides = array<i32>} : memref<4x64xf32, #tpu.memory_space<vmem>>, vector<1x16xf32>,
    %120 = vector.extract_strided_slice %109 {offsets = [1, 16], sizes = [1, 16], strides = [1, 1]} : vector<4x64xf32> to vector<1x16xf32>
    %c1_105 = arith.constant 1 : index
    %c16_106 = arith.constant 16 : index
    %121 = vector.load %arg34[%c1_105, %c16_106] : memref<4x64xf32, #tpu.memory_space<vmem>>, vector<1x16xf32>
    tpu.vector_store %arg34[%c1_105, %c16_106], %120 {strides = array<i32>} : memref<4x64xf32, #tpu.memory_space<vmem>>, vector<1x16xf32>,
    %122 = vector.extract_strided_slice %109 {offsets = [2, 16], sizes = [1, 16], strides = [1, 1]} : vector<4x64xf32> to vector<1x16xf32>
    %c1_107 = arith.constant 1 : index
    %c32_108 = arith.constant 32 : index
    %123 = vector.load %arg34[%c1_107, %c32_108] : memref<4x64xf32, #tpu.memory_space<vmem>>, vector<1x16xf32>
    tpu.vector_store %arg34[%c1_107, %c32_108], %122 {strides = array<i32>} : memref<4x64xf32, #tpu.memory_space<vmem>>, vector<1x16xf32>,
    %124 = vector.extract_strided_slice %109 {offsets = [3, 16], sizes = [1, 16], strides = [1, 1]} : vector<4x64xf32> to vector<1x16xf32>
    %c1_109 = arith.constant 1 : index
    %c48_110 = arith.constant 48 : index
    %125 = vector.load %arg34[%c1_109, %c48_110] : memref<4x64xf32, #tpu.memory_space<vmem>>, vector<1x16xf32>
    tpu.vector_store %arg34[%c1_109, %c48_110], %124 {strides = array<i32>} : memref<4x64xf32, #tpu.memory_space<vmem>>, vector<1x16xf32>,
    %126 = vector.extract_strided_slice %109 {offsets = [0, 32], sizes = [1, 16], strides = [1, 1]} : vector<4x64xf32> to vector<1x16xf32>
    %c2 = arith.constant 2 : index
    %c0_111 = arith.constant 0 : index
    %127 = vector.load %arg34[%c2, %c0_111] : memref<4x64xf32, #tpu.memory_space<vmem>>, vector<1x16xf32>
    tpu.vector_store %arg34[%c2, %c0_111], %126 {strides = array<i32>} : memref<4x64xf32, #tpu.memory_space<vmem>>, vector<1x16xf32>,
    %128 = vector.extract_strided_slice %109 {offsets = [1, 32], sizes = [1, 16], strides = [1, 1]} : vector<4x64xf32> to vector<1x16xf32>
    %c2_112 = arith.constant 2 : index
    %c16_113 = arith.constant 16 : index
    %129 = vector.load %arg34[%c2_112, %c16_113] : memref<4x64xf32, #tpu.memory_space<vmem>>, vector<1x16xf32>
    tpu.vector_store %arg34[%c2_112, %c16_113], %128 {strides = array<i32>} : memref<4x64xf32, #tpu.memory_space<vmem>>, vector<1x16xf32>,
    %130 = vector.extract_strided_slice %109 {offsets = [2, 32], sizes = [1, 16], strides = [1, 1]} : vector<4x64xf32> to vector<1x16xf32>
    %c2_114 = arith.constant 2 : index
    %c32_115 = arith.constant 32 : index
    %131 = vector.load %arg34[%c2_114, %c32_115] : memref<4x64xf32, #tpu.memory_space<vmem>>, vector<1x16xf32>
    tpu.vector_store %arg34[%c2_114, %c32_115], %130 {strides = array<i32>} : memref<4x64xf32, #tpu.memory_space<vmem>>, vector<1x16xf32>,
    %132 = vector.extract_strided_slice %109 {offsets = [3, 32], sizes = [1, 16], strides = [1, 1]} : vector<4x64xf32> to vector<1x16xf32>
    %c2_116 = arith.constant 2 : index
    %c48_117 = arith.constant 48 : index
    %133 = vector.load %arg34[%c2_116, %c48_117] : memref<4x64xf32, #tpu.memory_space<vmem>>, vector<1x16xf32>
    tpu.vector_store %arg34[%c2_116, %c48_117], %132 {strides = array<i32>} : memref<4x64xf32, #tpu.memory_space<vmem>>, vector<1x16xf32>,
    %134 = vector.extract_strided_slice %109 {offsets = [0, 48], sizes = [1, 16], strides = [1, 1]} : vector<4x64xf32> to vector<1x16xf32>
    %c3_118 = arith.constant 3 : index
    %c0_119 = arith.constant 0 : index
    %135 = vector.load %arg34[%c3_118, %c0_119] : memref<4x64xf32, #tpu.memory_space<vmem>>, vector<1x16xf32>
    tpu.vector_store %arg34[%c3_118, %c0_119], %134 {strides = array<i32>} : memref<4x64xf32, #tpu.memory_space<vmem>>, vector<1x16xf32>,
    %136 = vector.extract_strided_slice %109 {offsets = [1, 48], sizes = [1, 16], strides = [1, 1]} : vector<4x64xf32> to vector<1x16xf32>
    %c3_120 = arith.constant 3 : index
    %c16_121 = arith.constant 16 : index
    %137 = vector.load %arg34[%c3_120, %c16_121] : memref<4x64xf32, #tpu.memory_space<vmem>>, vector<1x16xf32>
    tpu.vector_store %arg34[%c3_120, %c16_121], %136 {strides = array<i32>} : memref<4x64xf32, #tpu.memory_space<vmem>>, vector<1x16xf32>,
    %138 = vector.extract_strided_slice %109 {offsets = [2, 48], sizes = [1, 16], strides = [1, 1]} : vector<4x64xf32> to vector<1x16xf32>
    %c3_122 = arith.constant 3 : index
    %c32_123 = arith.constant 32 : index
    %139 = vector.load %arg34[%c3_122, %c32_123] : memref<4x64xf32, #tpu.memory_space<vmem>>, vector<1x16xf32>
    tpu.vector_store %arg34[%c3_122, %c32_123], %138 {strides = array<i32>} : memref<4x64xf32, #tpu.memory_space<vmem>>, vector<1x16xf32>,
    %140 = vector.extract_strided_slice %109 {offsets = [3, 48], sizes = [1, 16], strides = [1, 1]} : vector<4x64xf32> to vector<1x16xf32>
    %c3_124 = arith.constant 3 : index
    %c48_125 = arith.constant 48 : index
    %141 = vector.load %arg34[%c3_124, %c48_125] : memref<4x64xf32, #tpu.memory_space<vmem>>, vector<1x16xf32>
    tpu.vector_store %arg34[%c3_124, %c48_125], %140 {strides = array<i32>} : memref<4x64xf32, #tpu.memory_space<vmem>>, vector<1x16xf32>,
    %c0_126 = arith.constant 0 : index
    %c0_127 = arith.constant 0 : index
    %142 = vector.load %arg34[%c0_126, %c0_127] : memref<4x64xf32, #tpu.memory_space<vmem>>, vector<4x64xf32>
    %c0_128 = arith.constant 0 : index
    %c0_129 = arith.constant 0 : index
    %143 = vector.load %arg9[%c0_128, %c0_129] : memref<64x64xf32, #tpu.memory_space<vmem>>, vector<64x64xf32>
    %cst_130 = arith.constant dense<0.000000e+00> : vector<4x64xf32>
    %144 = tpu.matmul %142, %143, %cst_130 {dimension_numbers = #tpu.dot_dimension_numbers<[1], [0], [0], [1], [0, 0, 1, 1], [], []>} : vector<4x64xf32>, vector<64x64xf32>, vector<4x64xf32> -> vector<4x64xf32>
    %c0_131 = arith.constant 0 : index
    %c0_132 = arith.constant 0 : index
    %145 = vector.load %arg10[%c0_131, %c0_132] : memref<1x64xf32, #tpu.memory_space<vmem>>, vector<1x64xf32>
    %146 = vector.broadcast %145 : vector<1x64xf32> to vector<4x64xf32>
    %147 = arith.addf %144, %146 : vector<4x64xf32>
    %cst_133 = arith.constant dense<0.000000e+00> : vector<4x64xf32>
    %148 = tpu.matmul %0, %147, %cst_133 {dimension_numbers = #tpu.dot_dimension_numbers<[1], [0], [0], [1], [0, 0, 1, 1], [], []>} : vector<4x4xf32>, vector<4x64xf32>, vector<4x64xf32> -> vector<4x64xf32>
    %149 = arith.subf %147, %148 : vector<4x64xf32>
    %150 = arith.mulf %149, %149 : vector<4x64xf32>
    %cst_134 = arith.constant dense<0.000000e+00> : vector<4x64xf32>
    %151 = tpu.matmul %0, %150, %cst_134 {dimension_numbers = #tpu.dot_dimension_numbers<[1], [0], [0], [1], [0, 0, 1, 1], [], []>} : vector<4x4xf32>, vector<4x64xf32>, vector<4x64xf32> -> vector<4x64xf32>
    %152 = arith.subf %147, %148 : vector<4x64xf32>
    %cst_135 = arith.constant 9.99999974E-6 : f32
    %153 = vector.broadcast %cst_135 : f32 to vector<4x64xf32>
    %154 = arith.addf %151, %153 : vector<4x64xf32>
    %155 = math.rsqrt %154 : vector<4x64xf32>
    %156 = arith.mulf %152, %155 : vector<4x64xf32>
    %c0_136 = arith.constant 0 : index
    %c0_137 = arith.constant 0 : index
    %157 = vector.load %arg11[%c0_136, %c0_137] : memref<1x64xf32, #tpu.memory_space<vmem>>, vector<1x64xf32>
    %158 = vector.broadcast %157 : vector<1x64xf32> to vector<4x64xf32>
    %159 = arith.mulf %156, %158 : vector<4x64xf32>
    %c0_138 = arith.constant 0 : index
    %c0_139 = arith.constant 0 : index
    %160 = vector.load %arg12[%c0_138, %c0_139] : memref<1x64xf32, #tpu.memory_space<vmem>>, vector<1x64xf32>
    %161 = vector.broadcast %160 : vector<1x64xf32> to vector<4x64xf32>
    %162 = arith.addf %159, %161 : vector<4x64xf32>
    %cst_140 = arith.constant 0.000000e+00 : f32
    %163 = vector.broadcast %cst_140 : f32 to vector<4x64xf32>
    %164 = arith.maximumf %162, %163 : vector<4x64xf32>
    %c0_141 = arith.constant 0 : index
    %c0_142 = arith.constant 0 : index
    %165 = vector.load %arg13[%c0_141, %c0_142] : memref<64x32xf32, #tpu.memory_space<vmem>>, vector<64x32xf32>
    %cst_143 = arith.constant dense<0.000000e+00> : vector<4x32xf32>
    %166 = tpu.matmul %164, %165, %cst_143 {dimension_numbers = #tpu.dot_dimension_numbers<[1], [0], [0], [1], [0, 0, 1, 1], [], []>} : vector<4x64xf32>, vector<64x32xf32>, vector<4x32xf32> -> vector<4x32xf32>
    %c0_144 = arith.constant 0 : index
    %c0_145 = arith.constant 0 : index
    %167 = vector.load %arg14[%c0_144, %c0_145] : memref<1x32xf32, #tpu.memory_space<vmem>>, vector<1x32xf32>
    %168 = vector.broadcast %167 : vector<1x32xf32> to vector<4x32xf32>
    %169 = arith.addf %166, %168 : vector<4x32xf32>
    %c0_146 = arith.constant 0 : index
    %c0_147 = arith.constant 0 : index
    %170 = vector.load %arg15[%c0_146, %c0_147] : memref<8x27xf32, #tpu.memory_space<vmem>>, vector<8x27xf32>
    %c0_148 = arith.constant 0 : index
    %c0_149 = arith.constant 0 : index
    %171 = vector.load %arg32[%c0_148, %c0_149] : memref<27x256xf32, #tpu.memory_space<vmem>>, vector<27x256xf32>
    %cst_150 = arith.constant dense<0.000000e+00> : vector<8x256xf32>
    %172 = tpu.matmul %170, %171, %cst_150 {dimension_numbers = #tpu.dot_dimension_numbers<[1], [0], [0], [1], [0, 0, 1, 1], [], []>} : vector<8x27xf32>, vector<27x256xf32>, vector<8x256xf32> -> vector<8x256xf32>
    %c0_151 = arith.constant 0 : index
    %c0_152 = arith.constant 0 : index
    %173 = vector.load %arg16[%c0_151, %c0_152] : memref<8x1xf32, #tpu.memory_space<vmem>>, vector<8x1xf32>
    %174 = vector.broadcast %173 : vector<8x1xf32> to vector<8x256xf32>
    %175 = arith.addf %172, %174 : vector<8x256xf32>
    %cst_153 = arith.constant 0.000000e+00 : f32
    %176 = vector.broadcast %cst_153 : f32 to vector<8x256xf32>
    %177 = arith.maximumf %175, %176 : vector<8x256xf32>
    %c0_154 = arith.constant 0 : index
    %c0_155 = arith.constant 0 : index
    %178 = vector.load %arg2[%c0_154, %c0_155] : memref<256x576xf32, #tpu.memory_space<vmem>>, vector<256x576xf32>
    %cst_156 = arith.constant dense<0.000000e+00> : vector<8x576xf32>
    %179 = tpu.matmul %177, %178, %cst_156 {dimension_numbers = #tpu.dot_dimension_numbers<[1], [0], [0], [1], [0, 0, 1, 1], [], []>} : vector<8x256xf32>, vector<256x576xf32>, vector<8x576xf32> -> vector<8x576xf32>
    %180 = vector.extract_strided_slice %179 {offsets = [0, 0], sizes = [8, 64], strides = [1, 1]} : vector<8x576xf32> to vector<8x64xf32>
    %c0_157 = arith.constant 0 : index
    %c0_158 = arith.constant 0 : index
    %181 = vector.load %arg33[%c0_157, %c0_158] : memref<72x64xf32, #tpu.memory_space<vmem>>, vector<8x64xf32>
    tpu.vector_store %arg33[%c0_157, %c0_158], %180 {strides = array<i32>} : memref<72x64xf32, #tpu.memory_space<vmem>>, vector<8x64xf32>,
    %182 = vector.extract_strided_slice %179 {offsets = [0, 64], sizes = [8, 64], strides = [1, 1]} : vector<8x576xf32> to vector<8x64xf32>
    %c8_159 = arith.constant 8 : index
    %c0_160 = arith.constant 0 : index
    %183 = vector.load %arg33[%c8_159, %c0_160] : memref<72x64xf32, #tpu.memory_space<vmem>>, vector<8x64xf32>
    tpu.vector_store %arg33[%c8_159, %c0_160], %182 {strides = array<i32>} : memref<72x64xf32, #tpu.memory_space<vmem>>, vector<8x64xf32>,
    %184 = vector.extract_strided_slice %179 {offsets = [0, 128], sizes = [8, 64], strides = [1, 1]} : vector<8x576xf32> to vector<8x64xf32>
    %c16_161 = arith.constant 16 : index
    %c0_162 = arith.constant 0 : index
    %185 = vector.load %arg33[%c16_161, %c0_162] : memref<72x64xf32, #tpu.memory_space<vmem>>, vector<8x64xf32>
    tpu.vector_store %arg33[%c16_161, %c0_162], %184 {strides = array<i32>} : memref<72x64xf32, #tpu.memory_space<vmem>>, vector<8x64xf32>,
    %186 = vector.extract_strided_slice %179 {offsets = [0, 192], sizes = [8, 64], strides = [1, 1]} : vector<8x576xf32> to vector<8x64xf32>
    %c24_163 = arith.constant 24 : index
    %c0_164 = arith.constant 0 : index
    %187 = vector.load %arg33[%c24_163, %c0_164] : memref<72x64xf32, #tpu.memory_space<vmem>>, vector<8x64xf32>
    tpu.vector_store %arg33[%c24_163, %c0_164], %186 {strides = array<i32>} : memref<72x64xf32, #tpu.memory_space<vmem>>, vector<8x64xf32>,
    %188 = vector.extract_strided_slice %179 {offsets = [0, 256], sizes = [8, 64], strides = [1, 1]} : vector<8x576xf32> to vector<8x64xf32>
    %c32_165 = arith.constant 32 : index
    %c0_166 = arith.constant 0 : index
    %189 = vector.load %arg33[%c32_165, %c0_166] : memref<72x64xf32, #tpu.memory_space<vmem>>, vector<8x64xf32>
    tpu.vector_store %arg33[%c32_165, %c0_166], %188 {strides = array<i32>} : memref<72x64xf32, #tpu.memory_space<vmem>>, vector<8x64xf32>,
    %190 = vector.extract_strided_slice %179 {offsets = [0, 320], sizes = [8, 64], strides = [1, 1]} : vector<8x576xf32> to vector<8x64xf32>
    %c40_167 = arith.constant 40 : index
    %c0_168 = arith.constant 0 : index
    %191 = vector.load %arg33[%c40_167, %c0_168] : memref<72x64xf32, #tpu.memory_space<vmem>>, vector<8x64xf32>
    tpu.vector_store %arg33[%c40_167, %c0_168], %190 {strides = array<i32>} : memref<72x64xf32, #tpu.memory_space<vmem>>, vector<8x64xf32>,
    %192 = vector.extract_strided_slice %179 {offsets = [0, 384], sizes = [8, 64], strides = [1, 1]} : vector<8x576xf32> to vector<8x64xf32>
    %c48_169 = arith.constant 48 : index
    %c0_170 = arith.constant 0 : index
    %193 = vector.load %arg33[%c48_169, %c0_170] : memref<72x64xf32, #tpu.memory_space<vmem>>, vector<8x64xf32>
    tpu.vector_store %arg33[%c48_169, %c0_170], %192 {strides = array<i32>} : memref<72x64xf32, #tpu.memory_space<vmem>>, vector<8x64xf32>,
    %194 = vector.extract_strided_slice %179 {offsets = [0, 448], sizes = [8, 64], strides = [1, 1]} : vector<8x576xf32> to vector<8x64xf32>
    %c56_171 = arith.constant 56 : index
    %c0_172 = arith.constant 0 : index
    %195 = vector.load %arg33[%c56_171, %c0_172] : memref<72x64xf32, #tpu.memory_space<vmem>>, vector<8x64xf32>
    tpu.vector_store %arg33[%c56_171, %c0_172], %194 {strides = array<i32>} : memref<72x64xf32, #tpu.memory_space<vmem>>, vector<8x64xf32>,
    %196 = vector.extract_strided_slice %179 {offsets = [0, 512], sizes = [8, 64], strides = [1, 1]} : vector<8x576xf32> to vector<8x64xf32>
    %c64_173 = arith.constant 64 : index
    %c0_174 = arith.constant 0 : index
    %197 = vector.load %arg33[%c64_173, %c0_174] : memref<72x64xf32, #tpu.memory_space<vmem>>, vector<8x64xf32>
    tpu.vector_store %arg33[%c64_173, %c0_174], %196 {strides = array<i32>} : memref<72x64xf32, #tpu.memory_space<vmem>>, vector<8x64xf32>,
    %c0_175 = arith.constant 0 : index
    %c0_176 = arith.constant 0 : index
    %198 = vector.load %arg17[%c0_175, %c0_176] : memref<4x72xf32, #tpu.memory_space<vmem>>, vector<4x72xf32>
    %c0_177 = arith.constant 0 : index
    %c0_178 = arith.constant 0 : index
    %199 = vector.load %arg33[%c0_177, %c0_178] : memref<72x64xf32, #tpu.memory_space<vmem>>, vector<72x64xf32>
    %cst_179 = arith.constant dense<0.000000e+00> : vector<4x64xf32>
    %200 = tpu.matmul %198, %199, %cst_179 {dimension_numbers = #tpu.dot_dimension_numbers<[1], [0], [0], [1], [0, 0, 1, 1], [], []>} : vector<4x72xf32>, vector<72x64xf32>, vector<4x64xf32> -> vector<4x64xf32>
    %c0_180 = arith.constant 0 : index
    %c0_181 = arith.constant 0 : index
    %201 = vector.load %arg18[%c0_180, %c0_181] : memref<4x1xf32, #tpu.memory_space<vmem>>, vector<4x1xf32>
    %202 = vector.broadcast %201 : vector<4x1xf32> to vector<4x64xf32>
    %203 = arith.addf %200, %202 : vector<4x64xf32>
    %204 = vector.extract_strided_slice %203 {offsets = [0, 0], sizes = [1, 16], strides = [1, 1]} : vector<4x64xf32> to vector<1x16xf32>
    %c0_182 = arith.constant 0 : index
    %c0_183 = arith.constant 0 : index
    %205 = vector.load %arg34[%c0_182, %c0_183] : memref<4x64xf32, #tpu.memory_space<vmem>>, vector<1x16xf32>
    tpu.vector_store %arg34[%c0_182, %c0_183], %204 {strides = array<i32>} : memref<4x64xf32, #tpu.memory_space<vmem>>, vector<1x16xf32>,
    %206 = vector.extract_strided_slice %203 {offsets = [1, 0], sizes = [1, 16], strides = [1, 1]} : vector<4x64xf32> to vector<1x16xf32>
    %c0_184 = arith.constant 0 : index
    %c16_185 = arith.constant 16 : index
    %207 = vector.load %arg34[%c0_184, %c16_185] : memref<4x64xf32, #tpu.memory_space<vmem>>, vector<1x16xf32>
    tpu.vector_store %arg34[%c0_184, %c16_185], %206 {strides = array<i32>} : memref<4x64xf32, #tpu.memory_space<vmem>>, vector<1x16xf32>,
    %208 = vector.extract_strided_slice %203 {offsets = [2, 0], sizes = [1, 16], strides = [1, 1]} : vector<4x64xf32> to vector<1x16xf32>
    %c0_186 = arith.constant 0 : index
    %c32_187 = arith.constant 32 : index
    %209 = vector.load %arg34[%c0_186, %c32_187] : memref<4x64xf32, #tpu.memory_space<vmem>>, vector<1x16xf32>
    tpu.vector_store %arg34[%c0_186, %c32_187], %208 {strides = array<i32>} : memref<4x64xf32, #tpu.memory_space<vmem>>, vector<1x16xf32>,
    %210 = vector.extract_strided_slice %203 {offsets = [3, 0], sizes = [1, 16], strides = [1, 1]} : vector<4x64xf32> to vector<1x16xf32>
    %c0_188 = arith.constant 0 : index
    %c48_189 = arith.constant 48 : index
    %211 = vector.load %arg34[%c0_188, %c48_189] : memref<4x64xf32, #tpu.memory_space<vmem>>, vector<1x16xf32>
    tpu.vector_store %arg34[%c0_188, %c48_189], %210 {strides = array<i32>} : memref<4x64xf32, #tpu.memory_space<vmem>>, vector<1x16xf32>,
    %212 = vector.extract_strided_slice %203 {offsets = [0, 16], sizes = [1, 16], strides = [1, 1]} : vector<4x64xf32> to vector<1x16xf32>
    %c1_190 = arith.constant 1 : index
    %c0_191 = arith.constant 0 : index
    %213 = vector.load %arg34[%c1_190, %c0_191] : memref<4x64xf32, #tpu.memory_space<vmem>>, vector<1x16xf32>
    tpu.vector_store %arg34[%c1_190, %c0_191], %212 {strides = array<i32>} : memref<4x64xf32, #tpu.memory_space<vmem>>, vector<1x16xf32>,
    %214 = vector.extract_strided_slice %203 {offsets = [1, 16], sizes = [1, 16], strides = [1, 1]} : vector<4x64xf32> to vector<1x16xf32>
    %c1_192 = arith.constant 1 : index
    %c16_193 = arith.constant 16 : index
    %215 = vector.load %arg34[%c1_192, %c16_193] : memref<4x64xf32, #tpu.memory_space<vmem>>, vector<1x16xf32>
    tpu.vector_store %arg34[%c1_192, %c16_193], %214 {strides = array<i32>} : memref<4x64xf32, #tpu.memory_space<vmem>>, vector<1x16xf32>,
    %216 = vector.extract_strided_slice %203 {offsets = [2, 16], sizes = [1, 16], strides = [1, 1]} : vector<4x64xf32> to vector<1x16xf32>
    %c1_194 = arith.constant 1 : index
    %c32_195 = arith.constant 32 : index
    %217 = vector.load %arg34[%c1_194, %c32_195] : memref<4x64xf32, #tpu.memory_space<vmem>>, vector<1x16xf32>
    tpu.vector_store %arg34[%c1_194, %c32_195], %216 {strides = array<i32>} : memref<4x64xf32, #tpu.memory_space<vmem>>, vector<1x16xf32>,
    %218 = vector.extract_strided_slice %203 {offsets = [3, 16], sizes = [1, 16], strides = [1, 1]} : vector<4x64xf32> to vector<1x16xf32>
    %c1_196 = arith.constant 1 : index
    %c48_197 = arith.constant 48 : index
    %219 = vector.load %arg34[%c1_196, %c48_197] : memref<4x64xf32, #tpu.memory_space<vmem>>, vector<1x16xf32>
    tpu.vector_store %arg34[%c1_196, %c48_197], %218 {strides = array<i32>} : memref<4x64xf32, #tpu.memory_space<vmem>>, vector<1x16xf32>,
    %220 = vector.extract_strided_slice %203 {offsets = [0, 32], sizes = [1, 16], strides = [1, 1]} : vector<4x64xf32> to vector<1x16xf32>
    %c2_198 = arith.constant 2 : index
    %c0_199 = arith.constant 0 : index
    %221 = vector.load %arg34[%c2_198, %c0_199] : memref<4x64xf32, #tpu.memory_space<vmem>>, vector<1x16xf32>
    tpu.vector_store %arg34[%c2_198, %c0_199], %220 {strides = array<i32>} : memref<4x64xf32, #tpu.memory_space<vmem>>, vector<1x16xf32>,
    %222 = vector.extract_strided_slice %203 {offsets = [1, 32], sizes = [1, 16], strides = [1, 1]} : vector<4x64xf32> to vector<1x16xf32>
    %c2_200 = arith.constant 2 : index
    %c16_201 = arith.constant 16 : index
    %223 = vector.load %arg34[%c2_200, %c16_201] : memref<4x64xf32, #tpu.memory_space<vmem>>, vector<1x16xf32>
    tpu.vector_store %arg34[%c2_200, %c16_201], %222 {strides = array<i32>} : memref<4x64xf32, #tpu.memory_space<vmem>>, vector<1x16xf32>,
    %224 = vector.extract_strided_slice %203 {offsets = [2, 32], sizes = [1, 16], strides = [1, 1]} : vector<4x64xf32> to vector<1x16xf32>
    %c2_202 = arith.constant 2 : index
    %c32_203 = arith.constant 32 : index
    %225 = vector.load %arg34[%c2_202, %c32_203] : memref<4x64xf32, #tpu.memory_space<vmem>>, vector<1x16xf32>
    tpu.vector_store %arg34[%c2_202, %c32_203], %224 {strides = array<i32>} : memref<4x64xf32, #tpu.memory_space<vmem>>, vector<1x16xf32>,
    %226 = vector.extract_strided_slice %203 {offsets = [3, 32], sizes = [1, 16], strides = [1, 1]} : vector<4x64xf32> to vector<1x16xf32>
    %c2_204 = arith.constant 2 : index
    %c48_205 = arith.constant 48 : index
    %227 = vector.load %arg34[%c2_204, %c48_205] : memref<4x64xf32, #tpu.memory_space<vmem>>, vector<1x16xf32>
    tpu.vector_store %arg34[%c2_204, %c48_205], %226 {strides = array<i32>} : memref<4x64xf32, #tpu.memory_space<vmem>>, vector<1x16xf32>,
    %228 = vector.extract_strided_slice %203 {offsets = [0, 48], sizes = [1, 16], strides = [1, 1]} : vector<4x64xf32> to vector<1x16xf32>
    %c3_206 = arith.constant 3 : index
    %c0_207 = arith.constant 0 : index
    %229 = vector.load %arg34[%c3_206, %c0_207] : memref<4x64xf32, #tpu.memory_space<vmem>>, vector<1x16xf32>
    tpu.vector_store %arg34[%c3_206, %c0_207], %228 {strides = array<i32>} : memref<4x64xf32, #tpu.memory_space<vmem>>, vector<1x16xf32>,
    %230 = vector.extract_strided_slice %203 {offsets = [1, 48], sizes = [1, 16], strides = [1, 1]} : vector<4x64xf32> to vector<1x16xf32>
    %c3_208 = arith.constant 3 : index
    %c16_209 = arith.constant 16 : index
    %231 = vector.load %arg34[%c3_208, %c16_209] : memref<4x64xf32, #tpu.memory_space<vmem>>, vector<1x16xf32>
    tpu.vector_store %arg34[%c3_208, %c16_209], %230 {strides = array<i32>} : memref<4x64xf32, #tpu.memory_space<vmem>>, vector<1x16xf32>,
    %232 = vector.extract_strided_slice %203 {offsets = [2, 48], sizes = [1, 16], strides = [1, 1]} : vector<4x64xf32> to vector<1x16xf32>
    %c3_210 = arith.constant 3 : index
    %c32_211 = arith.constant 32 : index
    %233 = vector.load %arg34[%c3_210, %c32_211] : memref<4x64xf32, #tpu.memory_space<vmem>>, vector<1x16xf32>
    tpu.vector_store %arg34[%c3_210, %c32_211], %232 {strides = array<i32>} : memref<4x64xf32, #tpu.memory_space<vmem>>, vector<1x16xf32>,
    %234 = vector.extract_strided_slice %203 {offsets = [3, 48], sizes = [1, 16], strides = [1, 1]} : vector<4x64xf32> to vector<1x16xf32>
    %c3_212 = arith.constant 3 : index
    %c48_213 = arith.constant 48 : index
    %235 = vector.load %arg34[%c3_212, %c48_213] : memref<4x64xf32, #tpu.memory_space<vmem>>, vector<1x16xf32>
    tpu.vector_store %arg34[%c3_212, %c48_213], %234 {strides = array<i32>} : memref<4x64xf32, #tpu.memory_space<vmem>>, vector<1x16xf32>,
    %c0_214 = arith.constant 0 : index
    %c0_215 = arith.constant 0 : index
    %236 = vector.load %arg34[%c0_214, %c0_215] : memref<4x64xf32, #tpu.memory_space<vmem>>, vector<4x64xf32>
    %c0_216 = arith.constant 0 : index
    %c0_217 = arith.constant 0 : index
    %237 = vector.load %arg19[%c0_216, %c0_217] : memref<64x64xf32, #tpu.memory_space<vmem>>, vector<64x64xf32>
    %cst_218 = arith.constant dense<0.000000e+00> : vector<4x64xf32>
    %238 = tpu.matmul %236, %237, %cst_218 {dimension_numbers = #tpu.dot_dimension_numbers<[1], [0], [0], [1], [0, 0, 1, 1], [], []>} : vector<4x64xf32>, vector<64x64xf32>, vector<4x64xf32> -> vector<4x64xf32>
    %c0_219 = arith.constant 0 : index
    %c0_220 = arith.constant 0 : index
    %239 = vector.load %arg20[%c0_219, %c0_220] : memref<1x64xf32, #tpu.memory_space<vmem>>, vector<1x64xf32>
    %240 = vector.broadcast %239 : vector<1x64xf32> to vector<4x64xf32>
    %241 = arith.addf %238, %240 : vector<4x64xf32>
    %cst_221 = arith.constant dense<0.000000e+00> : vector<4x64xf32>
    %242 = tpu.matmul %0, %241, %cst_221 {dimension_numbers = #tpu.dot_dimension_numbers<[1], [0], [0], [1], [0, 0, 1, 1], [], []>} : vector<4x4xf32>, vector<4x64xf32>, vector<4x64xf32> -> vector<4x64xf32>
    %243 = arith.subf %241, %242 : vector<4x64xf32>
    %244 = arith.mulf %243, %243 : vector<4x64xf32>
    %cst_222 = arith.constant dense<0.000000e+00> : vector<4x64xf32>
    %245 = tpu.matmul %0, %244, %cst_222 {dimension_numbers = #tpu.dot_dimension_numbers<[1], [0], [0], [1], [0, 0, 1, 1], [], []>} : vector<4x4xf32>, vector<4x64xf32>, vector<4x64xf32> -> vector<4x64xf32>
    %246 = arith.subf %241, %242 : vector<4x64xf32>
    %cst_223 = arith.constant 9.99999974E-6 : f32
    %247 = vector.broadcast %cst_223 : f32 to vector<4x64xf32>
    %248 = arith.addf %245, %247 : vector<4x64xf32>
    %249 = math.rsqrt %248 : vector<4x64xf32>
    %250 = arith.mulf %246, %249 : vector<4x64xf32>
    %c0_224 = arith.constant 0 : index
    %c0_225 = arith.constant 0 : index
    %251 = vector.load %arg21[%c0_224, %c0_225] : memref<1x64xf32, #tpu.memory_space<vmem>>, vector<1x64xf32>
    %252 = vector.broadcast %251 : vector<1x64xf32> to vector<4x64xf32>
    %253 = arith.mulf %250, %252 : vector<4x64xf32>
    %c0_226 = arith.constant 0 : index
    %c0_227 = arith.constant 0 : index
    %254 = vector.load %arg22[%c0_226, %c0_227] : memref<1x64xf32, #tpu.memory_space<vmem>>, vector<1x64xf32>
    %255 = vector.broadcast %254 : vector<1x64xf32> to vector<4x64xf32>
    %256 = arith.addf %253, %255 : vector<4x64xf32>
    %cst_228 = arith.constant 0.000000e+00 : f32
    %257 = vector.broadcast %cst_228 : f32 to vector<4x64xf32>
    %258 = arith.maximumf %256, %257 : vector<4x64xf32>
    %c0_229 = arith.constant 0 : index
    %c0_230 = arith.constant 0 : index
    %259 = vector.load %arg23[%c0_229, %c0_230] : memref<64x32xf32, #tpu.memory_space<vmem>>, vector<64x32xf32>
    %cst_231 = arith.constant dense<0.000000e+00> : vector<4x32xf32>
    %260 = tpu.matmul %258, %259, %cst_231 {dimension_numbers = #tpu.dot_dimension_numbers<[1], [0], [0], [1], [0, 0, 1, 1], [], []>} : vector<4x64xf32>, vector<64x32xf32>, vector<4x32xf32> -> vector<4x32xf32>
    %c0_232 = arith.constant 0 : index
    %c0_233 = arith.constant 0 : index
    %261 = vector.load %arg24[%c0_232, %c0_233] : memref<1x32xf32, #tpu.memory_space<vmem>>, vector<1x32xf32>
    %262 = vector.broadcast %261 : vector<1x32xf32> to vector<4x32xf32>
    %263 = arith.addf %260, %262 : vector<4x32xf32>
    %c0_234 = arith.constant 0 : index
    %c0_235 = arith.constant 0 : index
    %264 = vector.load %arg25[%c0_234, %c0_235] : memref<32x64xf32, #tpu.memory_space<vmem>>, vector<32x64xf32>
    %cst_236 = arith.constant dense<0.000000e+00> : vector<4x64xf32>
    %265 = tpu.matmul %169, %264, %cst_236 {dimension_numbers = #tpu.dot_dimension_numbers<[1], [0], [0], [1], [0, 0, 1, 1], [], []>} : vector<4x32xf32>, vector<32x64xf32>, vector<4x64xf32> -> vector<4x64xf32>
    %c0_237 = arith.constant 0 : index
    %c0_238 = arith.constant 0 : index
    %266 = vector.load %arg26[%c0_237, %c0_238] : memref<1x64xf32, #tpu.memory_space<vmem>>, vector<1x64xf32>
    %267 = vector.broadcast %266 : vector<1x64xf32> to vector<4x64xf32>
    %268 = arith.addf %265, %267 : vector<4x64xf32>
    %cst_239 = arith.constant dense<0.000000e+00> : vector<4x64xf32>
    %269 = tpu.matmul %0, %268, %cst_239 {dimension_numbers = #tpu.dot_dimension_numbers<[1], [0], [0], [1], [0, 0, 1, 1], [], []>} : vector<4x4xf32>, vector<4x64xf32>, vector<4x64xf32> -> vector<4x64xf32>
    %270 = arith.subf %268, %269 : vector<4x64xf32>
    %271 = arith.mulf %270, %270 : vector<4x64xf32>
    %cst_240 = arith.constant dense<0.000000e+00> : vector<4x64xf32>
    %272 = tpu.matmul %0, %271, %cst_240 {dimension_numbers = #tpu.dot_dimension_numbers<[1], [0], [0], [1], [0, 0, 1, 1], [], []>} : vector<4x4xf32>, vector<4x64xf32>, vector<4x64xf32> -> vector<4x64xf32>
    %273 = arith.subf %268, %269 : vector<4x64xf32>
    %cst_241 = arith.constant 9.99999974E-6 : f32
    %274 = vector.broadcast %cst_241 : f32 to vector<4x64xf32>
    %275 = arith.addf %272, %274 : vector<4x64xf32>
    %276 = math.rsqrt %275 : vector<4x64xf32>
    %277 = arith.mulf %273, %276 : vector<4x64xf32>
    %c0_242 = arith.constant 0 : index
    %c0_243 = arith.constant 0 : index
    %278 = vector.load %arg27[%c0_242, %c0_243] : memref<1x64xf32, #tpu.memory_space<vmem>>, vector<1x64xf32>
    %279 = vector.broadcast %278 : vector<1x64xf32> to vector<4x64xf32>
    %280 = arith.mulf %277, %279 : vector<4x64xf32>
    %c0_244 = arith.constant 0 : index
    %c0_245 = arith.constant 0 : index
    %281 = vector.load %arg28[%c0_244, %c0_245] : memref<1x64xf32, #tpu.memory_space<vmem>>, vector<1x64xf32>
    %282 = vector.broadcast %281 : vector<1x64xf32> to vector<4x64xf32>
    %283 = arith.addf %280, %282 : vector<4x64xf32>
    %cst_246 = arith.constant 0.000000e+00 : f32
    %284 = vector.broadcast %cst_246 : f32 to vector<4x64xf32>
    %285 = arith.maximumf %283, %284 : vector<4x64xf32>
    %c0_247 = arith.constant 0 : index
    %c0_248 = arith.constant 0 : index
    %286 = vector.load %arg29[%c0_247, %c0_248] : memref<64x32xf32, #tpu.memory_space<vmem>>, vector<64x32xf32>
    %cst_249 = arith.constant dense<0.000000e+00> : vector<4x32xf32>
    %287 = tpu.matmul %285, %286, %cst_249 {dimension_numbers = #tpu.dot_dimension_numbers<[1], [0], [0], [1], [0, 0, 1, 1], [], []>} : vector<4x64xf32>, vector<64x32xf32>, vector<4x32xf32> -> vector<4x32xf32>
    %c0_250 = arith.constant 0 : index
    %c0_251 = arith.constant 0 : index
    %288 = vector.load %arg30[%c0_250, %c0_251] : memref<1x32xf32, #tpu.memory_space<vmem>>, vector<1x32xf32>
    %289 = vector.broadcast %288 : vector<1x32xf32> to vector<4x32xf32>
    %290 = arith.addf %287, %289 : vector<4x32xf32>
    %c0_252 = arith.constant 0 : index
    %c0_253 = arith.constant 0 : index
    %291 = vector.load %arg4[%c0_252, %c0_253] : memref<4x4xf32, #tpu.memory_space<vmem>>, vector<4x4xf32>
    %cst_254 = arith.constant dense<0.000000e+00> : vector<4x32xf32>
    %292 = tpu.matmul %291, %263, %cst_254 {dimension_numbers = #tpu.dot_dimension_numbers<[1], [0], [0], [1], [0, 0, 1, 1], [], []>} : vector<4x4xf32>, vector<4x32xf32>, vector<4x32xf32> -> vector<4x32xf32>
    %293 = arith.mulf %290, %290 : vector<4x32xf32>
    %cst_255 = arith.constant dense<0.000000e+00> : vector<4xf32>
    %294 = vector.multi_reduction <add>, %293, %cst_255 [1] : vector<4x32xf32> to vector<4xf32>
    %295 = vector.shape_cast %294 : vector<4xf32> to vector<4x1xf32>
    %296 = math.sqrt %295 : vector<4x1xf32>
    %cst_256 = arith.constant 9.99999996E-13 : f32
    %297 = vector.broadcast %cst_256 : f32 to vector<4x1xf32>
    %298 = arith.maximumf %296, %297 : vector<4x1xf32>
    %299 = vector.broadcast %298 : vector<4x1xf32> to vector<4x32xf32>
    %300 = arith.divf %290, %299 : vector<4x32xf32>
    %301 = arith.mulf %292, %292 : vector<4x32xf32>
    %cst_257 = arith.constant dense<0.000000e+00> : vector<4xf32>
    %302 = vector.multi_reduction <add>, %301, %cst_257 [1] : vector<4x32xf32> to vector<4xf32>
    %303 = vector.shape_cast %302 : vector<4xf32> to vector<4x1xf32>
    %304 = math.sqrt %303 : vector<4x1xf32>
    %cst_258 = arith.constant 9.99999996E-13 : f32
    %305 = vector.broadcast %cst_258 : f32 to vector<4x1xf32>
    %306 = arith.maximumf %304, %305 : vector<4x1xf32>
    %307 = vector.broadcast %306 : vector<4x1xf32> to vector<4x32xf32>
    %308 = arith.divf %292, %307 : vector<4x32xf32>
    %309 = arith.mulf %300, %308 : vector<4x32xf32>
    %cst_259 = arith.constant dense<0.000000e+00> : vector<4xf32>
    %310 = vector.multi_reduction <add>, %309, %cst_259 [1] : vector<4x32xf32> to vector<4xf32>
    %311 = vector.shape_cast %310 : vector<4xf32> to vector<4x1xf32>
    %cst_260 = arith.constant 2.000000e+00 : f32
    %312 = vector.broadcast %cst_260 : f32 to vector<4x1xf32>
    %313 = arith.mulf %312, %311 : vector<4x1xf32>
    %cst_261 = arith.constant 2.000000e+00 : f32
    %314 = vector.broadcast %cst_261 : f32 to vector<4x1xf32>
    %315 = arith.subf %314, %313 : vector<4x1xf32>
    %cst_262 = arith.constant dense<0.000000e+00> : vector<1xf32>
    %316 = vector.multi_reduction <add>, %315, %cst_262 [0] : vector<4x1xf32> to vector<1xf32>
    %317 = vector.shape_cast %316 : vector<1xf32> to vector<1x1xf32>
    %cst_263 = arith.constant 5.000000e-01 : f32
    %318 = vector.broadcast %cst_263 : f32 to vector<1x1xf32>
    %319 = arith.mulf %317, %318 : vector<1x1xf32>
    %c0_264 = arith.constant 0 : index
    %c0_265 = arith.constant 0 : index
    %320 = vector.load %arg31[%c0_264, %c0_265] : memref<1x1xf32, #tpu.memory_space<vmem>>, vector<1x1xf32>
    tpu.vector_store %arg31[%c0_264, %c0_265], %319 {strides = array<i32>} : memref<1x1xf32, #tpu.memory_space<vmem>>, vector<1x1xf32>,
    return
  }
}

</mosaic_0001>

<bundles_post_ra>
// kernel: byol_forward.1
= control target key start
LH: loop header
LB: loop body
LE: loop exit
PB: predicated region body
PF: predicated region fallthrough
CT: control target
= control target key end

     0   :  { %s3684_s6 = smov 1   ;;  %s3685_s10 = smov 2   ;;  %s4879_s0 = inlined_call_operand.smem [shape: u32[32], index: -1, kind: input, shape index: {}] }
   0x1   :  { %s3737_s5 = sld [smem:[%s4879_s0]]   ;;  %s3686_s14 = smov 3  }
   0x2   :  { %s3742_s9 = sld [smem:[%s4879_s0 + %s3684_s6]]   ;;  %s3687_s18 = smov 4  }
   0x3   :  { %s3747_s13 = sld [smem:[%s4879_s0 + %s3685_s10]]   ;;  %s3688_s22 = smov 5  }
   0x4   :  { %s3752_s17 = sld [smem:[%s4879_s0 + %s3686_s14]]   ;;  %s3689_s26 = smov 6  }
   0x5   :  { %s3757_s21 = sld [smem:[%s4879_s0 + %s3687_s18]]   ;;  %s3690_s30 = smov 7  }
   0x6   :  { %s3762_s25 = sld [smem:[%s4879_s0 + %s3688_s22]]   ;;  %s3691_s4 = smov 8  }
   0x7   :  { %s3767_s29 = sld [smem:[%s4879_s0 + %s3689_s26]]   ;;  %s3692_s10 = smov 9  }
   0x8   :  { %s3772_s3 = sld [smem:[%s4879_s0 + %s3690_s30]]   ;;  %s3693_s15 = smov 10  }
   0x9   :  { %s3777_s8 = sld [smem:[%s4879_s0 + %s3691_s4]]   ;;  %s3694_s20 = smov 11  }
   0xa   :  { %s3782_s14 = sld [smem:[%s4879_s0 + %s3692_s10]]   ;;  %s3695_s26 = smov 12  }
   0xb   :  { %4927 = sst [smem:[#allocation11_spill]] %s3757_s21  ;;  %s3696_s1 = smov 13  }
   0xc   :  { %s3787_s19 = sld [smem:[%s4879_s0 + %s3693_s15]]   ;;  %s3697_s7 = smov 14  }
   0xd   :  { %s3792_s24 = sld [smem:[%s4879_s0 + %s3694_s20]]   ;;  %s3698_s15 = smov 15  }
   0xe   :  { %s3797_s30 = sld [smem:[%s4879_s0 + %s3695_s26]]   ;;  %s3699_s22 = smov 16  }
   0xf   :  { %s3802_s6 = sld [smem:[%s4879_s0 + %s3696_s1]]   ;;  %s3700_s28 = smov 17  }
  0x10   :  { %s3807_s12 = sld [smem:[%s4879_s0 + %s3697_s7]]   ;;  %s3701_s7 = smov 18  }
  0x11   :  { %s3812_s20 = sld [smem:[%s4879_s0 + %s3698_s15]]   ;;  %s3702_s15 = smov 19  }
  0x12   :  { %s3817_s27 = sld [smem:[%s4879_s0 + %s3699_s22]]   ;;  %s3703_s22 = smov 20  }
  0x13   :  { %s3822_s4 = sld [smem:[%s4879_s0 + %s3700_s28]]   ;;  %s3704_s28 = smov 21  }
  0x14   :  { %4928 = sst [smem:[#allocation12_spill]] %s3797_s30 }
  0x15   :  { %s3827_s21 = sld [smem:[%s4879_s0 + %s3701_s7]]   ;;  %s3705_s7 = smov 22  }
  0x16   :  { %4929 = sst [smem:[#allocation13_spill]] %s3807_s12 }
  0x17   :  { %s3832_s12 = sld [smem:[%s4879_s0 + %s3702_s15]]   ;;  %s3706_s15 = smov 23  }
  0x18   :  { %s3837_s30 = sld [smem:[%s4879_s0 + %s3703_s22]]   ;;  %s3707_s22 = smov 24  }
  0x19   :  { %4930 = sst [smem:[#allocation14_spill]] %s3822_s4 }
  0x1a   :  { %s3842_s4 = sld [smem:[%s4879_s0 + %s3704_s28]]   ;;  %s3708_s28 = smov 25  }
  0x1b   :  { %4931 = sst [smem:[#allocation15_spill]] %s3827_s21 }
  0x1c   :  { %s3847_s21 = sld [smem:[%s4879_s0 + %s3705_s7]]   ;;  %s3709_s7 = smov 26  }
  0x1d   :  { %4932 = sst [smem:[#allocation16_spill]] %s3832_s12 }
  0x1e   :  { %4933 = sst [smem:[#allocation17_spill]] %s3837_s30 }
  0x1f   :  { %s3852_s12 = sld [smem:[%s4879_s0 + %s3706_s15]]   ;;  %s3710_s15 = smov 27  }
  0x20   :  { %4934 = sst [smem:[#allocation18_spill]] %s3842_s4 }
  0x21   :  { %s3857_s30 = sld [smem:[%s4879_s0 + %s3707_s22]]   ;;  %s3711_s22 = smov 28  }
  0x22   :  { %4935 = sst [smem:[#allocation19_spill]] %s3847_s21 }
  0x23   :  { %s3862_s4 = sld [smem:[%s4879_s0 + %s3708_s28]]   ;;  %s3712_s28 = smov 29  }
  0x24   :  { %s3867_s21 = sld [smem:[%s4879_s0 + %s3709_s7]]   ;;  %s3713_s7 = smov 30  }
  0x25   :  { %4936 = sst [smem:[#allocation20_spill]] %s3852_s12 }
  0x26   :  { %s3872_s12 = sld [smem:[%s4879_s0 + %s3710_s15]]   ;;  %s3714_s15 = smov 31  }
  0x27   :  { %4937 = sst [smem:[#allocation21_spill]] %s3857_s30 }
  0x28   :  { %s3877_s30 = sld [smem:[%s4879_s0 + %s3711_s22]]  }
  0x29   :  { %4938 = sst [smem:[#allocation22_spill]] %s3862_s4 }
  0x2a   :  { %4939 = sst [smem:[#allocation23_spill]] %s3867_s21 }
  0x2b   :  { %s3882_s4 = sld [smem:[%s4879_s0 + %s3712_s28]]  }
  0x2c   :  { %4940 = sst [smem:[#allocation24_spill]] %s3872_s12 }
  0x2d   :  { %s3887_s21 = sld [smem:[%s4879_s0 + %s3713_s7]]  }
  0x2e   :  { %s3892_s12 = sld [smem:[%s4879_s0 + %s3714_s15]]  }
  0x2f   :  { %68 = vsyncpa [#allocation6], 0 }
  0x30   :  { %69 = vsyncpa [#allocation7], 0  ;;  %s3715_s22 = smov [#allocation5]  }
  0x31   :  { %s79_s23 = sshll.u32 %s3715_s22, 4  ;;  %s80_s23 = int_to_ptr.vmem [resolvable:$true] %s79_s23 }
  0x32   :  { %s3648_s26 = scalar_lea.vmem %s80_s23, 20480  ;;  %p3653_p1 = scmp.lt.s32.totalorder %s80_s23, %s80_s23 }
  0x33   :  { %p3649_p0 = scmp.ne.s32.totalorder %s80_s23, %s3648_s26  ;;  %p3654_p2 = scmp.lt.s32.totalorder %s3648_s26, %s3648_s26 }
  0x35   :  { %p3655_p3 = por %p3654_p2, %p3653_p1 }
  0x37   :  { %p3656_p4 = pnand %p3655_p3, %p3649_p0 }
  0x39   :  { %3659 = shalt.err (!%p3656_p4)
}
  0x3a   :  { %s3716_s28 = smov 640   ;;  %s3717_s1 = smov 40  }
  0x3b   :  { %85 = dma.hbm_to_vmem [thread:$0]  %s3747_s13, 20480, %s80_s23, [#allocation6], %s3716_s28, %s3716_s28, %s3717_s1  }
  0x3c   :  { %3680 = dma.done.wait [#allocation6], 20480  }
  0x3d   :  { %3681 = vsyncadd [#allocation6], 4294946816  ;;  %v226_v0 = vld [vmem:[%s3742_s9 + $0x260] sm:$0xff]  ;;  %v228_v1 = vld [vmem:[%s3742_s9 + $0x270] sm:$0xff]  ;;  %vm539_vm0 = vcmask 518144   ;;  %vm580_vm1 = vcmask 523270  }
  0x3e   :  { %v225_v2 = vld [vmem:[%s3742_s9 + $0x258] sm:$0xff]  ;;  %310 = vmatprep.subr.mxu0 %v226_v0  ;;  %387 = vmatprep.subr.mxu1 %v228_v1  ;;  %v227_v3 = vld [vmem:[%s3742_s9 + $0x268] sm:$0xff]  ;;  %v220_v6 = vld [vmem:[%s3742_s9 + $0x230] sm:$0xff]  ;;  %vm620_vm2 = vcmask 522244   ;;  %vm582_vm3 = vcmask 516096   ;;  %vm666_vm4 = vcmask 520194  }
  0x3f   :  { %v221_v4 = vld [vmem:[%s3742_s9 + $0x238] sm:$0xff]  ;;  %v223_v5 = vld [vmem:[%s3742_s9 + $0x248] sm:$0xff]  ;;  %311 = vmatpush1.msra.mxu0 %v225_v2  ;;  %388 = vmatpush1.msra.mxu1 %v227_v3  ;;  %v222_v7 = vld [vmem:[%s3742_s9 + $0x240] sm:$0xff]  ;;  %s3718_s0 = smov 64   ;;  %vm629_vm5 = vcmask 1045504   ;;  %vm549_vm6 = vcmask 1041408  }
  0x40   :  { %v216_v8 = vld [vmem:[%s3742_s9 + $0x210] sm:$0xff]  ;;  %312 = vmatprep.subr.mxu0 %v221_v4  ;;  %389 = vmatprep.subr.mxu1 %v223_v5  ;;  %v218_v9 = vld [vmem:[%s3742_s9 + $0x220] sm:$0xff]  ;;  %v215_v10 = vld [vmem:[%s3742_s9 + $0x208] sm:$0xff]  ;;  %vm675_vm7 = vcmask 1043456   ;;  %vm568_vm8 = vcmask 1044480   ;;  %vm652_vm9 = vcmask 1040384  }
  0x41   :  { %v217_v11 = vld [vmem:[%s3742_s9 + $0x218] sm:$0xff]  ;;  %313 = vmatpush1.msra.mxu0 %v220_v6  ;;  %390 = vmatpush1.msra.mxu1 %v222_v7  ;;  %v211_v12 = vld [vmem:[%s3742_s9 + $0x1e8] sm:$0xff]  ;;  %v210_v14 = vld [vmem:[%s3742_s9 + $0x1e0] sm:$0xff]  ;;  %vm694_vm10 = vcmask 1046528   ;;  %vm609_vm11 = vcmask 1042432   ;;  %vm644_vm12 = vcmask 523271  }
  0x42   :  { %v213_v13 = vld [vmem:[%s3742_s9 + $0x1f8] sm:$0xff]  ;;  %314 = vmatprep.subr.mxu0 %v216_v8  ;;  %391 = vmatprep.subr.mxu1 %v218_v9  ;;  %v212_v15 = vld [vmem:[%s3742_s9 + $0x1f0] sm:$0xff]  ;;  %v206_v16 = vld [vmem:[%s3742_s9 + $0x1c0] sm:$0xff]  ;;  %vm646_vm13 = vcmask 517120   ;;  %vm648_vm14 = vcmask 1048071   ;;  %vm650_vm15 = vcmask 1041920  }
  0x43   :  { %315 = vmatpush1.msra.mxu0 %v215_v10  ;;  %392 = vmatpush1.msra.mxu1 %v217_v11  ;;  %v208_v17 = vld [vmem:[%s3742_s9 + $0x1d0] sm:$0xff]  ;;  %v205_v18 = vld [vmem:[%s3742_s9 + $0x1b8] sm:$0xff]  ;;  %v207_v19 = vld [vmem:[%s3742_s9 + $0x1c8] sm:$0xff]  ;;  %s3724_s13 = smov 16   ;;  %s5034_s2 = sld [smem:[#allocation20_spill]] }
  0x44   :  { %316 = vmatprep.subr.mxu0 %v211_v12  ;;  %393 = vmatprep.subr.mxu1 %v213_v13  ;;  %v201_v20 = vld [vmem:[%s3742_s9 + $0x198] sm:$0xff]  ;;  %v203_v21 = vld [vmem:[%s3742_s9 + $0x1a8] sm:$0xff]  ;;  %v200_v22 = vld [vmem:[%s3742_s9 + $0x190] sm:$0xff]  ;;  %s5035_s7 = sld [smem:[#allocation18_spill]] }
  0x45   :  { %317 = vmatpush1.msra.mxu0 %v210_v14  ;;  %394 = vmatpush1.msra.mxu1 %v212_v15  ;;  %v202_v23 = vld [vmem:[%s3742_s9 + $0x1a0] sm:$0xff]  ;;  %v196_v24 = vld [vmem:[%s3742_s9 + $0x170] sm:$0xff]  ;;  %v195_v26 = vld [vmem:[%s3742_s9 + $0x168] sm:$0xff]  ;;  %s5036_s10 = sld [smem:[#allocation19_spill]] }
  0x46   :  { %318 = vmatprep.subr.mxu0 %v206_v16  ;;  %395 = vmatprep.subr.mxu1 %v208_v17  ;;  %v198_v25 = vld [vmem:[%s3742_s9 + $0x180] sm:$0xff]  ;;  %v197_v27 = vld [vmem:[%s3742_s9 + $0x178] sm:$0xff]  ;;  %v191_v28 = vld [vmem:[%s3742_s9 + $0x148] sm:$0xff]  ;;  %s5037_s11 = sld [smem:[#allocation24_spill]] }
  0x47   :  { %319 = vmatpush1.msra.mxu0 %v205_v18  ;;  %396 = vmatpush1.msra.mxu1 %v207_v19  ;;  %v193_v29 = vld [vmem:[%s3742_s9 + $0x158] sm:$0xff]  ;;  %v190_v30 = vld [vmem:[%s3742_s9 + $0x140] sm:$0xff]  ;;  %v192_v31 = vld [vmem:[%s3742_s9 + $0x150] sm:$0xff]  ;;  %s5038_s15 = sld [smem:[#allocation21_spill]] }
  0x48   :  { %320 = vmatprep.subr.mxu0 %v201_v20  ;;  %397 = vmatprep.subr.mxu1 %v203_v21  ;;  %v186_v32 = vld [vmem:[%s3742_s9 + $0x120] sm:$0xff]  ;;  %v188_v33 = vld [vmem:[%s3742_s9 + $0x130] sm:$0xff]  ;;  %v185_v34 = vld [vmem:[%s3742_s9 + $0x118] sm:$0xff]  ;;  %s5039_s16 = sld [smem:[#allocation11_spill]] }
  0x49   :  { %321 = vmatpush1.msra.mxu0 %v200_v22  ;;  %398 = vmatpush1.msra.mxu1 %v202_v23  ;;  %v187_v35 = vld [vmem:[%s3742_s9 + $0x128] sm:$0xff]  ;;  %v181_v36 = vld [vmem:[%s3742_s9 + $0xf8] sm:$0xff]  ;;  %v180_v38 = vld [vmem:[%s3742_s9 + $0xf0] sm:$0xff] }
  0x4a   :  { %322 = vmatprep.subr.mxu0 %v196_v24  ;;  %399 = vmatprep.subr.mxu1 %v198_v25  ;;  %v183_v37 = vld [vmem:[%s3742_s9 + $0x108] sm:$0xff]  ;;  %v182_v39 = vld [vmem:[%s3742_s9 + $0x100] sm:$0xff]  ;;  %v176_v40 = vld [vmem:[%s3742_s9 + $0xd0] sm:$0xff] }
  0x4b   :  { %323 = vmatpush1.msra.mxu0 %v195_v26  ;;  %400 = vmatpush1.msra.mxu1 %v197_v27  ;;  %v178_v41 = vld [vmem:[%s3742_s9 + $0xe0] sm:$0xff]  ;;  %v175_v42 = vld [vmem:[%s3742_s9 + $0xc8] sm:$0xff]  ;;  %v177_v43 = vld [vmem:[%s3742_s9 + $0xd8] sm:$0xff] }
  0x4c   :  { %324 = vmatprep.subr.mxu0 %v191_v28  ;;  %401 = vmatprep.subr.mxu1 %v193_v29  ;;  %v171_v44 = vld [vmem:[%s3742_s9 + $0xa8] sm:$0xff]  ;;  %v173_v45 = vld [vmem:[%s3742_s9 + $0xb8] sm:$0xff]  ;;  %v170_v46 = vld [vmem:[%s3742_s9 + $0xa0] sm:$0xff] }
  0x4d   :  { %325 = vmatpush1.msra.mxu0 %v190_v30  ;;  %402 = vmatpush1.msra.mxu1 %v192_v31  ;;  %v172_v47 = vld [vmem:[%s3742_s9 + $0xb0] sm:$0xff]  ;;  %v166_v48 = vld [vmem:[%s3742_s9 + $0x80] sm:$0xff]  ;;  %v165_v50 = vld [vmem:[%s3742_s9 + $0x78] sm:$0xff] }
  0x4e   :  { %326 = vmatprep.subr.mxu0 %v186_v32  ;;  %403 = vmatprep.subr.mxu1 %v188_v33  ;;  %v168_v49 = vld [vmem:[%s3742_s9 + $0x90] sm:$0xff]  ;;  %v167_v51 = vld [vmem:[%s3742_s9 + $0x88] sm:$0xff]  ;;  %v161_v52 = vld [vmem:[%s3742_s9 + $0x58] sm:$0xff] }
  0x4f   :  { %327 = vmatpush1.msra.mxu0 %v185_v34  ;;  %404 = vmatpush1.msra.mxu1 %v187_v35  ;;  %v163_v53 = vld [vmem:[%s3742_s9 + $0x68] sm:$0xff]  ;;  %v160_v54 = vld [vmem:[%s3742_s9 + $0x50] sm:$0xff]  ;;  %v162_v55 = vld [vmem:[%s3742_s9 + $0x60] sm:$0xff] }
  0x50   :  { %328 = vmatprep.subr.mxu0 %v181_v36  ;;  %405 = vmatprep.subr.mxu1 %v183_v37  ;;  %v156_v56 = vld [vmem:[%s3742_s9 + $0x30] sm:$0xff]  ;;  %v158_v57 = vld [vmem:[%s3742_s9 + $0x40] sm:$0xff]  ;;  %v155_v58 = vld [vmem:[%s3742_s9 + $0x28] sm:$0xff] }
  0x51   :  { %329 = vmatpush1.msra.mxu0 %v180_v38  ;;  %406 = vmatpush1.msra.mxu1 %v182_v39  ;;  %v157_v59 = vld [vmem:[%s3742_s9 + $0x38] sm:$0xff]  ;;  %v151_v60 = vld [vmem:[%s3742_s9 + $0x8] sm:$0xff]  ;;  %v150_v62 = vld [vmem:[%s3742_s9] sm:$0xff] }
  0x52   :  { %330 = vmatprep.subr.mxu0 %v176_v40  ;;  %407 = vmatprep.subr.mxu1 %v178_v41  ;;  %v153_v61 = vld [vmem:[%s3742_s9 + $0x18] sm:$0xff]  ;;  %v152_v63 = vld [vmem:[%s3742_s9 + $0x10] sm:$0xff]  ;;  %v306_v0 = vld [vmem:[%s3742_s9 + $0x4e0] sm:$0xff] }
  0x53   :  { %331 = vmatpush1.msra.mxu0 %v175_v42  ;;  %408 = vmatpush1.msra.mxu1 %v177_v43  ;;  %v308_v1 = vld [vmem:[%s3742_s9 + $0x4f0] sm:$0xff]  ;;  %v305_v2 = vld [vmem:[%s3742_s9 + $0x4d8] sm:$0xff]  ;;  %v307_v3 = vld [vmem:[%s3742_s9 + $0x4e8] sm:$0xff] }
  0x54   :  { %332 = vmatprep.subr.mxu0 %v171_v44  ;;  %409 = vmatprep.subr.mxu1 %v173_v45  ;;  %v301_v4 = vld [vmem:[%s3742_s9 + $0x4b8] sm:$0xff]  ;;  %v303_v5 = vld [vmem:[%s3742_s9 + $0x4c8] sm:$0xff]  ;;  %v300_v6 = vld [vmem:[%s3742_s9 + $0x4b0] sm:$0xff] }
  0x55   :  { %333 = vmatpush1.msra.mxu0 %v170_v46  ;;  %410 = vmatpush1.msra.mxu1 %v172_v47  ;;  %v302_v7 = vld [vmem:[%s3742_s9 + $0x4c0] sm:$0xff]  ;;  %v296_v8 = vld [vmem:[%s3742_s9 + $0x490] sm:$0xff]  ;;  %v295_v10 = vld [vmem:[%s3742_s9 + $0x488] sm:$0xff] }
  0x56   :  { %334 = vmatprep.subr.mxu0 %v166_v48  ;;  %411 = vmatprep.subr.mxu1 %v168_v49  ;;  %v298_v9 = vld [vmem:[%s3742_s9 + $0x4a0] sm:$0xff]  ;;  %v297_v11 = vld [vmem:[%s3742_s9 + $0x498] sm:$0xff]  ;;  %v291_v12 = vld [vmem:[%s3742_s9 + $0x468] sm:$0xff] }
  0x57   :  { %335 = vmatpush1.msra.mxu0 %v165_v50  ;;  %412 = vmatpush1.msra.mxu1 %v167_v51  ;;  %v293_v13 = vld [vmem:[%s3742_s9 + $0x478] sm:$0xff]  ;;  %v290_v14 = vld [vmem:[%s3742_s9 + $0x460] sm:$0xff]  ;;  %v292_v15 = vld [vmem:[%s3742_s9 + $0x470] sm:$0xff] }
  0x58   :  { %336 = vmatprep.subr.mxu0 %v161_v52  ;;  %413 = vmatprep.subr.mxu1 %v163_v53  ;;  %v286_v16 = vld [vmem:[%s3742_s9 + $0x440] sm:$0xff]  ;;  %v288_v17 = vld [vmem:[%s3742_s9 + $0x450] sm:$0xff]  ;;  %v285_v18 = vld [vmem:[%s3742_s9 + $0x438] sm:$0xff] }
  0x59   :  { %337 = vmatpush1.msra.mxu0 %v160_v54  ;;  %414 = vmatpush1.msra.mxu1 %v162_v55  ;;  %v287_v19 = vld [vmem:[%s3742_s9 + $0x448] sm:$0xff]  ;;  %v281_v20 = vld [vmem:[%s3742_s9 + $0x418] sm:$0xff]  ;;  %v280_v22 = vld [vmem:[%s3742_s9 + $0x410] sm:$0xff] }
  0x5a   :  { %338 = vmatprep.subr.mxu0 %v156_v56  ;;  %415 = vmatprep.subr.mxu1 %v158_v57  ;;  %v283_v21 = vld [vmem:[%s3742_s9 + $0x428] sm:$0xff]  ;;  %v282_v23 = vld [vmem:[%s3742_s9 + $0x420] sm:$0xff]  ;;  %v276_v24 = vld [vmem:[%s3742_s9 + $0x3f0] sm:$0xff] }
  0x5b   :  { %339 = vmatpush1.msra.mxu0 %v155_v58  ;;  %416 = vmatpush1.msra.mxu1 %v157_v59  ;;  %v278_v25 = vld [vmem:[%s3742_s9 + $0x400] sm:$0xff]  ;;  %v275_v26 = vld [vmem:[%s3742_s9 + $0x3e8] sm:$0xff]  ;;  %v277_v27 = vld [vmem:[%s3742_s9 + $0x3f8] sm:$0xff] }
  0x5c   :  { %340 = vmatprep.subr.mxu0 %v151_v60  ;;  %417 = vmatprep.subr.mxu1 %v153_v61  ;;  %v271_v28 = vld [vmem:[%s3742_s9 + $0x3c8] sm:$0xff]  ;;  %v273_v29 = vld [vmem:[%s3742_s9 + $0x3d8] sm:$0xff]  ;;  %v270_v30 = vld [vmem:[%s3742_s9 + $0x3c0] sm:$0xff] }
  0x5d   :  { %341 = vmatpush1.msra.mxu0 %v150_v62  ;;  %418 = vmatpush1.msra.mxu1 %v152_v63  ;;  %v272_v31 = vld [vmem:[%s3742_s9 + $0x3d0] sm:$0xff]  ;;  %v266_v32 = vld [vmem:[%s3742_s9 + $0x3a0] sm:$0xff]  ;;  %v265_v34 = vld [vmem:[%s3742_s9 + $0x398] sm:$0xff] }
  0x5e   :  { %342 = vmatprep.subr.mxu0 %v306_v0  ;;  %419 = vmatprep.subr.mxu1 %v308_v1  ;;  %v268_v33 = vld [vmem:[%s3742_s9 + $0x3b0] sm:$0xff]  ;;  %v267_v35 = vld [vmem:[%s3742_s9 + $0x3a8] sm:$0xff]  ;;  %v261_v36 = vld [vmem:[%s3742_s9 + $0x378] sm:$0xff] }
  0x5f   :  { %343 = vmatpush2.msra.mxu0 %v305_v2  ;;  %420 = vmatpush2.msra.mxu1 %v307_v3  ;;  %v263_v37 = vld [vmem:[%s3742_s9 + $0x388] sm:$0xff]  ;;  %v260_v38 = vld [vmem:[%s3742_s9 + $0x370] sm:$0xff]  ;;  %v262_v39 = vld [vmem:[%s3742_s9 + $0x380] sm:$0xff] }
  0x60   :  { %344 = vmatprep.subr.mxu0 %v301_v4  ;;  %421 = vmatprep.subr.mxu1 %v303_v5  ;;  %v256_v40 = vld [vmem:[%s3742_s9 + $0x350] sm:$0xff]  ;;  %v258_v41 = vld [vmem:[%s3742_s9 + $0x360] sm:$0xff]  ;;  %v255_v42 = vld [vmem:[%s3742_s9 + $0x348] sm:$0xff] }
  0x61   :  { %345 = vmatpush2.msra.mxu0 %v300_v6  ;;  %422 = vmatpush2.msra.mxu1 %v302_v7  ;;  %v257_v43 = vld [vmem:[%s3742_s9 + $0x358] sm:$0xff]  ;;  %v251_v44 = vld [vmem:[%s3742_s9 + $0x328] sm:$0xff]  ;;  %v250_v46 = vld [vmem:[%s3742_s9 + $0x320] sm:$0xff] }
  0x62   :  { %346 = vmatprep.subr.mxu0 %v296_v8  ;;  %423 = vmatprep.subr.mxu1 %v298_v9  ;;  %v253_v45 = vld [vmem:[%s3742_s9 + $0x338] sm:$0xff]  ;;  %v252_v47 = vld [vmem:[%s3742_s9 + $0x330] sm:$0xff]  ;;  %v246_v48 = vld [vmem:[%s3742_s9 + $0x300] sm:$0xff] }
  0x63   :  { %347 = vmatpush2.msra.mxu0 %v295_v10  ;;  %424 = vmatpush2.msra.mxu1 %v297_v11  ;;  %v248_v49 = vld [vmem:[%s3742_s9 + $0x310] sm:$0xff]  ;;  %v245_v50 = vld [vmem:[%s3742_s9 + $0x2f8] sm:$0xff]  ;;  %v247_v51 = vld [vmem:[%s3742_s9 + $0x308] sm:$0xff] }
  0x64   :  { %348 = vmatprep.subr.mxu0 %v291_v12  ;;  %425 = vmatprep.subr.mxu1 %v293_v13  ;;  %v241_v52 = vld [vmem:[%s3742_s9 + $0x2d8] sm:$0xff]  ;;  %v243_v53 = vld [vmem:[%s3742_s9 + $0x2e8] sm:$0xff]  ;;  %v240_v54 = vld [vmem:[%s3742_s9 + $0x2d0] sm:$0xff] }
  0x65   :  { %349 = vmatpush2.msra.mxu0 %v290_v14  ;;  %426 = vmatpush2.msra.mxu1 %v292_v15  ;;  %v242_v55 = vld [vmem:[%s3742_s9 + $0x2e0] sm:$0xff]  ;;  %v236_v56 = vld [vmem:[%s3742_s9 + $0x2b0] sm:$0xff]  ;;  %v235_v58 = vld [vmem:[%s3742_s9 + $0x2a8] sm:$0xff] }
  0x66   :  { %350 = vmatprep.subr.mxu0 %v286_v16  ;;  %427 = vmatprep.subr.mxu1 %v288_v17  ;;  %v238_v57 = vld [vmem:[%s3742_s9 + $0x2c0] sm:$0xff]  ;;  %v237_v59 = vld [vmem:[%s3742_s9 + $0x2b8] sm:$0xff]  ;;  %v231_v60 = vld [vmem:[%s3742_s9 + $0x288] sm:$0xff] }
  0x67   :  { %351 = vmatpush2.msra.mxu0 %v285_v18  ;;  %428 = vmatpush2.msra.mxu1 %v287_v19  ;;  %v233_v61 = vld [vmem:[%s3742_s9 + $0x298] sm:$0xff]  ;;  %v230_v62 = vld [vmem:[%s3742_s9 + $0x280] sm:$0xff]  ;;  %v147_v63 = vld [vmem:[%s3737_s5 + $0x8] sm:$0xff] }
  0x68   :  { %352 = vmatprep.subr.mxu0 %v281_v20  ;;  %429 = vmatprep.subr.mxu1 %v283_v21  ;;  %v232_v0 = vld [vmem:[%s3742_s9 + $0x290] sm:$0xff]  ;;  %v4025_v1 = vld [vmem:[%s3737_s5] sm:$0xff]  ;;  %v309_v2 = vld [vmem:[%s3742_s9 + $0x4f8] sm:$0xff] }
  0x69   :  { %353 = vmatpush2.msra.mxu0 %v280_v22  ;;  %430 = vmatpush2.msra.mxu1 %v282_v23  ;;  %v4029_v3 = vld [vmem:[%s3737_s5 + $0x18] sm:$0xf]  ;;  %v304_v5 = vld [vmem:[%s3742_s9 + $0x4d0] sm:$0xff]  ;;  %v299_v8 = vld [vmem:[%s3742_s9 + $0x4a8] sm:$0xff] }
  0x6a   :  { %354 = vmatprep.subr.mxu0 %v276_v24  ;;  %431 = vmatprep.subr.mxu1 %v278_v25  ;;  %v229_v4 = vld [vmem:[%s3742_s9 + $0x278] sm:$0xff]  ;;  %v224_v6 = vld [vmem:[%s3742_s9 + $0x250] sm:$0xff]  ;;  %v219_v9 = vld [vmem:[%s3742_s9 + $0x228] sm:$0xff] }
  0x6b   :  { %355 = vmatpush2.msra.mxu0 %v275_v26  ;;  %432 = vmatpush2.msra.mxu1 %v277_v27  ;;  %v4038_v7 = vld [vmem:[%s3737_s5 + $0x10] sm:$0xf]  ;;  %v294_v10 = vld [vmem:[%s3742_s9 + $0x480] sm:$0xff]  ;;  %v289_v12 = vld [vmem:[%s3742_s9 + $0x458] sm:$0xff]  ;;  %s3722_s5 = smov 96  }
  0x6c   :  { %356 = vmatprep.subr.mxu0 %v271_v28  ;;  %433 = vmatprep.subr.mxu1 %v273_v29  ;;  %v214_v11 = vld [vmem:[%s3742_s9 + $0x200] sm:$0xff]  ;;  %v209_v13 = vld [vmem:[%s3742_s9 + $0x1d8] sm:$0xff]  ;;  %v284_v14 = vld [vmem:[%s3742_s9 + $0x430] sm:$0xff] }
  0x6d   :  { %357 = vmatpush2.msra.mxu0 %v270_v30  ;;  %434 = vmatpush2.msra.mxu1 %v272_v31  ;;  %v204_v15 = vld [vmem:[%s3742_s9 + $0x1b0] sm:$0xff]  ;;  %v279_v16 = vld [vmem:[%s3742_s9 + $0x408] sm:$0xff]  ;;  %v274_v18 = vld [vmem:[%s3742_s9 + $0x3e0] sm:$0xff] }
  0x6e   :  { %358 = vmatprep.subr.mxu0 %v266_v32  ;;  %435 = vmatprep.subr.mxu1 %v268_v33  ;;  %v199_v17 = vld [vmem:[%s3742_s9 + $0x188] sm:$0xff]  ;;  %v194_v19 = vld [vmem:[%s3742_s9 + $0x160] sm:$0xff]  ;;  %v269_v20 = vld [vmem:[%s3742_s9 + $0x3b8] sm:$0xff] }
  0x6f   :  { %359 = vmatpush2.msra.mxu0 %v265_v34  ;;  %436 = vmatpush2.msra.mxu1 %v267_v35  ;;  %v189_v21 = vld [vmem:[%s3742_s9 + $0x138] sm:$0xff]  ;;  %v264_v22 = vld [vmem:[%s3742_s9 + $0x390] sm:$0xff]  ;;  %v259_v24 = vld [vmem:[%s3742_s9 + $0x368] sm:$0xff] }
  0x70   :  { %360 = vmatprep.subr.mxu0 %v261_v36  ;;  %437 = vmatprep.subr.mxu1 %v263_v37  ;;  %v184_v23 = vld [vmem:[%s3742_s9 + $0x110] sm:$0xff]  ;;  %v179_v25 = vld [vmem:[%s3742_s9 + $0xe8] sm:$0xff]  ;;  %v254_v26 = vld [vmem:[%s3742_s9 + $0x340] sm:$0xff] }
  0x71   :  { %361 = vmatpush2.msra.mxu0 %v260_v38  ;;  %438 = vmatpush2.msra.mxu1 %v262_v39  ;;  %v174_v27 = vld [vmem:[%s3742_s9 + $0xc0] sm:$0xff]  ;;  %v249_v28 = vld [vmem:[%s3742_s9 + $0x318] sm:$0xff]  ;;  %v244_v30 = vld [vmem:[%s3742_s9 + $0x2f0] sm:$0xff] }
  0x72   :  { %362 = vmatprep.subr.mxu0 %v256_v40  ;;  %439 = vmatprep.subr.mxu1 %v258_v41  ;;  %v169_v29 = vld [vmem:[%s3742_s9 + $0x98] sm:$0xff]  ;;  %v164_v31 = vld [vmem:[%s3742_s9 + $0x70] sm:$0xff]  ;;  %v239_v32 = vld [vmem:[%s3742_s9 + $0x2c8] sm:$0xff] }
  0x73   :  { %363 = vmatpush2.msra.mxu0 %v255_v42  ;;  %440 = vmatpush2.msra.mxu1 %v257_v43  ;;  %v159_v33 = vld [vmem:[%s3742_s9 + $0x48] sm:$0xff]  ;;  %v234_v34 = vld [vmem:[%s3742_s9 + $0x2a0] sm:$0xff] }
  0x74   :  { %364 = vmatprep.subr.mxu0 %v251_v44  ;;  %441 = vmatprep.subr.mxu1 %v253_v45  ;;  %v154_v35 = vld [vmem:[%s3742_s9 + $0x20] sm:$0xff]  ;;  %s3723_s9 = smov 112  }
  0x75   :  { %365 = vmatpush2.msra.mxu0 %v250_v46  ;;  %442 = vmatpush2.msra.mxu1 %v252_v47 }
  0x76   :  { %366 = vmatprep.subr.mxu0 %v246_v48  ;;  %443 = vmatprep.subr.mxu1 %v248_v49 }
  0x77   :  { %367 = vmatpush2.msra.mxu0 %v245_v50  ;;  %444 = vmatpush2.msra.mxu1 %v247_v51 }
  0x78   :  { %368 = vmatprep.subr.mxu0 %v241_v52  ;;  %445 = vmatprep.subr.mxu1 %v243_v53 }
  0x79   :  { %369 = vmatpush2.msra.mxu0 %v240_v54  ;;  %446 = vmatpush2.msra.mxu1 %v242_v55 }
  0x7a   :  { %370 = vmatprep.subr.mxu0 %v236_v56  ;;  %447 = vmatprep.subr.mxu1 %v238_v57 }
  0x7b   :  { %371 = vmatpush2.msra.mxu0 %v235_v58  ;;  %448 = vmatpush2.msra.mxu1 %v237_v59 }
  0x7c   :  { %372 = vmatprep.subr.mxu0 %v231_v60  ;;  %449 = vmatprep.subr.mxu1 %v233_v61 }
  0x7d   :  { %373 = vmatpush2.msra.mxu0 %v230_v62  ;;  %374 = vmatprep.mubr.f32.mxu0 %v147_v63 }
  0x7e   :  { %450 = vmatpush2.msra.mxu1 %v232_v0  ;;  %451 = vmatprep.mubr.f32.mxu1 %v147_v63 }
  0x7f   :  { %375 = vmatmul.mubr.f32.vlgmr.msra.gmra.mxu0 %v4025_v1  ;;  %452 = vmatmul.mubr.f32.vlgmr.msra.gmra.mxu1 %v4025_v1 }
  0x80   :  { %3204 = vmatprep.subr.mxu0 %v309_v2  ;;  %380 = vmatprep.mubr.f32.mxu0 %v4029_v3 }
  0x81   :  { %3205 = vmatpush3.msra.mxu0 %v229_v4  ;;  %457 = vmatprep.mubr.f32.mxu1 %v4029_v3 }
  0x82   :  { %3206 = vmatprep.subr.mxu0 %v304_v5 }
  0x83   :  { %3207 = vmatpush3.msra.mxu0 %v224_v6  ;;  %458 = vmatmul.mubr.f32.gmra.mxu1 %v4038_v7 }
  0x84   :  { %381 = vmatmul.mubr.f32.gmra.mxu0 %v4038_v7  ;;  %3208 = vmatprep.subr.mxu0 %v299_v8 }
  0x85   :  { %3209 = vmatpush3.msra.mxu0 %v219_v9  ;;  %528 = vmatprep.mubr.f32.mxu0 %v147_v63 }
  0x86   :  { %3210 = vmatprep.subr.mxu0 %v294_v10 }
  0x87   :  { %3211 = vmatpush3.msra.mxu0 %v214_v11 }
  0x88   :  { %3212 = vmatprep.subr.mxu0 %v289_v12 }
  0x89   :  { %3213 = vmatpush3.msra.mxu0 %v209_v13 }
  0x8a   :  { %3214 = vmatprep.subr.mxu0 %v284_v14 }
  0x8b   :  { %3215 = vmatpush3.msra.mxu0 %v204_v15 }
  0x8c   :  { %3216 = vmatprep.subr.mxu0 %v279_v16 }
  0x8d   :  { %3217 = vmatpush3.msra.mxu0 %v199_v17 }
  0x8e   :  { %3218 = vmatprep.subr.mxu0 %v274_v18 }
  0x8f   :  { %3219 = vmatpush3.msra.mxu0 %v194_v19 }
  0x90   :  { %3220 = vmatprep.subr.mxu0 %v269_v20 }
  0x91   :  { %3221 = vmatpush3.msra.mxu0 %v189_v21 }
  0x92   :  { %3222 = vmatprep.subr.mxu0 %v264_v22  ;;  %v4883_v22 = vmov 0.0  }
  0x93   :  { %3223 = vmatpush3.msra.mxu0 %v184_v23  ;;  %810 = vmatprep.mubr.f32.mxu1 %v4883_v22  ;;  %v4390_v22 = vld [vmem:[#allocation5 + $0x2f8] sm:$0xff] }
  0x94   :  { %3224 = vmatprep.subr.mxu0 %v259_v24  ;;  %v3720_v24 = vmov 0   ;;  %4953 = vst [vmem:[#allocation37_spill] sm:$0xff] %v4390_v22 }
  0x95   :  { %3225 = vmatpush3.msra.mxu0 %v179_v25  ;;  %3624 = vset.pattern.permute.xlu0 %v3720_v24  ;;  %v897_v25 = vld [vmem:[#allocation5 + $0x270] sm:$0xff] }
  0x96   :  { %3226 = vmatprep.subr.mxu0 %v254_v26  ;;  %3625 = vset.pattern.permute.xlu1 %v3720_v24  ;;  %v896_v26 = vld [vmem:[#allocation5 + $0x268] sm:$0xff] }
  0x97   :  { %3227 = vmatpush3.msra.mxu0 %v174_v27  ;;  %v892_v27 = vld [vmem:[#allocation5 + $0x248] sm:$0xff] }
  0x98   :  { %3228 = vmatprep.subr.mxu0 %v249_v28  ;;  %v730_v28 = vld [vmem:[%s3767_s29] sm:$0xff]  ;;  %v932_v24 = vld [vmem:[#allocation5 + $0x388] sm:$0xff]  ;;  %s3726_s29 = smov 48  }
  0x99   :  { %3229 = vmatpush3.msra.mxu0 %v169_v29  ;;  %v891_v29 = vld [vmem:[#allocation5 + $0x240] sm:$0xff] }
  0x9a   :  { %3230 = vmatprep.subr.mxu0 %v244_v30  ;;  %v887_v30 = vld [vmem:[#allocation5 + $0x220] sm:$0xff] }
  0x9b   :  { %3231 = vmatpush3.msra.mxu0 %v164_v31  ;;  %v886_v31 = vld [vmem:[#allocation5 + $0x218] sm:$0xff] }
  0x9c   :  { %3232 = vmatprep.subr.mxu0 %v239_v32  ;;  %v882_v32 = vld [vmem:[#allocation5 + $0x1f8] sm:$0xff] }
  0x9d   :  { %3233 = vmatpush3.msra.mxu0 %v159_v33  ;;  %v881_v33 = vld [vmem:[#allocation5 + $0x1f0] sm:$0xff] }
  0x9e   :  { %3234 = vmatprep.subr.mxu0 %v234_v34  ;;  %v877_v34 = vld [vmem:[#allocation5 + $0x1d0] sm:$0xff] }
  0x9f   :  { %3235 = vmatpush3.msra.mxu0 %v154_v35  ;;  %v876_v35 = vld [vmem:[#allocation5 + $0x1c8] sm:$0xff] }
  0xa0   :  { %529 = vmatmul.mubr.f32.vlgmr.msra.gmra.mxu0 %v4025_v1  ;;  %1050 = vmatprep.subr.mxu0 %v897_v25  ;;  %v931_v25 = vld [vmem:[#allocation5 + $0x380] sm:$0xff] }
  0xa1   :  { %533 = vmatprep.mubr.f32.mxu0 %v4029_v3  ;;  %1051 = vmatpush1.msra.mxu0 %v896_v26  ;;  %v927_v26 = vld [vmem:[#allocation5 + $0x360] sm:$0xff] }
  0xa2   :  { %1052 = vmatprep.subr.mxu0 %v892_v27  ;;  %v926_v27 = vld [vmem:[#allocation5 + $0x358] sm:$0xff] }
  0xa3   :  { %1053 = vmatpush1.msra.mxu0 %v891_v29  ;;  %v921_v29 = vld [vmem:[#allocation5 + $0x330] sm:$0xff] }
  0xa4   :  { %534 = vmatmul.mubr.f32.gmra.mxu0 %v4038_v7  ;;  %1054 = vmatprep.subr.mxu0 %v887_v30  ;;  %v917_v30 = vld [vmem:[#allocation5 + $0x310] sm:$0xff] }
  0xa5   :  { %1055 = vmatpush1.msra.mxu0 %v886_v31 }
  0xa6   :  { %1056 = vmatprep.subr.mxu0 %v882_v32 }
  0xa7   :  { %1057 = vmatpush1.msra.mxu0 %v881_v33 }
  0xa8   :  { %1058 = vmatprep.subr.mxu0 %v877_v34 }
  0xa9   :  { %1059 = vmatpush1.msra.mxu0 %v876_v35 }
 0x13f   :  { %v4074_v36 = vpop.f32.mrf.mxu0  ;;  %v453_v37 = vpop.f32.mrf.mxu1 }
 0x140   :  { %v4076_v38 = vrot.slane %v453_v37, 4  ;;  %v640_v39 = vrot.slane %v453_v37, 1  ;;  %540 = vst.msk [vmem:[#allocation2] sm:$0x7] %vm539_vm0, %v4074_v36  ;;  %v630_v42 = vrot.slane %v453_v37, 2  ;;  %v622_v45 = vrot.slane %v453_v37, 7 }
 0x141   :  { %v4080_v40 = vpop.f32.mrf.mxu0  ;;  %v4082_v41 = vpop.f32.mrf.mxu1  ;;  %v550_v51 = vrot.slane %v4074_v36, 6  ;;  %v542_v63 = vrot.slane %v4074_v36, 3  ;;  %v560_v23 = vrot.slane %v4074_v36, 5  ;;  %v872_v37 = vld [vmem:[#allocation5 + $0x1a8] sm:$0xff] }
 0x142   :  { %v4085_v43 = vrot.slane %v4080_v40, 2  ;;  %592 = vst.msk [vmem:[#allocation2 + $0x8] sm:$0xc0] %vm580_vm1, %v4080_v40  ;;  %v664_v44 = vrot.slane %v4082_v41, 6  ;;  %641 = vrot.lane.b32.xlu0 %v640_v39, %s3718_s0  ;;  %v668_v46 = vrot.slane %v4082_v41, 1  ;;  %v676_v48 = vrot.slane %v4082_v41, 4  ;;  %1060 = vmatprep.subr.mxu0 %v872_v37 }
 0x143   :  { %621 = vst.msk [vmem:[#allocation2 + $0x10] sm:$0x70] %vm620_vm2, %v4076_v38  ;;  %v459_v47 = vpop.f32.mrf.mxu1  ;;  %v686_v55 = vrot.slane %v4082_v41, 3  ;;  %v601_v59 = vrot.slane %v4080_v40, 7  ;;  %v584_v8 = vrot.slane %v4080_v40, 5  ;;  %v871_v39 = vld [vmem:[#allocation5 + $0x1a0] sm:$0xff] }
 0x144   :  { %581 = vst.msk [vmem:[#allocation2] sm:$0xc0] %vm580_vm1, %v4085_v43  ;;  %v4097_v49 = vpop.f32.mrf.mxu0  ;;  %v4101_v50 = vrot.slane %v459_v47, 2  ;;  %669 = vrot.lane.b32.xlu1 %v668_v46, %s3718_s0  ;;  %v635_v62 = vrot.slane %v459_v47, 5  ;;  %v653_v0 = vrot.slane %v459_v47, 7  ;;  %1061 = vmatpush1.msra.mxu0 %v871_v39  ;;  %v867_v40 = vld [vmem:[#allocation5 + $0x180] sm:$0xff] }
 0x145   :  { %583 = vst.msk [vmem:[#allocation2 + $0x10] sm:$0x1] %vm582_vm3, %v4085_v43  ;;  %v551_v52 = vrot.slane %v4097_v49, 6  ;;  %v4109_v53 = vpop.f32.mrf.mxu1  ;;  %v569_v60 = vrot.slane %v4097_v49, 3  ;;  %v555_v17 = vrot.slane %v4097_v49, 1  ;;  %1062 = vmatprep.subr.mxu0 %v867_v40  ;;  %v857_v47 = vld [vmem:[#allocation5 + $0x130] sm:$0xff] }
 0x146   :  { %667 = vst.msk [vmem:[#allocation2 + $0x20] sm:$0x1c] %vm666_vm4, %v664_v44  ;;  %v4111_v54 = vpop.f32.mrf.mxu0  ;;  %623 = vrot.lane.b32.xlu0 %v622_v45, %s3718_s0  ;;  %v632_v56 = vsel %vm629_vm5, %v630_v42, %v4101_v50  ;;  %v677_v57 = vrot.slane %v4109_v53, 4  ;;  %v681_v2 = vrot.slane %v4109_v53, 7  ;;  %v654_v3 = vsel %vm652_vm9, %v622_v45, %v653_v0  ;;  %v866_v42 = vld [vmem:[#allocation5 + $0x178] sm:$0xff]  ;;  %v831_v0 = vld [vmem:[#allocation5 + $0x60] sm:$0xff] }
 0x147   :  { %v552_v58 = vsel %vm549_vm6, %v550_v51, %v551_v52  ;;  %593 = vst.msk [vmem:[#allocation2 + $0x18] sm:$0x1] %vm582_vm3, %v4111_v54  ;;  %v570_v1 = vsel %vm568_vm8, %v542_v63, %v569_v60  ;;  %v695_v4 = vrot.slane %v4109_v53, 1  ;;  %v595_v5 = vrot.slane %v4111_v54, 3  ;;  %1063 = vmatpush1.msra.mxu0 %v866_v42  ;;  %v862_v45 = vld [vmem:[#allocation5 + $0x158] sm:$0xff]  ;;  %v852_v51 = vld [vmem:[#allocation5 + $0x108] sm:$0xff] }
 0x148   :  { %634 = vst.msk [vmem:[#allocation2 + $0x18] sm:$0x70] %vm620_vm2, %v632_v56  ;;  %v678_v61 = vsel %vm675_vm7, %v676_v48, %v677_v57  ;;  %602 = vrot.lane.b32.xlu1 %v601_v59, %s3718_s0  ;;  %v610_v6 = vrot.slane %v4111_v54, 5  ;;  %1064 = vmatprep.subr.mxu0 %v862_v45  ;;  %v856_v48 = vld [vmem:[#allocation5 + $0x128] sm:$0xff]  ;;  %v847_v56 = vld [vmem:[#allocation5 + $0xe0] sm:$0xff]  ;;  %v842_v59 = vld [vmem:[#allocation5 + $0xb8] sm:$0xff] }
 0x149   :  { %554 = vst.msk [vmem:[#allocation2 + $0x8] sm:$0x7] %vm539_vm0, %v552_v58  ;;  %v696_v7 = vsel %vm694_vm10, %v668_v46, %v695_v4  ;;  %v861_v46 = vld [vmem:[#allocation5 + $0x150] sm:$0xff]  ;;  %v846_v58 = vld [vmem:[#allocation5 + $0xd8] sm:$0xff]  ;;  %vm626_vm1 = vcmask 1047044   ;;  %vm605_vm2 = vcmask 519169  }
 0x14a   :  { %680 = vst.msk [vmem:[#allocation2 + $0x28] sm:$0x1c] %vm666_vm4, %v678_v61  ;;  %687 = vrot.lane.b32.xlu0 %v686_v55, %s3718_s0  ;;  %v611_v9 = vsel %vm609_vm11, %v584_v8, %v610_v6  ;;  %1065 = vmatpush1.msra.mxu0 %v861_v46  ;;  %v851_v55 = vld [vmem:[#allocation5 + $0x100] sm:$0xff]  ;;  %v841_v60 = vld [vmem:[#allocation5 + $0xb0] sm:$0xff]  ;;  %v976_v6 = vld [vmem:[#allocation5 + $0x4e8] sm:$0xff]  ;;  %vm607_vm3 = vcmask 1043969  }
 0x14b   :  { %1066 = vmatprep.subr.mxu0 %v857_v47  ;;  %v837_v61 = vld [vmem:[#allocation5 + $0x90] sm:$0xff]  ;;  %vm690_vm4 = vcmask 523269   ;;  %vm692_vm5 = vcmask 1048069   ;;  %vm566_vm8 = vcmask 1046019   ;;  %vm588_vm9 = vcmask 1048070  }
 0x14c   :  { %571 = vrot.lane.b32.xlu1 %v570_v1, %s3718_s0  ;;  %1067 = vmatpush1.msra.mxu0 %v856_v48  ;;  %v827_v1 = vld [vmem:[#allocation5 + $0x40] sm:$0xff]  ;;  %v821_v4 = vld [vmem:[#allocation5 + $0x10] sm:$0xff]  ;;  %vm590_vm10 = vcmask 1040896  }
 0x14d   :  { %1068 = vmatprep.subr.mxu0 %v852_v51 }
 0x14e   :  { %636 = vrot.lane.b32.xlu0 %v635_v62, %s3718_s0  ;;  %1069 = vmatpush1.msra.mxu0 %v851_v55  ;;  %v836_v62 = vld [vmem:[#allocation5 + $0x88] sm:$0xff] }
 0x14f   :  { %1070 = vmatprep.subr.mxu0 %v847_v56  ;;  %v4215_v56 = vld [vmem:[#allocation5 + $0x260] sm:$0xff] }
 0x150   :  { %682 = vrot.lane.b32.xlu1 %v681_v2, %s3718_s0  ;;  %1071 = vmatpush1.msra.mxu0 %v846_v58  ;;  %v826_v2 = vld [vmem:[#allocation5 + $0x38] sm:$0xff] }
 0x151   :  { %1072 = vmatprep.subr.mxu0 %v842_v59  ;;  %v4219_v59 = vld [vmem:[#allocation5 + $0x258] sm:$0xff] }
 0x152   :  { %655 = vrot.lane.b32.xlu0 %v654_v3, %s3718_s0  ;;  %1073 = vmatpush1.msra.mxu0 %v841_v60  ;;  %v822_v3 = vld [vmem:[#allocation5 + $0x18] sm:$0xff] }
 0x153   :  { %1074 = vmatprep.subr.mxu0 %v837_v61  ;;  %v4222_v60 = vld [vmem:[#allocation5 + $0x238] sm:$0xff]  ;;  %v4226_v61 = vld [vmem:[#allocation5 + $0x230] sm:$0xff] }
 0x154   :  { %697 = vrot.lane.b32.xlu1 %v696_v7, %s3718_s0  ;;  %1075 = vmatpush1.msra.mxu0 %v836_v62  ;;  %v972_v7 = vld [vmem:[#allocation5 + $0x4c8] sm:$0xff]  ;;  %v4229_v62 = vld [vmem:[#allocation5 + $0x210] sm:$0xff] }
 0x156   :  { %596 = vrot.lane.b32.xlu0 %v595_v5, %s3718_s0  ;;  %v977_v5 = vld [vmem:[#allocation5 + $0x4f0] sm:$0xff] }
 0x158   :  { %612 = vrot.lane.b32.xlu1 %v611_v9, %s3718_s0  ;;  %v967_v9 = vld [vmem:[#allocation5 + $0x4a0] sm:$0xff] }
 0x160   :  { %v3236_v10 = vpop.f32.mrf.mxu0 }
 0x162   :  { %v3237_v11 = vpop.f32.mrf.mxu0 }
 0x163   :  { %v3238_v12 = vadd.f32 %v3237_v11, %v3236_v10  ;;  %v966_v10 = vld [vmem:[#allocation5 + $0x498] sm:$0xff] }
 0x164   :  { %v3239_v13 = vpop.f32.mrf.mxu0  ;;  %v962_v11 = vld [vmem:[#allocation5 + $0x478] sm:$0xff] }
 0x165   :  { %703 = vst.msk [vmem:[#allocation2 + $0x30] sm:$0x7] %vm539_vm0, %v3238_v12  ;;  %v705_v14 = vrot.slane %v3238_v12, 3  ;;  %v711_v18 = vrot.slane %v3238_v12, 6  ;;  %v961_v12 = vld [vmem:[#allocation5 + $0x470] sm:$0xff] }
 0x166   :  { %v3240_v15 = vpop.f32.mrf.mxu0 }
 0x167   :  { %v3241_v16 = vadd.f32 %v3240_v15, %v3239_v13  ;;  %706 = vrot.lane.b32.xlu1 %v705_v14, %s3718_s0  ;;  %v957_v13 = vld [vmem:[#allocation5 + $0x450] sm:$0xff]  ;;  %v956_v14 = vld [vmem:[#allocation5 + $0x448] sm:$0xff] }
 0x168   :  { %v952_v15 = vld [vmem:[#allocation5 + $0x428] sm:$0xff] }
 0x169   :  { %v712_v19 = vrot.slane %v3241_v16, 6  ;;  %v716_v20 = vrot.slane %v3241_v16, 1  ;;  %v951_v16 = vld [vmem:[#allocation5 + $0x420] sm:$0xff] }
 0x16b   :  { %v713_v21 = vsel %vm549_vm6, %v711_v18, %v712_v19  ;;  %717 = vrot.lane.b32.xlu0 %v716_v20, %s3718_s0  ;;  %556 = vrot.lane.b32.xlu1 %v555_v17, %s3718_s0  ;;  %v947_v17 = vld [vmem:[#allocation5 + $0x400] sm:$0xff]  ;;  %v946_v18 = vld [vmem:[#allocation5 + $0x3f8] sm:$0xff]  ;;  %v941_v20 = vld [vmem:[#allocation5 + $0x3d0] sm:$0xff]  ;;  %vm564_vm6 = vcmask 521219  }
 0x16c   :  { %715 = vst.msk [vmem:[#allocation2 + $0x38] sm:$0x7] %vm539_vm0, %v713_v21  ;;  %v942_v19 = vld [vmem:[#allocation5 + $0x3d8] sm:$0xff]  ;;  %v937_v21 = vld [vmem:[#allocation5 + $0x3b0] sm:$0xff]  ;;  %vm672_vm0 = vcmask 1044994  }
 0x16f   :  { %585 = vrot.lane.b32.xlu0 %v584_v8, %s3718_s0  ;;  %543 = vrot.lane.b32.xlu1 %v542_v63, %s3718_s0  ;;  %v832_v63 = vld [vmem:[#allocation5 + $0x68] sm:$0xff]  ;;  %v971_v8 = vld [vmem:[#allocation5 + $0x4c0] sm:$0xff] }
 0x170   :  { %1076 = vmatprep.subr.mxu0 %v832_v63  ;;  %v4232_v63 = vld [vmem:[#allocation5 + $0x208] sm:$0xff] }
 0x171   :  { %1077 = vmatpush1.msra.mxu0 %v831_v0  ;;  %v4235_v0 = vld [vmem:[#allocation5 + $0x1e8] sm:$0xff] }
 0x172   :  { %1078 = vmatprep.subr.mxu0 %v827_v1  ;;  %v4238_v1 = vld [vmem:[#allocation5 + $0x1e0] sm:$0xff] }
 0x173   :  { %561 = vrot.lane.b32.xlu0 %v560_v23, %s3718_s0  ;;  %1079 = vmatpush1.msra.mxu0 %v826_v2  ;;  %v936_v23 = vld [vmem:[#allocation5 + $0x3a8] sm:$0xff]  ;;  %v4241_v2 = vld [vmem:[#allocation5 + $0x1c0] sm:$0xff] }
 0x174   :  { %1080 = vmatprep.subr.mxu0 %v822_v3  ;;  %v4244_v3 = vld [vmem:[#allocation5 + $0x1b8] sm:$0xff] }
 0x175   :  { %1081 = vmatpush1.msra.mxu0 %v821_v4  ;;  %v4247_v4 = vld [vmem:[#allocation5 + $0x198] sm:$0xff] }
 0x176   :  { %1082 = vmatprep.subr.mxu0 %v977_v5  ;;  %v4250_v5 = vld [vmem:[#allocation5 + $0x190] sm:$0xff] }
 0x177   :  { %733 = vperm.xlu0 %3624, %v730_v28   ;;  %1083 = vmatpush2.msra.mxu0 %v976_v6  ;;  %v922_v28 = vld [vmem:[#allocation5 + $0x338] sm:$0xff]  ;;  %v4253_v6 = vld [vmem:[#allocation5 + $0x170] sm:$0xff] }
 0x178   :  { %1084 = vmatprep.subr.mxu0 %v972_v7  ;;  %v4256_v7 = vld [vmem:[#allocation5 + $0x168] sm:$0xff] }
 0x179   :  { %1085 = vmatpush2.msra.mxu0 %v971_v8  ;;  %v4259_v8 = vld [vmem:[#allocation5 + $0x148] sm:$0xff] }
 0x17a   :  { %1086 = vmatprep.subr.mxu0 %v967_v9  ;;  %v4262_v9 = vld [vmem:[#allocation5 + $0x140] sm:$0xff] }
 0x17b   :  { %1087 = vmatpush2.msra.mxu0 %v966_v10  ;;  %v4265_v10 = vld [vmem:[#allocation5 + $0x120] sm:$0xff] }
 0x17c   :  { %1088 = vmatprep.subr.mxu0 %v962_v11  ;;  %v4268_v11 = vld [vmem:[#allocation5 + $0x118] sm:$0xff] }
 0x17d   :  { %1089 = vmatpush2.msra.mxu0 %v961_v12  ;;  %v4271_v12 = vld [vmem:[#allocation5 + $0xf8] sm:$0xff] }
 0x17e   :  { %1090 = vmatprep.subr.mxu0 %v957_v13  ;;  %v4274_v13 = vld [vmem:[#allocation5 + $0xf0] sm:$0xff] }
 0x17f   :  { %1091 = vmatpush2.msra.mxu0 %v956_v14  ;;  %v4277_v14 = vld [vmem:[#allocation5 + $0xd0] sm:$0xff] }
 0x180   :  { %1092 = vmatprep.subr.mxu0 %v952_v15  ;;  %v4280_v15 = vld [vmem:[#allocation5 + $0xc8] sm:$0xff] }
 0x181   :  { %1093 = vmatpush2.msra.mxu0 %v951_v16  ;;  %v4283_v16 = vld [vmem:[#allocation5 + $0xa8] sm:$0xff] }
 0x182   :  { %1094 = vmatprep.subr.mxu0 %v947_v17  ;;  %v4286_v17 = vld [vmem:[#allocation5 + $0xa0] sm:$0xff] }
 0x183   :  { %1095 = vmatpush2.msra.mxu0 %v946_v18  ;;  %v4289_v18 = vld [vmem:[#allocation5 + $0x80] sm:$0xff] }
 0x184   :  { %1096 = vmatprep.subr.mxu0 %v942_v19  ;;  %v4292_v19 = vld [vmem:[#allocation5 + $0x78] sm:$0xff] }
 0x185   :  { %1097 = vmatpush2.msra.mxu0 %v941_v20  ;;  %v4295_v20 = vld [vmem:[#allocation5 + $0x58] sm:$0xff] }
 0x186   :  { %1098 = vmatprep.subr.mxu0 %v937_v21  ;;  %v4298_v21 = vld [vmem:[#allocation5 + $0x50] sm:$0xff] }
 0x187   :  { %1099 = vmatpush2.msra.mxu0 %v936_v23  ;;  %v4301_v23 = vld [vmem:[#allocation5 + $0x30] sm:$0xff] }
 0x188   :  { %1100 = vmatprep.subr.mxu0 %v932_v24  ;;  %v4304_v24 = vld [vmem:[#allocation5 + $0x28] sm:$0xff] }
 0x189   :  { %1101 = vmatpush2.msra.mxu0 %v931_v25  ;;  %v4307_v25 = vld [vmem:[#allocation5 + $0x8] sm:$0xff] }
 0x18a   :  { %1102 = vmatprep.subr.mxu0 %v927_v26  ;;  %v4310_v26 = vld [vmem:[#allocation5] sm:$0xff] }
 0x18b   :  { %1103 = vmatpush2.msra.mxu0 %v926_v27  ;;  %v4313_v27 = vld [vmem:[#allocation5 + $0x4e0] sm:$0xff] }
 0x18c   :  { %1104 = vmatprep.subr.mxu0 %v922_v28  ;;  %v4316_v28 = vld [vmem:[#allocation5 + $0x4d8] sm:$0xff] }
 0x18d   :  { %1105 = vmatpush2.msra.mxu0 %v921_v29  ;;  %v4319_v29 = vld [vmem:[#allocation5 + $0x4b8] sm:$0xff] }
 0x18e   :  { %1106 = vmatprep.subr.mxu0 %v917_v30  ;;  %v4322_v30 = vld [vmem:[#allocation5 + $0x4b0] sm:$0xff] }
 0x1b4   :  { %v642_v31 = vpop.permute.xlu0 %641 }
 0x1b5   :  { %645 = vst.msk [vmem:[#allocation2 + $0x10] sm:$0x80] %vm644_vm12, %v642_v31 }
 0x1b6   :  { %647 = vst.msk [vmem:[#allocation2 + $0x20] sm:$0x3] %vm646_vm13, %v642_v31  ;;  %v670_v32 = vpop.permute.xlu1 %669  ;;  %v4325_v31 = vld [vmem:[#allocation5 + $0x490] sm:$0xff] }
 0x1b7   :  { %649 = vst.msk [vmem:[#allocation2 + $0x10] sm:$0x80] %vm648_vm14, %v4076_v38 }
 0x1b8   :  { %651 = vst.msk [vmem:[#allocation2 + $0x20] sm:$0x3] %vm650_vm15, %v4076_v38  ;;  %v624_v33 = vpop.permute.xlu0 %623 }
 0x1b9   :  { %673 = vst.msk [vmem:[#allocation2 + $0x20] sm:$0x1c] %vm672_vm0, %v670_v32  ;;  %v4328_v32 = vld [vmem:[#allocation5 + $0x488] sm:$0xff] }
 0x1ba   :  { %627 = vst.msk [vmem:[#allocation2 + $0x10] sm:$0x70] %vm626_vm1, %v624_v33  ;;  %v603_v34 = vpop.permute.xlu1 %602 }
 0x1bb   :  { %658 = vst.msk [vmem:[#allocation2 + $0x18] sm:$0x80] %vm644_vm12, %v624_v33  ;;  %vm546_vm12 = vcmask 1042944   ;;  %v4331_v33 = vld [vmem:[#allocation5 + $0x468] sm:$0xff] }
 0x1bc   :  { %661 = vst.msk [vmem:[#allocation2 + $0x18] sm:$0x80] %vm648_vm14, %v4101_v50  ;;  %v688_v35 = vpop.permute.xlu0 %687  ;;  %vm1191_vm14 = vcmask 523264  }
 0x1bd   :  { %606 = vst.msk [vmem:[#allocation2 + $0x10] sm:$0xe] %vm605_vm2, %v603_v34  ;;  %v4334_v34 = vld [vmem:[#allocation5 + $0x460] sm:$0xff] }
 0x1be   :  { %608 = vst.msk [vmem:[#allocation2 + $0x10] sm:$0xe] %vm607_vm3, %v4085_v43  ;;  %v572_v38 = vpop.permute.xlu1 %571 }
 0x1bf   :  { %691 = vst.msk [vmem:[#allocation2 + $0x20] sm:$0xe0] %vm690_vm4, %v688_v35  ;;  %v4337_v35 = vld [vmem:[#allocation5 + $0x440] sm:$0xff] }
 0x1c0   :  { %693 = vst.msk [vmem:[#allocation2 + $0x20] sm:$0xe0] %vm692_vm5, %v664_v44  ;;  %v637_v37 = vpop.permute.xlu0 %636 }
 0x1c1   :  { %574 = vst.msk [vmem:[#allocation2 + $0x8] sm:$0x38] %vm564_vm6, %v572_v38  ;;  %v4340_v38 = vld [vmem:[#allocation5 + $0x438] sm:$0xff] }
 0x1c2   :  { %576 = vst.msk [vmem:[#allocation2 + $0x8] sm:$0x38] %vm566_vm8, %v551_v52  ;;  %v683_v39 = vpop.permute.xlu1 %682 }
 0x1c3   :  { %639 = vst.msk [vmem:[#allocation2 + $0x18] sm:$0x70] %vm626_vm1, %v637_v37  ;;  %v4343_v37 = vld [vmem:[#allocation5 + $0x418] sm:$0xff]  ;;  %vm1307_vm1 = vcmask 122880  }
 0x1c4   :  { %685 = vst.msk [vmem:[#allocation2 + $0x28] sm:$0x1c] %vm672_vm0, %v683_v39  ;;  %v656_v43 = vpop.permute.xlu0 %655  ;;  %v4346_v39 = vld [vmem:[#allocation5 + $0x410] sm:$0xff]  ;;  %vm1233_vm0 = vcmask 588800  }
 0x1c5   :  { %659 = vst.msk [vmem:[#allocation2 + $0x28] sm:$0x3] %vm646_vm13, %v656_v43  ;;  %vm736_vm13 = vcmask 220160   ;;  %v4349_v43 = vld [vmem:[#allocation5 + $0x3f0] sm:$0xff] }
 0x1c6   :  { %662 = vst.msk [vmem:[#allocation2 + $0x28] sm:$0x3] %vm650_vm15, %v4101_v50  ;;  %v698_v41 = vpop.permute.xlu1 %697  ;;  %vm3721_vm15 = vmmov 0  }
 0x1c7   :  { %700 = vst.msk [vmem:[#allocation2 + $0x28] sm:$0xe0] %vm690_vm4, %v698_v41  ;;  %v4202_v47 = vld [vmem:[#allocation2 + $0x20] sm:$0xff]  ;;  %v4352_v41 = vld [vmem:[#allocation5 + $0x3e8] sm:$0xff]  ;;  %vm1323_vm4 = vcmask 519555  }
 0x1c8   :  { %v597_v44 = vpop.permute.xlu0 %596  ;;  %702 = vst.msk [vmem:[#allocation2 + $0x28] sm:$0xe0] %vm692_vm5, %v677_v57  ;;  %4941 = vst [vmem:[#allocation25_spill] sm:$0xff] %v4352_v41  ;;  %vm1435_vm5 = vcmask 31744  }
 0x1c9   :  { %599 = vst.msk [vmem:[#allocation2 + $0x8] sm:$0xc0] %vm588_vm9, %v597_v44 }
 0x1ca   :  { %600 = vst.msk [vmem:[#allocation2 + $0x18] sm:$0x1] %vm590_vm10, %v597_v44  ;;  %v613_v49 = vpop.permute.xlu1 %612  ;;  %v4355_v44 = vld [vmem:[#allocation5 + $0x3c8] sm:$0xff] }
 0x1cb   :  { %615 = vst.msk [vmem:[#allocation2 + $0x18] sm:$0xe] %vm605_vm2, %v613_v49  ;;  %4942 = vst [vmem:[#allocation26_spill] sm:$0xff] %v4355_v44  ;;  %v4358_v49 = vld [vmem:[#allocation5 + $0x3c0] sm:$0xff]  ;;  %vm1313_vm2 = vcmask 255105  }
 0x1cc   :  { %616 = vst.msk [vmem:[#allocation2 + $0x18] sm:$0xe] %vm607_vm3, %v4111_v54  ;;  %4943 = vst [vmem:[#allocation27_spill] sm:$0xff] %v4358_v49  ;;  %vm1318_vm3 = vcmask 387330  }
 0x1cf   :  { %v4199_v46 = vld [vmem:[#allocation2 + $0x28] sm:$0xff] }
 0x1d3   :  { %v4205_v48 = vld [vmem:[#allocation2 + $0x18] sm:$0xff] }
 0x1d9   :  { %v707_v50 = vpop.permute.xlu1 %706 }
 0x1da   :  { %709 = vst.msk [vmem:[#allocation2 + $0x30] sm:$0x7] %vm546_vm12, %v707_v50  ;;  %v4361_v50 = vld [vmem:[#allocation5 + $0x3a0] sm:$0xff] }
 0x1db   :  { %4944 = vst [vmem:[#allocation28_spill] sm:$0xff] %v4361_v50 }
 0x1dd   :  { %v718_v52 = vpop.permute.xlu0 %717  ;;  %v557_v40 = vpop.permute.xlu1 %556 }
 0x1de   :  { %720 = vst.msk [vmem:[#allocation2 + $0x38] sm:$0x7] %vm546_vm12, %v718_v52  ;;  %559 = vst.msk [vmem:[#allocation2 + $0x8] sm:$0x7] %vm546_vm12, %v557_v40  ;;  %v4364_v52 = vld [vmem:[#allocation5 + $0x398] sm:$0xff] }
 0x1df   :  { %4945 = vst [vmem:[#allocation29_spill] sm:$0xff] %v4364_v52  ;;  %v4367_v40 = vld [vmem:[#allocation5 + $0x378] sm:$0xff] }
 0x1e0   :  { %4946 = vst [vmem:[#allocation30_spill] sm:$0xff] %v4367_v40 }
 0x1e1   :  { %v586_v53 = vpop.permute.xlu0 %585  ;;  %v544_v42 = vpop.permute.xlu1 %543  ;;  %v728_v54 = vld [vmem:[#allocation2 + $0x30] sm:$0x7] }
 0x1e2   :  { %589 = vst.msk [vmem:[#allocation2] sm:$0xc0] %vm588_vm9, %v586_v53 }
 0x1e3   :  { %591 = vst.msk [vmem:[#allocation2 + $0x10] sm:$0x1] %vm590_vm10, %v586_v53  ;;  %v4370_v53 = vld [vmem:[#allocation5 + $0x370] sm:$0xff] }
 0x1e4   :  { %547 = vst.msk [vmem:[#allocation2] sm:$0x7] %vm546_vm12, %v544_v42  ;;  %4947 = vst [vmem:[#allocation31_spill] sm:$0xff] %v4370_v53  ;;  %v4373_v42 = vld [vmem:[#allocation5 + $0x350] sm:$0xff] }
 0x1e5   :  { %v562_v57 = vpop.permute.xlu0 %561  ;;  %v729_v45 = vld [vmem:[#allocation2 + $0x38] sm:$0x7]  ;;  %v4211_v55 = vld [vmem:[#allocation2 + $0x8] sm:$0xff]  ;;  %4948 = vst [vmem:[#allocation32_spill] sm:$0xff] %v4373_v42 }
 0x1e6   :  { %565 = vst.msk [vmem:[#allocation2] sm:$0x38] %vm564_vm6, %v562_v57  ;;  %3164 = vmatprep.subr.msk.mxu1 %vm609_vm11, %v729_v45  ;;  %v4376_v57 = vld [vmem:[#allocation5 + $0x348] sm:$0xff]  ;;  %vm3074_vm6 = vcmask 257024  }
 0x1e7   :  { %567 = vst.msk [vmem:[#allocation2] sm:$0x38] %vm566_vm8, %v4074_v36  ;;  %3165 = vmatpush1.msk.msra.mxu1 %vm609_vm11, %v728_v54  ;;  %v721_v36 = vld [vmem:[%s3762_s25] sm:$0xff]  ;;  %4949 = vst [vmem:[#allocation33_spill] sm:$0xff] %v4376_v57  ;;  %v4379_v45 = vld [vmem:[#allocation5 + $0x328] sm:$0xff]  ;;  %s3725_s25 = smov 80  }
 0x1e8   :  { %772 = vmatprep.subr.mxu1 %v4199_v46  ;;  %4950 = vst [vmem:[#allocation34_spill] sm:$0xff] %v4379_v45  ;;  %v4382_v54 = vld [vmem:[#allocation5 + $0x320] sm:$0xff] }
 0x1e9   :  { %773 = vmatpush1.msra.mxu1 %v4202_v47  ;;  %4951 = vst [vmem:[#allocation35_spill] sm:$0xff] %v4382_v54 }
 0x1ea   :  { %v4207_v51 = vld [vmem:[#allocation2 + $0x10] sm:$0xff]  ;;  %774 = vmatprep.subr.mxu1 %v4205_v48 }
 0x1eb   :  { %775 = vmatpush1.msra.mxu1 %v4207_v51 }
 0x1ec   :  { %776 = vmatprep.subr.mxu1 %v4211_v55 }
 0x1ee   :  { %v4217_v58 = vld [vmem:[#allocation2] sm:$0xff] }
 0x1ef   :  { %777 = vmatpush1.msra.mxu1 %v4217_v58 }
 0x1f0   :  { %3166 = vmatmul.mubr.msk.f32.vlgmr.msra.gmra.mxu1 %vm736_vm13, %v721_v36  ;;  %979 = vmatprep.subr.mxu1 %v4215_v56  ;;  %v4385_v36 = vld [vmem:[#allocation5 + $0x300] sm:$0xff] }
 0x1f1   :  { %980 = vmatpush1.msra.mxu1 %v4219_v59  ;;  %4952 = vst [vmem:[#allocation36_spill] sm:$0xff] %v4385_v36 }
 0x1f2   :  { %981 = vmatprep.subr.mxu1 %v4222_v60 }
 0x1f3   :  { %982 = vmatpush1.msra.mxu1 %v4226_v61 }
 0x1f4   :  { %983 = vmatprep.subr.mxu1 %v4229_v62 }
 0x1f5   :  { %984 = vmatpush1.msra.mxu1 %v4232_v63 }
 0x1f6   :  { %985 = vmatprep.subr.mxu1 %v4235_v0 }
 0x1f7   :  { %986 = vmatpush1.msra.mxu1 %v4238_v1 }
 0x1f8   :  { %987 = vmatprep.subr.mxu1 %v4241_v2 }
 0x1f9   :  { %988 = vmatpush1.msra.mxu1 %v4244_v3 }
 0x1fa   :  { %989 = vmatprep.subr.mxu1 %v4247_v4 }
 0x1fb   :  { %990 = vmatpush1.msra.mxu1 %v4250_v5 }
 0x1fc   :  { %991 = vmatprep.subr.mxu1 %v4253_v6 }
 0x1fd   :  { %992 = vmatpush1.msra.mxu1 %v4256_v7 }
 0x1fe   :  { %993 = vmatprep.subr.mxu1 %v4259_v8 }
 0x1ff   :  { %994 = vmatpush1.msra.mxu1 %v4262_v9 }
 0x200   :  { %995 = vmatprep.subr.mxu1 %v4265_v10 }
 0x201   :  { %996 = vmatpush1.msra.mxu1 %v4268_v11 }
 0x202   :  { %997 = vmatprep.subr.mxu1 %v4271_v12 }
 0x203   :  { %998 = vmatpush1.msra.mxu1 %v4274_v13 }
 0x204   :  { %999 = vmatprep.subr.mxu1 %v4277_v14 }
 0x205   :  { %1000 = vmatpush1.msra.mxu1 %v4280_v15 }
 0x206   :  { %1001 = vmatprep.subr.mxu1 %v4283_v16 }
 0x207   :  { %1002 = vmatpush1.msra.mxu1 %v4286_v17 }
 0x208   :  { %1003 = vmatprep.subr.mxu1 %v4289_v18 }
 0x209   :  { %1004 = vmatpush1.msra.mxu1 %v4292_v19 }
 0x20a   :  { %1005 = vmatprep.subr.mxu1 %v4295_v20 }
 0x20b   :  { %1006 = vmatpush1.msra.mxu1 %v4298_v21 }
 0x20c   :  { %1007 = vmatprep.subr.mxu1 %v4301_v23 }
 0x20d   :  { %1008 = vmatpush1.msra.mxu1 %v4304_v24 }
 0x20e   :  { %1009 = vmatprep.subr.mxu1 %v4307_v25 }
 0x20f   :  { %1010 = vmatpush1.msra.mxu1 %v4310_v26 }
 0x210   :  { %1011 = vmatprep.subr.mxu1 %v4313_v27 }
 0x211   :  { %1012 = vmatpush2.msra.mxu1 %v4316_v28 }
 0x212   :  { %1013 = vmatprep.subr.mxu1 %v4319_v29 }
 0x213   :  { %1014 = vmatpush2.msra.mxu1 %v4322_v30 }
 0x214   :  { %1015 = vmatprep.subr.mxu1 %v4325_v31 }
 0x215   :  { %1016 = vmatpush2.msra.mxu1 %v4328_v32 }
 0x216   :  { %1017 = vmatprep.subr.mxu1 %v4331_v33 }
 0x217   :  { %1018 = vmatpush2.msra.mxu1 %v4334_v34 }
 0x218   :  { %1019 = vmatprep.subr.mxu1 %v4337_v35 }
 0x219   :  { %1020 = vmatpush2.msra.mxu1 %v4340_v38 }
 0x21a   :  { %1021 = vmatprep.subr.mxu1 %v4343_v37 }
 0x21b   :  { %1022 = vmatpush2.msra.mxu1 %v4346_v39 }
 0x21c   :  { %1023 = vmatprep.subr.mxu1 %v4349_v43 }
 0x21d   :  { %1024 = vmatpush2.msra.mxu1 %v4352_v41  ;;  %v4417_v41 = vld [vmem:[#allocation5 + $0x278] sm:$0xff] }
 0x21e   :  { %1025 = vmatprep.subr.mxu1 %v4355_v44  ;;  %4961 = vst [vmem:[#allocation44_spill] sm:$0xff] %v4417_v41 }
 0x21f   :  { %1026 = vmatpush2.msra.mxu1 %v4358_v49 }
 0x220   :  { %1027 = vmatprep.subr.mxu1 %v4361_v50 }
 0x221   :  { %1028 = vmatpush2.msra.mxu1 %v4364_v52 }
 0x222   :  { %1029 = vmatprep.subr.mxu1 %v4367_v40  ;;  %v916_v40 = vld [vmem:[#allocation5 + $0x308] sm:$0xff] }
 0x223   :  { %1030 = vmatpush2.msra.mxu1 %v4370_v53  ;;  %v4393_v53 = vld [vmem:[#allocation5 + $0x2d8] sm:$0xff]  ;;  %1107 = vmatpush2.msra.mxu0 %v916_v40 }
 0x224   :  { %1031 = vmatprep.subr.mxu1 %v4373_v42  ;;  %4954 = vst [vmem:[#allocation38_spill] sm:$0xff] %v4393_v53  ;;  %v4396_v42 = vld [vmem:[#allocation5 + $0x2d0] sm:$0xff]  ;;  %v906_v40 = vld [vmem:[#allocation5 + $0x2b8] sm:$0xff] }
 0x225   :  { %1032 = vmatpush2.msra.mxu1 %v4376_v57  ;;  %4955 = vst [vmem:[#allocation39_spill] sm:$0xff] %v4396_v42  ;;  %v912_v57 = vld [vmem:[#allocation5 + $0x2e8] sm:$0xff] }
 0x226   :  { %1033 = vmatprep.subr.mxu1 %v4379_v45  ;;  %1108 = vmatprep.subr.mxu0 %v912_v57  ;;  %v4399_v45 = vld [vmem:[#allocation5 + $0x2b0] sm:$0xff]  ;;  %v902_v57 = vld [vmem:[#allocation5 + $0x298] sm:$0xff] }
 0x227   :  { %1034 = vmatpush2.msra.mxu1 %v4382_v54  ;;  %4956 = vst [vmem:[#allocation40_spill] sm:$0xff] %v4399_v45  ;;  %v911_v54 = vld [vmem:[#allocation5 + $0x2e0] sm:$0xff] }
 0x228   :  { %1035 = vmatprep.subr.mxu1 %v4385_v36  ;;  %1109 = vmatpush2.msra.mxu0 %v911_v54  ;;  %v4402_v36 = vld [vmem:[#allocation5 + $0x2a8] sm:$0xff]  ;;  %v4411_v54 = vld [vmem:[#allocation5 + $0x4f8] sm:$0xff] }
 0x229   :  { %1036 = vmatpush2.msra.mxu1 %v4390_v22  ;;  %4957 = vst [vmem:[#allocation41_spill] sm:$0xff] %v4402_v36  ;;  %v907_v22 = vld [vmem:[#allocation5 + $0x2c0] sm:$0xff]  ;;  %4959 = vst [vmem:[#allocation43_spill] sm:$0xff] %v4411_v54 }
 0x22a   :  { %1037 = vmatprep.subr.mxu1 %v4393_v53  ;;  %1110 = vmatprep.subr.mxu0 %v907_v22  ;;  %v4405_v53 = vld [vmem:[#allocation5 + $0x288] sm:$0xff]  ;;  %v734_v22 = vpop.permute.xlu0 %733 }
 0x22b   :  { %1038 = vmatpush2.msra.mxu1 %v4396_v42  ;;  %4958 = vst [vmem:[#allocation42_spill] sm:$0xff] %v4405_v53  ;;  %1111 = vmatpush2.msra.mxu0 %v906_v40  ;;  %v4408_v42 = vld [vmem:[#allocation5 + $0x280] sm:$0xff] }
 0x22c   :  { %1039 = vmatprep.subr.mxu1 %v4399_v45  ;;  %1112 = vmatprep.subr.mxu0 %v902_v57  ;;  %v901_v45 = vld [vmem:[#allocation5 + $0x290] sm:$0xff] }
 0x22d   :  { %1040 = vmatpush2.msra.mxu1 %v4402_v36  ;;  %1113 = vmatpush2.msra.mxu0 %v901_v45  ;;  %v4960_v36 = vmov 0.0   ;;  %v4419_v57 = vld [vmem:[#allocation5 + $0x4d0] sm:$0xff] }
 0x22e   :  { %1041 = vmatprep.subr.mxu1 %v4405_v53  ;;  %3396 = vmatprep.subr.mxu0 %v4960_v36  ;;  %4962 = vst [vmem:[#allocation45_spill] sm:$0xff] %v4419_v57  ;;  %v4423_v45 = vld [vmem:[#allocation5 + $0x250] sm:$0xff] }
 0x22f   :  { %1042 = vmatpush2.msra.mxu1 %v4408_v42  ;;  %4963 = vst [vmem:[#allocation46_spill] sm:$0xff] %v4423_v45 }
 0x230   :  { %3242 = vmatprep.subr.mxu1 %v4411_v54  ;;  %v903_v54 = vld [vmem:[#allocation5 + $0x2a0] sm:$0xff] }
 0x2b0   :  { %v812_v52 = vpop.f32.mrf.mxu1 }
 0x2b1   :  { %v813_v50 = vadd.f32 %v812_v52, %v734_v22  ;;  %v4426_v52 = vld [vmem:[#allocation5 + $0x4a8] sm:$0xff] }
 0x2b2   :  { %v814_v49 = vpop.f32.mrf.mxu1  ;;  %4964 = vst [vmem:[#allocation47_spill] sm:$0xff] %v4426_v52 }
 0x2b3   :  { %v815_v53 = vadd.f32 %v814_v49, %v734_v22  ;;  %v4415_v44 = vmax.f32 %v813_v50, 0.0  ;;  %v4429_v49 = vld [vmem:[#allocation5 + $0x228] sm:$0xff]  ;;  %v4432_v50 = vld [vmem:[#allocation5 + $0x480] sm:$0xff]  ;;  %v4438_v22 = vld [vmem:[#allocation5 + $0x458] sm:$0xff] }
 0x2b4   :  { %4965 = vst [vmem:[#allocation48_spill] sm:$0xff] %v4429_v49  ;;  %4966 = vst [vmem:[#allocation49_spill] sm:$0xff] %v4432_v50 }
 0x2b5   :  { %v818_v40 = vmax.f32 %v815_v53, 0.0  ;;  %v4435_v53 = vld [vmem:[#allocation5 + $0x200] sm:$0xff]  ;;  %4968 = vst [vmem:[#allocation51_spill] sm:$0xff] %v4438_v22 }
 0x2b6   :  { %4967 = vst [vmem:[#allocation50_spill] sm:$0xff] %v4435_v53 }
 0x2b7   :  { %1043 = vmatprep.mubr.f32.mxu1 %v818_v40  ;;  %1114 = vmatprep.mubr.f32.mxu0 %v818_v40 }
 0x2b8   :  { %1044 = vmatmul.mubr.f32.vlgmr.msra.gmra.mxu1 %v4415_v44  ;;  %1115 = vmatmul.mubr.f32.vlgmr.msra.gmra.mxu0 %v4415_v44 }
 0x2b9   :  { %3243 = vmatpush3.msra.mxu1 %v4417_v41  ;;  %1185 = vmatprep.mubr.f32.mxu1 %v818_v40  ;;  %v4441_v40 = vld [vmem:[#allocation5 + $0x1d8] sm:$0xff]  ;;  %v908_v41 = vld [vmem:[#allocation5 + $0x2c8] sm:$0xff] }
 0x2ba   :  { %3244 = vmatprep.subr.mxu1 %v4419_v57  ;;  %4969 = vst [vmem:[#allocation52_spill] sm:$0xff] %v4441_v40  ;;  %v4444_v57 = vld [vmem:[#allocation5 + $0x430] sm:$0xff]  ;;  %3414 = vmatprep.mubr.msk.f32.mxu0 %vm3721_vm15, %v4960_v36 }
 0x2bb   :  { %3245 = vmatpush3.msra.mxu1 %v4423_v45  ;;  %4970 = vst [vmem:[#allocation53_spill] sm:$0xff] %v4444_v57  ;;  %v4447_v45 = vld [vmem:[#allocation5 + $0x1b0] sm:$0xff] }
 0x2bc   :  { %3246 = vmatprep.subr.mxu1 %v4426_v52  ;;  %4971 = vst [vmem:[#allocation54_spill] sm:$0xff] %v4447_v45  ;;  %v4450_v52 = vld [vmem:[#allocation5 + $0x408] sm:$0xff] }
 0x2bd   :  { %3247 = vmatpush3.msra.mxu1 %v4429_v49  ;;  %4972 = vst [vmem:[#allocation55_spill] sm:$0xff] %v4450_v52  ;;  %v4453_v49 = vld [vmem:[#allocation5 + $0x188] sm:$0xff] }
 0x2be   :  { %3248 = vmatprep.subr.mxu1 %v4432_v50  ;;  %4973 = vst [vmem:[#allocation56_spill] sm:$0xff] %v4453_v49  ;;  %v4456_v50 = vld [vmem:[#allocation5 + $0x3e0] sm:$0xff] }
 0x2bf   :  { %3249 = vmatpush3.msra.mxu1 %v4435_v53  ;;  %4974 = vst [vmem:[#allocation57_spill] sm:$0xff] %v4456_v50  ;;  %v4459_v53 = vld [vmem:[#allocation5 + $0x160] sm:$0xff] }
 0x2c0   :  { %3250 = vmatprep.subr.mxu1 %v4438_v22  ;;  %4975 = vst [vmem:[#allocation58_spill] sm:$0xff] %v4459_v53  ;;  %v4462_v22 = vld [vmem:[#allocation5 + $0x3b8] sm:$0xff] }
 0x2c1   :  { %3251 = vmatpush3.msra.mxu1 %v4441_v40  ;;  %4976 = vst [vmem:[#allocation59_spill] sm:$0xff] %v4462_v22  ;;  %v4465_v40 = vld [vmem:[#allocation5 + $0x138] sm:$0xff] }
 0x2c2   :  { %3252 = vmatprep.subr.mxu1 %v4444_v57  ;;  %4977 = vst [vmem:[#allocation60_spill] sm:$0xff] %v4465_v40  ;;  %v4468_v57 = vld [vmem:[#allocation5 + $0x390] sm:$0xff] }
 0x2c3   :  { %3253 = vmatpush3.msra.mxu1 %v4447_v45  ;;  %4978 = vst [vmem:[#allocation61_spill] sm:$0xff] %v4468_v57  ;;  %v4471_v45 = vld [vmem:[#allocation5 + $0x110] sm:$0xff] }
 0x2c4   :  { %3254 = vmatprep.subr.mxu1 %v4450_v52  ;;  %4979 = vst [vmem:[#allocation62_spill] sm:$0xff] %v4471_v45  ;;  %v4474_v52 = vld [vmem:[#allocation5 + $0x368] sm:$0xff] }
 0x2c5   :  { %3255 = vmatpush3.msra.mxu1 %v4453_v49  ;;  %4980 = vst [vmem:[#allocation63_spill] sm:$0xff] %v4474_v52  ;;  %v4477_v49 = vld [vmem:[#allocation5 + $0xe8] sm:$0xff] }
 0x2c6   :  { %3256 = vmatprep.subr.mxu1 %v4456_v50  ;;  %4981 = vst [vmem:[#allocation64_spill] sm:$0xff] %v4477_v49  ;;  %v4480_v50 = vld [vmem:[#allocation5 + $0x340] sm:$0xff] }
 0x2c7   :  { %3257 = vmatpush3.msra.mxu1 %v4459_v53  ;;  %v4483_v53 = vld [vmem:[#allocation5 + $0xc0] sm:$0xff] }
 0x2c8   :  { %3258 = vmatprep.subr.mxu1 %v4462_v22  ;;  %4982 = vst [vmem:[#allocation65_spill] sm:$0xff] %v4483_v53  ;;  %v4486_v22 = vld [vmem:[#allocation5 + $0x318] sm:$0xff] }
 0x2c9   :  { %3259 = vmatpush3.msra.mxu1 %v4465_v40  ;;  %4983 = vst [vmem:[#allocation66_spill] sm:$0xff] %v4486_v22  ;;  %v4489_v40 = vld [vmem:[#allocation5 + $0x98] sm:$0xff] }
 0x2ca   :  { %3260 = vmatprep.subr.mxu1 %v4468_v57  ;;  %v913_v57 = vld [vmem:[#allocation5 + $0x2f0] sm:$0xff] }
 0x2cb   :  { %3261 = vmatpush3.msra.mxu1 %v4471_v45  ;;  %v833_v45 = vld [vmem:[#allocation5 + $0x70] sm:$0xff] }
 0x2cc   :  { %3262 = vmatprep.subr.mxu1 %v4474_v52  ;;  %v828_v52 = vld [vmem:[#allocation5 + $0x48] sm:$0xff] }
 0x2cd   :  { %3263 = vmatpush3.msra.mxu1 %v4477_v49  ;;  %v823_v49 = vld [vmem:[#allocation5 + $0x20] sm:$0xff] }
 0x2ce   :  { %3264 = vmatprep.subr.mxu1 %v4480_v50 }
 0x2cf   :  { %3265 = vmatpush3.msra.mxu1 %v4483_v53 }
 0x2d0   :  { %3266 = vmatprep.subr.mxu1 %v4486_v22 }
 0x2d1   :  { %3267 = vmatpush3.msra.mxu1 %v4489_v40 }
 0x2d2   :  { %3268 = vmatprep.subr.mxu1 %v913_v57 }
 0x2d3   :  { %3269 = vmatpush3.msra.mxu1 %v833_v45 }
 0x2d4   :  { %3270 = vmatprep.subr.mxu1 %v908_v41  ;;  %v1227_v41 = vld [vmem:[%s3777_s8] sm:$0xf]  ;;  %s5027_s8 = sld [smem:[#allocation15_spill]] }
 0x2d5   :  { %3271 = vmatpush3.msra.mxu1 %v828_v52 }
 0x2d6   :  { %3272 = vmatprep.subr.mxu1 %v903_v54 }
 0x2d7   :  { %3273 = vmatpush3.msra.mxu1 %v823_v49 }
 0x2d8   :  { %1186 = vmatmul.mubr.f32.vlgmr.msra.gmra.mxu1 %v4415_v44  ;;  %3417 = vmatprep.subr.mxu1 %v4960_v36 }
 0x2d9   :  { %3433 = vmatprep.mubr.msk.f32.mxu1 %vm3721_vm15, %v4960_v36 }
 0x378   :  { %v1045_v22 = vpop.f32.mrf.mxu1  ;;  %v1116_v53 = vpop.f32.mrf.mxu0 }
 0x379   :  { %1192 = vst.msk [vmem:[#allocation3] sm:$0xff] %vm1191_vm14, %v1045_v22  ;;  %1204 = vst.msk [vmem:[#allocation3 + $0x20] sm:$0xff] %vm1191_vm14, %v1116_v53 }
 0x37a   :  { %v1047_v57 = vpop.f32.mrf.mxu1  ;;  %v1118_v45 = vpop.f32.mrf.mxu0 }
 0x37b   :  { %1198 = vst.msk [vmem:[#allocation3 + $0x10] sm:$0xff] %vm1191_vm14, %v1047_v57  ;;  %1210 = vst.msk [vmem:[#allocation3 + $0x30] sm:$0xff] %vm1191_vm14, %v1118_v45  ;;  %1212 = vrot.lane.b32.xlu1 %v1118_v45, %s3718_s0  ;;  %1200 = vrot.lane.b32.xlu0 %v1047_v57, %s3718_s0 }
 0x37f   :  { %1206 = vrot.lane.b32.xlu1 %v1116_v53, %s3718_s0  ;;  %1230 = vperm.xlu0 %3624, %v1227_v41  }
 0x383   :  { %1194 = vrot.lane.b32.xlu1 %v1045_v22, %s3718_s0 }
 0x398   :  { %v3274_v44 = vpop.f32.mrf.mxu1 }
 0x39a   :  { %v3275_v54 = vpop.f32.mrf.mxu1 }
 0x39b   :  { %v3276_v52 = vadd.f32 %v3275_v54, %v3274_v44  ;;  %v1224_v44 = vld [vmem:[#allocation3 + $0x30] sm:$0xff] }
 0x39d   :  { %1216 = vst.msk [vmem:[#allocation3 + $0x40] sm:$0xff] %vm1191_vm14, %v3276_v52  ;;  %v1222_v52 = vld [vmem:[#allocation3 + $0x20] sm:$0xff] }
 0x3a4   :  { %v1226_v49 = vld [vmem:[#allocation3 + $0x40] sm:$0xff] }
 0x3a5   :  { %3397 = vmatpush3.msra.mxu0 %v1226_v49 }
 0x3a6   :  { %3398 = vmatprep.subr.mxu0 %v4960_v36 }
 0x3ed   :  { %v1213_v53 = vpop.permute.xlu1 %1212  ;;  %v1201_v57 = vpop.permute.xlu0 %1200 }
 0x3ee   :  { %1215 = vst.msk [vmem:[#allocation3 + $0x38] sm:$0xff] %vm1191_vm14, %v1213_v53  ;;  %1203 = vst.msk [vmem:[#allocation3 + $0x18] sm:$0xff] %vm1191_vm14, %v1201_v57  ;;  %v1220_v53 = vld [vmem:[#allocation3 + $0x10] sm:$0xff] }
 0x3f1   :  { %v1207_v22 = vpop.permute.xlu1 %1206 }
 0x3f2   :  { %1209 = vst.msk [vmem:[#allocation3 + $0x28] sm:$0xff] %vm1191_vm14, %v1207_v22  ;;  %v1217_v22 = vld [vmem:[%s3772_s3] sm:$0xf]  ;;  %s3727_s3 = smov 32  }
 0x3f5   :  { %v1195_v45 = vpop.permute.xlu1 %1194  ;;  %v1225_v41 = vld [vmem:[#allocation3 + $0x38] sm:$0xff] }
 0x3f6   :  { %1197 = vst.msk [vmem:[#allocation3 + $0x8] sm:$0xff] %vm1191_vm14, %v1195_v45  ;;  %3399 = vmatpush3.msra.mxu0 %v1225_v41  ;;  %v1221_v49 = vld [vmem:[#allocation3 + $0x18] sm:$0xff]  ;;  %v1218_v45 = vld [vmem:[#allocation3] sm:$0xff] }
 0x3f7   :  { %3400 = vmatprep.subr.mxu0 %v4960_v36  ;;  %v1354_v41 = vld [vmem:[%s3782_s14 + $0x38] sm:$0xff] }
 0x3f8   :  { %3401 = vmatpush3.msra.mxu0 %v1224_v44  ;;  %3418 = vmatpush3.msra.mxu1 %v1354_v41  ;;  %v1353_v44 = vld [vmem:[%s3782_s14 + $0x30] sm:$0xff] }
 0x3f9   :  { %3402 = vmatprep.subr.mxu0 %v4960_v36  ;;  %v1223_v54 = vld [vmem:[#allocation3 + $0x28] sm:$0xff]  ;;  %3419 = vmatprep.subr.mxu1 %v4960_v36  ;;  %v1349_v41 = vld [vmem:[%s3782_s14 + $0x10] sm:$0xff] }
 0x3fa   :  { %3403 = vmatpush3.msra.mxu0 %v1223_v54  ;;  %3420 = vmatpush3.msra.mxu1 %v1353_v44  ;;  %v1352_v54 = vld [vmem:[%s3782_s14 + $0x28] sm:$0xff] }
 0x3fb   :  { %3404 = vmatprep.subr.mxu0 %v4960_v36  ;;  %3421 = vmatprep.subr.mxu1 %v4960_v36  ;;  %v1348_v44 = vld [vmem:[%s3782_s14 + $0x8] sm:$0xff] }
 0x3fc   :  { %3405 = vmatpush3.msra.mxu0 %v1222_v52  ;;  %3422 = vmatpush3.msra.mxu1 %v1352_v54  ;;  %v1351_v52 = vld [vmem:[%s3782_s14 + $0x20] sm:$0xff] }
 0x3fd   :  { %3406 = vmatprep.subr.mxu0 %v4960_v36  ;;  %v1219_v57 = vld [vmem:[#allocation3 + $0x8] sm:$0xff]  ;;  %3423 = vmatprep.subr.mxu1 %v4960_v36  ;;  %v1347_v54 = vld [vmem:[%s3782_s14] sm:$0xff] }
 0x3fe   :  { %3407 = vmatpush3.msra.mxu0 %v1221_v49  ;;  %3424 = vmatpush3.msra.mxu1 %v1351_v52  ;;  %v1231_v49 = vpop.permute.xlu0 %1230 }
 0x3ff   :  { %3408 = vmatprep.subr.mxu0 %v4960_v36  ;;  %3425 = vmatprep.subr.mxu1 %v4960_v36 }
 0x400   :  { %3409 = vmatpush3.msra.mxu0 %v1220_v53 }
 0x401   :  { %3410 = vmatprep.subr.mxu0 %v4960_v36 }
 0x402   :  { %3411 = vmatpush3.msra.mxu0 %v1219_v57  ;;  %v1350_v57 = vld [vmem:[%s3782_s14 + $0x18] sm:$0xff]  ;;  %s5028_s14 = sld [smem:[#allocation14_spill]] }
 0x403   :  { %3412 = vmatprep.subr.mxu0 %v4960_v36  ;;  %3426 = vmatpush3.msra.mxu1 %v1350_v57 }
 0x404   :  { %3413 = vmatpush3.msra.mxu0 %v1218_v45  ;;  %3427 = vmatprep.subr.mxu1 %v4960_v36 }
 0x405   :  { %3415 = vmatmul.mubr.msk.f32.vlgmr.msra.gmra.mxu0 %vm1233_vm0, %v1217_v22  ;;  %3441 = vmatprep.subr.mxu0 %v4960_v36 }
 0x406   :  { %3443 = vmatprep.mubr.msk.f32.mxu0 %vm3721_vm15, %v4960_v36  ;;  %3428 = vmatpush3.msra.mxu1 %v1349_v41 }
 0x407   :  { %3429 = vmatprep.subr.mxu1 %v4960_v36 }
 0x408   :  { %3430 = vmatpush3.msra.mxu1 %v1348_v44 }
 0x409   :  { %3431 = vmatprep.subr.mxu1 %v4960_v36 }
 0x40a   :  { %3432 = vmatpush3.msra.mxu1 %v1347_v54  ;;  %v3168_v54 = vld [vmem:[%s3787_s19] ss:$0 sm:$0xff]  ;;  %s5029_s19 = sld [smem:[#allocation16_spill]] }
 0x40b   :  { %3436 = vmatprep.subr.mxu1 %v4960_v36 }
 0x4c5   :  { %v1303_v53 = vpop.f32.mrf.mxu0 }
 0x4c6   :  { %v1304_v22 = vadd.f32 %v1303_v53, %v1231_v49 }
 0x4c7   :  { %v3416_v45 = vpop.f32.mrf.mxu0 }
 0x4c8   :  { %1332 = vrot.lane.b32.xlu0 %v1304_v22, %s3722_s5  ;;  %1325 = vrot.lane.b32.xlu1 %v1304_v22, %s3723_s9  ;;  %1308 = vst.msk [vmem:[#allocation4] sm:$0x1] %vm1307_vm1, %v1304_v22 }
 0x4cc   :  { %1310 = vrot.lane.b32.xlu0 %v1304_v22, %s3724_s13  ;;  %1339 = vrot.lane.b32.xlu1 %v1304_v22, %s3725_s25 }
 0x4d0   :  { %1320 = vrot.lane.b32.xlu0 %v1304_v22, %s3726_s29  ;;  %1315 = vrot.lane.b32.xlu1 %v1304_v22, %s3727_s3 }
 0x53a   :  { %v1333_v52 = vpop.permute.xlu0 %1332  ;;  %v1326_v49 = vpop.permute.xlu1 %1325 }
 0x53b   :  { %1335 = vst.msk [vmem:[#allocation4 + $0x2] sm:$0x1] %vm1307_vm1, %v1333_v52  ;;  %1328 = vst.msk [vmem:[#allocation4 + $0x1] sm:$0x1] %vm1307_vm1, %v1326_v49 }
 0x53c   :  { %1336 = vst.msk [vmem:[#allocation4 + $0x1] sm:$0x2] %vm1313_vm2, %v1326_v49  ;;  %1329 = vst.msk [vmem:[#allocation4] sm:$0x2] %vm1313_vm2, %v1304_v22 }
 0x53d   :  { %1337 = vst.msk [vmem:[#allocation4] sm:$0x4] %vm1318_vm3, %v1304_v22 }
 0x53e   :  { %v1311_v53 = vpop.permute.xlu0 %1310  ;;  %v1340_v57 = vpop.permute.xlu1 %1339 }
 0x53f   :  { %1314 = vst.msk [vmem:[#allocation4 - $0x1] sm:$0x2] %vm1313_vm2, %v1311_v53 }
 0x540   :  { %1330 = vst.msk [vmem:[#allocation4 - $0x1] sm:$0x4] %vm1318_vm3, %v1311_v53 }
 0x541   :  { %1338 = vst.msk [vmem:[#allocation4 - $0x1] sm:$0x8] %vm1323_vm4, %v1311_v53  ;;  %v4570_v53 = vld [vmem:[%s3752_s17] sm:$0xf]  ;;  %s5003_s17 = sld [smem:[#allocation12_spill]] }
 0x542   :  { %1342 = vst.msk [vmem:[#allocation4 + $0x3] sm:$0x1] %vm1307_vm1, %v1340_v57  ;;  %v1321_v45 = vpop.permute.xlu0 %1320  ;;  %v1316_v41 = vpop.permute.xlu1 %1315  ;;  %v1703_v57 = vld [vmem:[%s3817_s27] sm:$0xff]  ;;  %s5033_s27 = sld [smem:[#allocation23_spill]] }
 0x543   :  { %1343 = vst.msk [vmem:[#allocation4 + $0x2] sm:$0x2] %vm1313_vm2, %v1333_v52  ;;  %1706 = vperm.xlu1 %3625, %v1703_v57   ;;  %v5010_v57 = vld [vmem:[#allocation50_spill] sm:$0xff] }
 0x544   :  { %1344 = vst.msk [vmem:[#allocation4 + $0x1] sm:$0x4] %vm1318_vm3, %v1326_v49  ;;  %1319 = vst.msk [vmem:[#allocation4 - $0x2] sm:$0x4] %vm1318_vm3, %v1316_v41 }
 0x545   :  { %1345 = vst.msk [vmem:[#allocation4] sm:$0x8] %vm1323_vm4, %v1304_v22  ;;  %1331 = vst.msk [vmem:[#allocation4 - $0x2] sm:$0x8] %vm1323_vm4, %v1316_v41 }
 0x546   :  { %1324 = vst.msk [vmem:[#allocation4 - $0x3] sm:$0x8] %vm1323_vm4, %v1321_v45 }
 0x54d   :  { %v1346_v44 = vld [vmem:[#allocation4] sm:$0xf] }
 0x54e   :  { %3434 = vmatmul.mubr.msk.f32.vlgmr.msra.gmra.mxu1 %vm1191_vm14, %v1346_v44 }
 0x54f   :  { %3438 = vmatprep.mubr.msk.f32.mxu1 %vm3721_vm15, %v4960_v36 }
 0x60e   :  { %v1431_v52 = vpop.f32.mrf.mxu1 }
 0x60f   :  { %v1432_v49 = vadd.f32 %v3168_v54, %v1431_v52  ;;  %v1702_v52 = vld [vmem:[#allocation2 + $0x38] sm:$0x7] }
 0x610   :  { %v3435_v22 = vpop.f32.mrf.mxu1 }
 0x611   :  { %3437 = vmatpush3.msk.msra.mxu1 %vm675_vm7, %v1432_v49  ;;  %v1701_v22 = vld [vmem:[#allocation2 + $0x30] sm:$0x7] }
 0x612   :  { %3439 = vmatmul.mubr.msk.f32.vlgmr.msra.gmra.mxu1 %vm1435_vm5, %v4570_v53  ;;  %3446 = vmatprep.subr.mxu1 %v4960_v36 }
 0x613   :  { %3462 = vmatprep.mubr.msk.f32.mxu1 %vm3721_vm15, %v4960_v36 }
 0x6d2   :  { %v1508_v45 = vpop.f32.mrf.mxu1 }
 0x6d3   :  { %v4579_v41 = vsub.f32 %v1432_v49, %v1508_v45  ;;  %v1694_v49 = vld [vmem:[%s3812_s20] sm:$0xff]  ;;  %v1864_v45 = vld [vmem:[#allocation5 + $0x248] sm:$0xff]  ;;  %s5032_s20 = sld [smem:[#allocation17_spill]] }
 0x6d4   :  { %v3440_v44 = vpop.f32.mrf.mxu1 }
 0x6d5   :  { %v1513_v54 = vmul.f32 %v4579_v41, %v4579_v41  ;;  %v1863_v44 = vld [vmem:[#allocation5 + $0x240] sm:$0xff] }
 0x6d7   :  { %3442 = vmatpush3.msk.msra.mxu0 %vm675_vm7, %v1513_v54  ;;  %v5012_v54 = vld [vmem:[#allocation52_spill] sm:$0xff] }
 0x6d8   :  { %3444 = vmatmul.mubr.msk.f32.vlgmr.msra.gmra.mxu0 %vm1435_vm5, %v4570_v53  ;;  %3178 = vmatprep.subr.msk.mxu0 %vm609_vm11, %v1702_v52  ;;  %v1859_v52 = vld [vmem:[#allocation5 + $0x220] sm:$0xff] }
 0x6d9   :  { %3179 = vmatpush1.msk.msra.mxu0 %vm609_vm11, %v1701_v22  ;;  %1782 = vmatprep.mubr.f32.mxu0 %v4960_v36  ;;  %v5013_v22 = vld [vmem:[#allocation53_spill] sm:$0xff]  ;;  %vm2667_vm11 = vcmask 261120  }
 0x6da   :  { %1744 = vmatprep.subr.mxu0 %v4199_v46  ;;  %v4984_v46 = vld [vmem:[#allocation25_spill] sm:$0xff] }
 0x6db   :  { %1745 = vmatpush1.msra.mxu0 %v4202_v47  ;;  %v4985_v47 = vld [vmem:[#allocation26_spill] sm:$0xff] }
 0x6dc   :  { %1746 = vmatprep.subr.mxu0 %v4205_v48  ;;  %v4986_v48 = vld [vmem:[#allocation27_spill] sm:$0xff] }
 0x6dd   :  { %1747 = vmatpush1.msra.mxu0 %v4207_v51  ;;  %v4987_v51 = vld [vmem:[#allocation28_spill] sm:$0xff] }
 0x6de   :  { %1748 = vmatprep.subr.mxu0 %v4211_v55  ;;  %v4988_v55 = vld [vmem:[#allocation29_spill] sm:$0xff] }
 0x6df   :  { %1749 = vmatpush1.msra.mxu0 %v4217_v58  ;;  %v4990_v58 = vld [vmem:[#allocation31_spill] sm:$0xff] }
 0x6e0   :  { %3180 = vmatmul.mubr.msk.f32.vlgmr.msra.gmra.mxu0 %vm736_vm13, %v1694_v49  ;;  %1951 = vmatprep.subr.mxu0 %v4215_v56  ;;  %v4989_v56 = vld [vmem:[#allocation30_spill] sm:$0xff]  ;;  %v1858_v49 = vld [vmem:[#allocation5 + $0x218] sm:$0xff]  ;;  %vm3116_vm13 = vcmask 0  }
 0x6e1   :  { %1952 = vmatpush1.msra.mxu0 %v4219_v59  ;;  %v4991_v59 = vld [vmem:[#allocation32_spill] sm:$0xff] }
 0x6e2   :  { %1953 = vmatprep.subr.mxu0 %v4222_v60  ;;  %v4992_v60 = vld [vmem:[#allocation33_spill] sm:$0xff] }
 0x6e3   :  { %1954 = vmatpush1.msra.mxu0 %v4226_v61  ;;  %v4993_v61 = vld [vmem:[#allocation34_spill] sm:$0xff] }
 0x6e4   :  { %1955 = vmatprep.subr.mxu0 %v4229_v62  ;;  %v4994_v62 = vld [vmem:[#allocation35_spill] sm:$0xff] }
 0x6e5   :  { %1956 = vmatpush1.msra.mxu0 %v4232_v63  ;;  %v4995_v63 = vld [vmem:[#allocation36_spill] sm:$0xff] }
 0x6e6   :  { %1957 = vmatprep.subr.mxu0 %v4235_v0  ;;  %v4996_v0 = vld [vmem:[#allocation37_spill] sm:$0xff] }
 0x6e7   :  { %1958 = vmatpush1.msra.mxu0 %v4238_v1  ;;  %v4997_v1 = vld [vmem:[#allocation38_spill] sm:$0xff] }
 0x6e8   :  { %1959 = vmatprep.subr.mxu0 %v4241_v2  ;;  %v4998_v2 = vld [vmem:[#allocation39_spill] sm:$0xff] }
 0x6e9   :  { %1960 = vmatpush1.msra.mxu0 %v4244_v3  ;;  %v4999_v3 = vld [vmem:[#allocation40_spill] sm:$0xff] }
 0x6ea   :  { %1961 = vmatprep.subr.mxu0 %v4247_v4  ;;  %v5000_v4 = vld [vmem:[#allocation41_spill] sm:$0xff] }
 0x6eb   :  { %1962 = vmatpush1.msra.mxu0 %v4250_v5  ;;  %v5001_v5 = vld [vmem:[#allocation42_spill] sm:$0xff] }
 0x6ec   :  { %1963 = vmatprep.subr.mxu0 %v4253_v6  ;;  %v5002_v6 = vld [vmem:[#allocation43_spill] sm:$0xff] }
 0x6ed   :  { %1964 = vmatpush1.msra.mxu0 %v4256_v7  ;;  %v1613_v7 = vld [vmem:[%s3802_s6 + $0x38] sm:$0xff] }
 0x6ee   :  { %1965 = vmatprep.subr.mxu0 %v4259_v8  ;;  %3447 = vmatpush3.msra.mxu1 %v1613_v7  ;;  %v1612_v8 = vld [vmem:[%s3802_s6 + $0x30] sm:$0xff]  ;;  %v1833_v7 = vld [vmem:[#allocation5 + $0x150] sm:$0xff] }
 0x6ef   :  { %1966 = vmatpush1.msra.mxu0 %v4262_v9  ;;  %3448 = vmatprep.subr.mxu1 %v4960_v36  ;;  %v1611_v9 = vld [vmem:[%s3802_s6 + $0x28] sm:$0xff] }
 0x6f0   :  { %1967 = vmatprep.subr.mxu0 %v4265_v10  ;;  %3449 = vmatpush3.msra.mxu1 %v1612_v8  ;;  %v1610_v10 = vld [vmem:[%s3802_s6 + $0x20] sm:$0xff] }
 0x6f1   :  { %1968 = vmatpush1.msra.mxu0 %v4268_v11  ;;  %3450 = vmatprep.subr.mxu1 %v4960_v36  ;;  %v1609_v11 = vld [vmem:[%s3802_s6 + $0x18] sm:$0xff]  ;;  %v5024_v8 = vld [vmem:[#allocation64_spill] sm:$0xff] }
 0x6f2   :  { %1969 = vmatprep.subr.mxu0 %v4271_v12  ;;  %3451 = vmatpush3.msra.mxu1 %v1611_v9  ;;  %v1608_v12 = vld [vmem:[%s3802_s6 + $0x10] sm:$0xff]  ;;  %v1829_v9 = vld [vmem:[#allocation5 + $0x130] sm:$0xff] }
 0x6f3   :  { %1970 = vmatpush1.msra.mxu0 %v4274_v13  ;;  %3452 = vmatprep.subr.mxu1 %v4960_v36  ;;  %v1607_v13 = vld [vmem:[%s3802_s6 + $0x8] sm:$0xff] }
 0x6f4   :  { %1971 = vmatprep.subr.mxu0 %v4277_v14  ;;  %3453 = vmatpush3.msra.mxu1 %v1610_v10  ;;  %v1606_v14 = vld [vmem:[%s3802_s6] sm:$0xff]  ;;  %v1828_v10 = vld [vmem:[#allocation5 + $0x128] sm:$0xff]  ;;  %s5031_s6 = sld [smem:[#allocation13_spill]] }
 0x6f5   :  { %1972 = vmatpush1.msra.mxu0 %v4280_v15  ;;  %3454 = vmatprep.subr.mxu1 %v4960_v36  ;;  %v1869_v15 = vld [vmem:[#allocation5 + $0x270] sm:$0xff] }
 0x6f6   :  { %1973 = vmatprep.subr.mxu0 %v4283_v16  ;;  %3455 = vmatpush3.msra.mxu1 %v1609_v11  ;;  %v5025_v11 = vld [vmem:[#allocation65_spill] sm:$0xff] }
 0x6f7   :  { %1974 = vmatpush1.msra.mxu0 %v4286_v17  ;;  %3456 = vmatprep.subr.mxu1 %v4960_v36 }
 0x6f8   :  { %1975 = vmatprep.subr.mxu0 %v4289_v18  ;;  %3457 = vmatpush3.msra.mxu1 %v1608_v12  ;;  %v1885_v12 = vld [vmem:[#allocation5 + $0x2f0] sm:$0xff] }
 0x6f9   :  { %1976 = vmatpush1.msra.mxu0 %v4292_v19  ;;  %3458 = vmatprep.subr.mxu1 %v4960_v36  ;;  %v1707_v19 = vpop.permute.xlu1 %1706 }
 0x6fa   :  { %1977 = vmatprep.subr.mxu0 %v4295_v20  ;;  %3459 = vmatpush3.msra.mxu1 %v1607_v13  ;;  %v1824_v13 = vld [vmem:[#allocation5 + $0x108] sm:$0xff] }
 0x6fb   :  { %1978 = vmatpush1.msra.mxu0 %v4298_v21  ;;  %3460 = vmatprep.subr.mxu1 %v4960_v36 }
 0x6fc   :  { %1979 = vmatprep.subr.mxu0 %v4301_v23  ;;  %3461 = vmatpush3.msra.mxu1 %v1606_v14  ;;  %v5026_v14 = vld [vmem:[#allocation66_spill] sm:$0xff] }
 0x6fd   :  { %1980 = vmatpush1.msra.mxu0 %v4304_v24  ;;  %2022 = vmatprep.subr.mxu1 %v1869_v15  ;;  %v1805_v15 = vld [vmem:[#allocation5 + $0x70] sm:$0xff] }
 0x6fe   :  { %1981 = vmatprep.subr.mxu0 %v4307_v25 }
 0x6ff   :  { %1982 = vmatpush1.msra.mxu0 %v4310_v26 }
 0x700   :  { %1983 = vmatprep.subr.mxu0 %v4313_v27 }
 0x701   :  { %1984 = vmatpush2.msra.mxu0 %v4316_v28  ;;  %v3174_v28 = vld [vmem:[%s3792_s24] ss:$0 sm:$0xff]  ;;  %s5030_s24 = sld [smem:[#allocation22_spill]] }
 0x702   :  { %1985 = vmatprep.subr.mxu0 %v4319_v29 }
 0x703   :  { %1986 = vmatpush2.msra.mxu0 %v4322_v30  ;;  %v5004_v30 = vld [vmem:[#allocation44_spill] sm:$0xff] }
 0x704   :  { %1987 = vmatprep.subr.mxu0 %v4325_v31  ;;  %v3175_v31 = vld [vmem:[%s5003_s17] ss:$0 sm:$0xff] }
 0x705   :  { %1988 = vmatpush2.msra.mxu0 %v4328_v32  ;;  %v5005_v32 = vld [vmem:[#allocation45_spill] sm:$0xff] }
 0x706   :  { %1989 = vmatprep.subr.mxu0 %v4331_v33 }
 0x707   :  { %1990 = vmatpush2.msra.mxu0 %v4334_v34  ;;  %v5006_v34 = vld [vmem:[#allocation46_spill] sm:$0xff] }
 0x708   :  { %1991 = vmatprep.subr.mxu0 %v4337_v35  ;;  %v5007_v35 = vld [vmem:[#allocation47_spill] sm:$0xff] }
 0x709   :  { %1992 = vmatpush2.msra.mxu0 %v4340_v38 }
 0x70a   :  { %1993 = vmatprep.subr.mxu0 %v4343_v37  ;;  %v5008_v37 = vld [vmem:[#allocation48_spill] sm:$0xff] }
 0x70b   :  { %1994 = vmatpush2.msra.mxu0 %v4346_v39  ;;  %v5009_v39 = vld [vmem:[#allocation49_spill] sm:$0xff] }
 0x70c   :  { %1995 = vmatprep.subr.mxu0 %v4349_v43 }
 0x70d   :  { %1996 = vmatpush2.msra.mxu0 %v4984_v46  ;;  %v5014_v46 = vld [vmem:[#allocation54_spill] sm:$0xff] }
 0x70e   :  { %1997 = vmatprep.subr.mxu0 %v4985_v47  ;;  %v1854_v47 = vld [vmem:[#allocation5 + $0x1f8] sm:$0xff] }
 0x70f   :  { %1998 = vmatpush2.msra.mxu0 %v4986_v48  ;;  %v5015_v48 = vld [vmem:[#allocation55_spill] sm:$0xff] }
 0x710   :  { %1999 = vmatprep.subr.mxu0 %v4987_v51  ;;  %v1853_v51 = vld [vmem:[#allocation5 + $0x1f0] sm:$0xff] }
 0x711   :  { %2000 = vmatpush2.msra.mxu0 %v4988_v55  ;;  %v5016_v55 = vld [vmem:[#allocation56_spill] sm:$0xff] }
 0x712   :  { %2001 = vmatprep.subr.mxu0 %v4989_v56  ;;  %v1849_v56 = vld [vmem:[#allocation5 + $0x1d0] sm:$0xff] }
 0x713   :  { %2002 = vmatpush2.msra.mxu0 %v4990_v58  ;;  %v5017_v58 = vld [vmem:[#allocation57_spill] sm:$0xff] }
 0x714   :  { %2003 = vmatprep.subr.mxu0 %v4991_v59  ;;  %v1848_v59 = vld [vmem:[#allocation5 + $0x1c8] sm:$0xff] }
 0x715   :  { %2004 = vmatpush2.msra.mxu0 %v4992_v60  ;;  %v5018_v60 = vld [vmem:[#allocation58_spill] sm:$0xff] }
 0x716   :  { %2005 = vmatprep.subr.mxu0 %v4993_v61  ;;  %v1844_v61 = vld [vmem:[#allocation5 + $0x1a8] sm:$0xff] }
 0x717   :  { %2006 = vmatpush2.msra.mxu0 %v4994_v62  ;;  %v5019_v62 = vld [vmem:[#allocation59_spill] sm:$0xff] }
 0x718   :  { %2007 = vmatprep.subr.mxu0 %v4995_v63  ;;  %v1843_v63 = vld [vmem:[#allocation5 + $0x1a0] sm:$0xff] }
 0x719   :  { %2008 = vmatpush2.msra.mxu0 %v4996_v0  ;;  %v5020_v0 = vld [vmem:[#allocation60_spill] sm:$0xff] }
 0x71a   :  { %2009 = vmatprep.subr.mxu0 %v4997_v1  ;;  %v1839_v1 = vld [vmem:[#allocation5 + $0x180] sm:$0xff] }
 0x71b   :  { %2010 = vmatpush2.msra.mxu0 %v4998_v2  ;;  %v5021_v2 = vld [vmem:[#allocation61_spill] sm:$0xff] }
 0x71c   :  { %2011 = vmatprep.subr.mxu0 %v4999_v3  ;;  %v1838_v3 = vld [vmem:[#allocation5 + $0x178] sm:$0xff] }
 0x71d   :  { %2012 = vmatpush2.msra.mxu0 %v5000_v4  ;;  %v5022_v4 = vld [vmem:[#allocation62_spill] sm:$0xff] }
 0x71e   :  { %2013 = vmatprep.subr.mxu0 %v5001_v5  ;;  %v1834_v5 = vld [vmem:[#allocation5 + $0x158] sm:$0xff] }
 0x71f   :  { %2014 = vmatpush2.msra.mxu0 %v4408_v42  ;;  %v1868_v42 = vld [vmem:[#allocation5 + $0x268] sm:$0xff] }
 0x720   :  { %3309 = vmatprep.subr.mxu0 %v5002_v6  ;;  %v5023_v6 = vld [vmem:[#allocation63_spill] sm:$0xff] }
 0x798   :  { %v1583_v16 = vpop.f32.mrf.mxu0 }
 0x799   :  { %v1584_v17 = vadd.f32 1e-05, %v1583_v16  ;;  %v1823_v16 = vld [vmem:[#allocation5 + $0x100] sm:$0xff] }
 0x79a   :  { %v3445_v18 = vpop.f32.mrf.mxu0 }
 0x79b   :  { %3626 = vrsqrt.f32 %v1584_v17  ;;  %v1880_v17 = vld [vmem:[#allocation5 + $0x2c8] sm:$0xff]  ;;  %v1819_v18 = vld [vmem:[#allocation5 + $0xe0] sm:$0xff] }
 0x7a0   :  { %v1784_v20 = vpop.f32.mrf.mxu0 }
 0x7a1   :  { %v1785_v21 = vadd.f32 %v1784_v20, %v1707_v19  ;;  %v1875_v20 = vld [vmem:[#allocation5 + $0x2a0] sm:$0xff] }
 0x7a2   :  { %v1786_v23 = vpop.f32.mrf.mxu0 }
 0x7a3   :  { %v1787_v24 = vadd.f32 %v1786_v23, %v1707_v19  ;;  %v4677_v25 = vmax.f32 %v1785_v21, 0.0  ;;  %v1800_v19 = vld [vmem:[#allocation5 + $0x48] sm:$0xff]  ;;  %v1814_v21 = vld [vmem:[#allocation5 + $0xb8] sm:$0xff]  ;;  %v1795_v23 = vld [vmem:[#allocation5 + $0x20] sm:$0xff] }
 0x7a5   :  { %v4679_v26 = vmax.f32 %v1787_v24, 0.0  ;;  %v1813_v24 = vld [vmem:[#allocation5 + $0xb0] sm:$0xff] }
 0x7a7   :  { %2015 = vmatprep.mubr.f32.mxu0 %v4679_v26 }
 0x7a8   :  { %v3627_v27 = vpop.eup %3626  ;;  %2016 = vmatmul.mubr.f32.vlgmr.msra.gmra.mxu0 %v4677_v25 }
 0x7a9   :  { %v1588_v29 = vmul.f32 %v3627_v27, %v4579_v41  ;;  %3310 = vmatpush3.msra.mxu0 %v5004_v30  ;;  %2157 = vmatprep.mubr.f32.mxu0 %v4679_v26  ;;  %v5011_v41 = vld [vmem:[#allocation51_spill] sm:$0xff]  ;;  %v1799_v30 = vld [vmem:[#allocation5 + $0x40] sm:$0xff] }
 0x7aa   :  { %3311 = vmatprep.subr.mxu0 %v5005_v32  ;;  %v1809_v27 = vld [vmem:[#allocation5 + $0x90] sm:$0xff]  ;;  %v1794_v32 = vld [vmem:[#allocation5 + $0x18] sm:$0xff] }
 0x7ab   :  { %v1596_v33 = vmul.f32 %v3174_v28, %v1588_v29  ;;  %3312 = vmatpush3.msra.mxu0 %v5006_v34  ;;  %v1804_v28 = vld [vmem:[#allocation5 + $0x68] sm:$0xff]  ;;  %v1803_v29 = vld [vmem:[#allocation5 + $0x60] sm:$0xff]  ;;  %v1949_v34 = vld [vmem:[#allocation5 + $0x4f0] sm:$0xff] }
 0x7ac   :  { %3313 = vmatprep.subr.mxu0 %v5007_v35  ;;  %v1948_v35 = vld [vmem:[#allocation5 + $0x4e8] sm:$0xff] }
 0x7ad   :  { %v1604_v38 = vadd.f32 %v3175_v31, %v1596_v33  ;;  %3314 = vmatpush3.msra.mxu0 %v5008_v37  ;;  %v1798_v31 = vld [vmem:[#allocation5 + $0x38] sm:$0xff]  ;;  %v1793_v33 = vld [vmem:[#allocation5 + $0x10] sm:$0xff]  ;;  %v1939_v37 = vld [vmem:[#allocation5 + $0x4a0] sm:$0xff] }
 0x7ae   :  { %3315 = vmatprep.subr.mxu0 %v5009_v39  ;;  %v1938_v39 = vld [vmem:[#allocation5 + $0x498] sm:$0xff] }
 0x7af   :  { %v1605_v43 = vmax.f32 %v1604_v38, 0.0  ;;  %3316 = vmatpush3.msra.mxu0 %v5010_v57  ;;  %v1944_v38 = vld [vmem:[#allocation5 + $0x4c8] sm:$0xff]  ;;  %v1929_v57 = vld [vmem:[#allocation5 + $0x450] sm:$0xff] }
 0x7b0   :  { %3317 = vmatprep.subr.mxu0 %v5011_v41  ;;  %v1924_v41 = vld [vmem:[#allocation5 + $0x428] sm:$0xff] }
 0x7b1   :  { %3463 = vmatmul.mubr.msk.f32.vlgmr.msra.gmra.mxu1 %vm1191_vm14, %v1605_v43  ;;  %3318 = vmatpush3.msra.mxu0 %v5012_v54  ;;  %v1934_v43 = vld [vmem:[#allocation5 + $0x478] sm:$0xff]  ;;  %v1919_v54 = vld [vmem:[#allocation5 + $0x400] sm:$0xff] }
 0x7b2   :  { %2023 = vmatpush1.msra.mxu1 %v1868_v42  ;;  %3319 = vmatprep.subr.mxu0 %v5013_v22  ;;  %v1933_v42 = vld [vmem:[#allocation5 + $0x470] sm:$0xff]  ;;  %v1914_v22 = vld [vmem:[#allocation5 + $0x3d8] sm:$0xff] }
 0x7b3   :  { %2024 = vmatprep.subr.mxu1 %v1864_v45  ;;  %3320 = vmatpush3.msra.mxu0 %v5014_v46  ;;  %v1928_v45 = vld [vmem:[#allocation5 + $0x448] sm:$0xff]  ;;  %v1909_v46 = vld [vmem:[#allocation5 + $0x3b0] sm:$0xff] }
 0x7b4   :  { %2025 = vmatpush1.msra.mxu1 %v1863_v44  ;;  %3321 = vmatprep.subr.mxu0 %v5015_v48  ;;  %v1923_v44 = vld [vmem:[#allocation5 + $0x420] sm:$0xff]  ;;  %v1904_v48 = vld [vmem:[#allocation5 + $0x388] sm:$0xff] }
 0x7b5   :  { %2026 = vmatprep.subr.mxu1 %v1859_v52  ;;  %3322 = vmatpush3.msra.mxu0 %v5016_v55  ;;  %v1918_v52 = vld [vmem:[#allocation5 + $0x3f8] sm:$0xff]  ;;  %v1899_v55 = vld [vmem:[#allocation5 + $0x360] sm:$0xff] }
 0x7b6   :  { %2027 = vmatpush1.msra.mxu1 %v1858_v49  ;;  %3323 = vmatprep.subr.mxu0 %v5017_v58  ;;  %v1913_v49 = vld [vmem:[#allocation5 + $0x3d0] sm:$0xff]  ;;  %v1894_v58 = vld [vmem:[#allocation5 + $0x338] sm:$0xff] }
 0x7b7   :  { %2028 = vmatprep.subr.mxu1 %v1854_v47  ;;  %3324 = vmatpush3.msra.mxu0 %v5018_v60  ;;  %v1908_v47 = vld [vmem:[#allocation5 + $0x3a8] sm:$0xff]  ;;  %v1889_v60 = vld [vmem:[#allocation5 + $0x310] sm:$0xff] }
 0x7b8   :  { %2029 = vmatpush1.msra.mxu1 %v1853_v51  ;;  %3325 = vmatprep.subr.mxu0 %v5019_v62  ;;  %v1903_v51 = vld [vmem:[#allocation5 + $0x380] sm:$0xff]  ;;  %v1884_v62 = vld [vmem:[#allocation5 + $0x2e8] sm:$0xff] }
 0x7b9   :  { %2030 = vmatprep.subr.mxu1 %v1849_v56  ;;  %3326 = vmatpush3.msra.mxu0 %v5020_v0  ;;  %v1898_v56 = vld [vmem:[#allocation5 + $0x358] sm:$0xff]  ;;  %v1879_v0 = vld [vmem:[#allocation5 + $0x2c0] sm:$0xff] }
 0x7ba   :  { %2031 = vmatpush1.msra.mxu1 %v1848_v59  ;;  %3327 = vmatprep.subr.mxu0 %v5021_v2  ;;  %v1893_v59 = vld [vmem:[#allocation5 + $0x330] sm:$0xff]  ;;  %v1874_v2 = vld [vmem:[#allocation5 + $0x298] sm:$0xff] }
 0x7bb   :  { %2032 = vmatprep.subr.mxu1 %v1844_v61  ;;  %3328 = vmatpush3.msra.mxu0 %v5022_v4  ;;  %v1888_v61 = vld [vmem:[#allocation5 + $0x308] sm:$0xff] }
 0x7bc   :  { %2033 = vmatpush1.msra.mxu1 %v1843_v63  ;;  %3329 = vmatprep.subr.mxu0 %v5023_v6  ;;  %v1883_v63 = vld [vmem:[#allocation5 + $0x2e0] sm:$0xff] }
 0x7bd   :  { %2034 = vmatprep.subr.mxu1 %v1839_v1  ;;  %3330 = vmatpush3.msra.mxu0 %v5024_v8  ;;  %v1878_v1 = vld [vmem:[#allocation5 + $0x2b8] sm:$0xff] }
 0x7be   :  { %2035 = vmatpush1.msra.mxu1 %v1838_v3  ;;  %3331 = vmatprep.subr.mxu0 %v4480_v50  ;;  %v1818_v50 = vld [vmem:[#allocation5 + $0xd8] sm:$0xff]  ;;  %v1873_v3 = vld [vmem:[#allocation5 + $0x290] sm:$0xff] }
 0x7bf   :  { %2036 = vmatprep.subr.mxu1 %v1834_v5  ;;  %3332 = vmatpush3.msra.mxu0 %v5025_v11 }
 0x7c0   :  { %2037 = vmatpush1.msra.mxu1 %v1833_v7  ;;  %3333 = vmatprep.subr.mxu0 %v5026_v14 }
 0x7c1   :  { %2038 = vmatprep.subr.mxu1 %v1829_v9  ;;  %3334 = vmatpush3.msra.mxu0 %v4489_v40  ;;  %v1808_v40 = vld [vmem:[#allocation5 + $0x88] sm:$0xff] }
 0x7c2   :  { %2039 = vmatpush1.msra.mxu1 %v1828_v10  ;;  %3335 = vmatprep.subr.mxu0 %v1885_v12 }
 0x7c3   :  { %2040 = vmatprep.subr.mxu1 %v1824_v13  ;;  %3336 = vmatpush3.msra.mxu0 %v1805_v15  ;;  %v2198_v13 = vld [vmem:[%s5027_s8] sm:$0xf] }
 0x7c4   :  { %2041 = vmatpush1.msra.mxu1 %v1823_v16  ;;  %3337 = vmatprep.subr.mxu0 %v1880_v17 }
 0x7c5   :  { %2042 = vmatprep.subr.mxu1 %v1819_v18  ;;  %3338 = vmatpush3.msra.mxu0 %v1800_v19 }
 0x7c6   :  { %2043 = vmatpush1.msra.mxu1 %v1818_v50  ;;  %3339 = vmatprep.subr.mxu0 %v1875_v20 }
 0x7c7   :  { %2044 = vmatprep.subr.mxu1 %v1814_v21  ;;  %3340 = vmatpush3.msra.mxu0 %v1795_v23 }
 0x7c8   :  { %2045 = vmatpush1.msra.mxu1 %v1813_v24  ;;  %2158 = vmatmul.mubr.f32.vlgmr.msra.gmra.mxu0 %v4677_v25 }
 0x7c9   :  { %2046 = vmatprep.subr.mxu1 %v1809_v27  ;;  %2086 = vmatprep.mubr.f32.mxu1 %v4679_v26  ;;  %v1943_v26 = vld [vmem:[#allocation5 + $0x4c0] sm:$0xff]  ;;  %v2188_v27 = vld [vmem:[%s5028_s14] sm:$0xf] }
 0x7ca   :  { %2047 = vmatpush1.msra.mxu1 %v1808_v40  ;;  %3505 = vmatprep.subr.mxu0 %v4960_v36 }
 0x7cb   :  { %2048 = vmatprep.subr.mxu1 %v1804_v28  ;;  %3507 = vmatprep.mubr.msk.f32.mxu0 %vm3721_vm15, %v4960_v36  ;;  %v2320_v28 = vld [vmem:[%s5029_s19 + $0x38] sm:$0xff] }
 0x7cc   :  { %2049 = vmatpush1.msra.mxu1 %v1803_v29  ;;  %v2319_v29 = vld [vmem:[%s5029_s19 + $0x30] sm:$0xff] }
 0x7cd   :  { %2050 = vmatprep.subr.mxu1 %v1799_v30  ;;  %v2318_v30 = vld [vmem:[%s5029_s19 + $0x28] sm:$0xff] }
 0x7ce   :  { %2051 = vmatpush1.msra.mxu1 %v1798_v31  ;;  %v2317_v31 = vld [vmem:[%s5029_s19 + $0x20] sm:$0xff] }
 0x7cf   :  { %2052 = vmatprep.subr.mxu1 %v1794_v32  ;;  %v2316_v32 = vld [vmem:[%s5029_s19 + $0x18] sm:$0xff] }
 0x7d0   :  { %2053 = vmatpush1.msra.mxu1 %v1793_v33  ;;  %v2315_v33 = vld [vmem:[%s5029_s19 + $0x10] sm:$0xff] }
 0x7d1   :  { %2054 = vmatprep.subr.mxu1 %v1949_v34 }
 0x7d2   :  { %2055 = vmatpush2.msra.mxu1 %v1948_v35 }
 0x7d3   :  { %2056 = vmatprep.subr.mxu1 %v1944_v38 }
 0x7d4   :  { %2057 = vmatpush2.msra.mxu1 %v1943_v26  ;;  %v2314_v26 = vld [vmem:[%s5029_s19 + $0x8] sm:$0xff] }
 0x7d5   :  { %2058 = vmatprep.subr.mxu1 %v1939_v37 }
 0x7d6   :  { %2059 = vmatpush2.msra.mxu1 %v1938_v39  ;;  %v2313_v39 = vld [vmem:[%s5029_s19] sm:$0xff] }
 0x7d7   :  { %2060 = vmatprep.subr.mxu1 %v1934_v43 }
 0x7d8   :  { %2061 = vmatpush2.msra.mxu1 %v1933_v42 }
 0x7d9   :  { %2062 = vmatprep.subr.mxu1 %v1929_v57 }
 0x7da   :  { %2063 = vmatpush2.msra.mxu1 %v1928_v45 }
 0x7db   :  { %2064 = vmatprep.subr.mxu1 %v1924_v41 }
 0x7dc   :  { %2065 = vmatpush2.msra.mxu1 %v1923_v44 }
 0x7dd   :  { %2066 = vmatprep.subr.mxu1 %v1919_v54  ;;  %v2659_v54 = vld [vmem:[%s5030_s24 + $0x18] sm:$0xff] }
 0x7de   :  { %2067 = vmatpush2.msra.mxu1 %v1918_v52 }
 0x7df   :  { %2068 = vmatprep.subr.mxu1 %v1914_v22  ;;  %v2658_v22 = vld [vmem:[%s5030_s24 + $0x10] sm:$0xff] }
 0x7e0   :  { %2069 = vmatpush2.msra.mxu1 %v1913_v49  ;;  %v2657_v49 = vld [vmem:[%s5030_s24 + $0x8] sm:$0xff] }
 0x7e1   :  { %2070 = vmatprep.subr.mxu1 %v1909_v46  ;;  %v3176_v46 = vld [vmem:[%s5031_s6] ss:$0 sm:$0xff] }
 0x7e2   :  { %2071 = vmatpush2.msra.mxu1 %v1908_v47  ;;  %v2656_v47 = vld [vmem:[%s5030_s24] sm:$0xff] }
 0x7e3   :  { %2072 = vmatprep.subr.mxu1 %v1904_v48 }
 0x7e4   :  { %2073 = vmatpush2.msra.mxu1 %v1903_v51  ;;  %v3182_v51 = vld [vmem:[%s5032_s20] ss:$0 sm:$0xff] }
 0x7e5   :  { %2074 = vmatprep.subr.mxu1 %v1899_v55 }
 0x7e6   :  { %2075 = vmatpush2.msra.mxu1 %v1898_v56 }
 0x7e7   :  { %2076 = vmatprep.subr.mxu1 %v1894_v58 }
 0x7e8   :  { %2077 = vmatpush2.msra.mxu1 %v1893_v59  ;;  %v3192_v59 = vld [vmem:[%s5033_s27] ss:$0 sm:$0xff] }
 0x7e9   :  { %2078 = vmatprep.subr.mxu1 %v1889_v60 }
 0x7ea   :  { %2079 = vmatpush2.msra.mxu1 %v1888_v61 }
 0x7eb   :  { %2080 = vmatprep.subr.mxu1 %v1884_v62 }
 0x7ec   :  { %2081 = vmatpush2.msra.mxu1 %v1883_v63 }
 0x7ed   :  { %2082 = vmatprep.subr.mxu1 %v1879_v0 }
 0x7ee   :  { %2083 = vmatpush2.msra.mxu1 %v1878_v1 }
 0x7ef   :  { %2084 = vmatprep.subr.mxu1 %v1874_v2 }
 0x7f0   :  { %2085 = vmatpush2.msra.mxu1 %v1873_v3 }
 0x7f1   :  { %2087 = vmatmul.mubr.f32.vlgmr.msra.gmra.mxu1 %v4677_v25  ;;  %3465 = vmatprep.subr.mxu1 %v4960_v36 }
 0x7f2   :  { %3483 = vmatprep.mubr.msk.f32.mxu1 %vm3721_vm15, %v4960_v36 }
 0x868   :  { %v2017_v4 = vpop.f32.mrf.mxu0 }
 0x869   :  { %2163 = vst.msk [vmem:[#allocation3] sm:$0xff] %vm1191_vm14, %v2017_v4 }
 0x86a   :  { %v2019_v5 = vpop.f32.mrf.mxu0 }
 0x86b   :  { %2169 = vst.msk [vmem:[#allocation3 + $0x10] sm:$0xff] %vm1191_vm14, %v2019_v5 }
 0x870   :  { %v2189_v40 = vld [vmem:[#allocation3] sm:$0xff] }
 0x871   :  { %v4724_v6 = vpop.f32.mrf.mxu1 }
 0x872   :  { %v2191_v23 = vld [vmem:[#allocation3 + $0x10] sm:$0xff]  ;;  %v1691_v48 = vadd.f32 %v3176_v46, %v4724_v6 }
 0x873   :  { %v3464_v7 = vpop.f32.mrf.mxu1 }
 0x874   :  { %v2575_v7 = vld [vmem:[%s5034_s2 + $0x38] sm:$0xff] }
 0x888   :  { %v3341_v8 = vpop.f32.mrf.mxu0 }
 0x88a   :  { %v3342_v9 = vpop.f32.mrf.mxu0 }
 0x88b   :  { %v3343_v10 = vadd.f32 %v3342_v9, %v3341_v8  ;;  %v2574_v8 = vld [vmem:[%s5034_s2 + $0x30] sm:$0xff]  ;;  %v2573_v9 = vld [vmem:[%s5034_s2 + $0x28] sm:$0xff] }
 0x88d   :  { %2187 = vst.msk [vmem:[#allocation3 + $0x40] sm:$0xff] %vm1191_vm14, %v3343_v10  ;;  %v2571_v10 = vld [vmem:[%s5034_s2 + $0x18] sm:$0xff] }
 0x894   :  { %v2197_v25 = vld [vmem:[#allocation3 + $0x40] sm:$0xff] }
 0x895   :  { %3466 = vmatpush3.msra.mxu1 %v2197_v25  ;;  %v2570_v25 = vld [vmem:[%s5034_s2 + $0x10] sm:$0xff] }
 0x896   :  { %3467 = vmatprep.subr.mxu1 %v4960_v36 }
 0x8b1   :  { %v2088_v11 = vpop.f32.mrf.mxu1 }
 0x8b2   :  { %2175 = vst.msk [vmem:[#allocation3 + $0x20] sm:$0xff] %vm1191_vm14, %v2088_v11  ;;  %2177 = vrot.lane.b32.xlu1 %v2088_v11, %s3718_s0  ;;  %v2569_v11 = vld [vmem:[%s5034_s2 + $0x8] sm:$0xff] }
 0x8b3   :  { %v2090_v12 = vpop.f32.mrf.mxu1 }
 0x8b4   :  { %2181 = vst.msk [vmem:[#allocation3 + $0x30] sm:$0xff] %vm1191_vm14, %v2090_v12  ;;  %2183 = vrot.lane.b32.xlu0 %v2090_v12, %s3718_s0  ;;  %v2568_v12 = vld [vmem:[%s5034_s2] sm:$0xff] }
 0x8b6   :  { %2165 = vrot.lane.b32.xlu1 %v2017_v4, %s3718_s0 }
 0x8b8   :  { %2171 = vrot.lane.b32.xlu0 %v2019_v5, %s3718_s0 }
 0x8b9   :  { %v2193_v20 = vld [vmem:[#allocation3 + $0x20] sm:$0xff] }
 0x8bb   :  { %v2195_v19 = vld [vmem:[#allocation3 + $0x30] sm:$0xff] }
 0x8bc   :  { %2201 = vperm.xlu0 %3624, %v2198_v13  }
 0x924   :  { %v2178_v14 = vpop.permute.xlu1 %2177 }
 0x925   :  { %2180 = vst.msk [vmem:[#allocation3 + $0x28] sm:$0xff] %vm1191_vm14, %v2178_v14 }
 0x926   :  { %v2184_v15 = vpop.permute.xlu0 %2183 }
 0x927   :  { %2186 = vst.msk [vmem:[#allocation3 + $0x38] sm:$0xff] %vm1191_vm14, %v2184_v15 }
 0x928   :  { %v2166_v16 = vpop.permute.xlu1 %2165 }
 0x929   :  { %2168 = vst.msk [vmem:[#allocation3 + $0x8] sm:$0xff] %vm1191_vm14, %v2166_v16 }
 0x92a   :  { %v2172_v17 = vpop.permute.xlu0 %2171 }
 0x92b   :  { %2174 = vst.msk [vmem:[#allocation3 + $0x18] sm:$0xff] %vm1191_vm14, %v2172_v17 }
 0x92c   :  { %v2194_v50 = vld [vmem:[#allocation3 + $0x28] sm:$0xff] }
 0x92e   :  { %v2196_v18 = vld [vmem:[#allocation3 + $0x38] sm:$0xff] }
 0x92f   :  { %3468 = vmatpush3.msra.mxu1 %v2196_v18 }
 0x930   :  { %3469 = vmatprep.subr.mxu1 %v4960_v36  ;;  %v2190_v24 = vld [vmem:[#allocation3 + $0x8] sm:$0xff] }
 0x931   :  { %3470 = vmatpush3.msra.mxu1 %v2195_v19 }
 0x932   :  { %3471 = vmatprep.subr.mxu1 %v4960_v36  ;;  %v2192_v21 = vld [vmem:[#allocation3 + $0x18] sm:$0xff] }
 0x933   :  { %3472 = vmatpush3.msra.mxu1 %v2194_v50  ;;  %v3188_v50 = vld [vmem:[%s5035_s7] ss:$0 sm:$0xff] }
 0x934   :  { %3473 = vmatprep.subr.mxu1 %v4960_v36 }
 0x935   :  { %3474 = vmatpush3.msra.mxu1 %v2193_v20 }
 0x936   :  { %3475 = vmatprep.subr.mxu1 %v4960_v36 }
 0x937   :  { %3476 = vmatpush3.msra.mxu1 %v2192_v21  ;;  %v2202_v34 = vpop.permute.xlu0 %2201  ;;  %v3189_v21 = vld [vmem:[%s5036_s10] ss:$0 sm:$0xff] }
 0x938   :  { %3477 = vmatprep.subr.mxu1 %v4960_v36 }
 0x939   :  { %3478 = vmatpush3.msra.mxu1 %v2191_v23 }
 0x93a   :  { %3479 = vmatprep.subr.mxu1 %v4960_v36 }
 0x93b   :  { %3480 = vmatpush3.msra.mxu1 %v2190_v24 }
 0x93c   :  { %3481 = vmatprep.subr.mxu1 %v4960_v36 }
 0x93d   :  { %3482 = vmatpush3.msra.mxu1 %v2189_v40  ;;  %v2915_v40 = vld [vmem:[%s3882_s4 + $0x38] sm:$0xff] }
 0x93e   :  { %3484 = vmatmul.mubr.msk.f32.vlgmr.msra.gmra.mxu1 %vm1233_vm0, %v2188_v27  ;;  %3486 = vmatprep.subr.mxu1 %v4960_v36 }
 0x93f   :  { %3502 = vmatprep.mubr.msk.f32.mxu1 %vm3721_vm15, %v4960_v36  ;;  %3487 = vmatpush3.msra.mxu1 %v2320_v28 }
 0x940   :  { %3488 = vmatprep.subr.mxu1 %v4960_v36 }
 0x941   :  { %3489 = vmatpush3.msra.mxu1 %v2319_v29  ;;  %v2914_v29 = vld [vmem:[%s3882_s4 + $0x30] sm:$0xff] }
 0x942   :  { %3490 = vmatprep.subr.mxu1 %v4960_v36 }
 0x943   :  { %3491 = vmatpush3.msra.mxu1 %v2318_v30 }
 0x944   :  { %3492 = vmatprep.subr.mxu1 %v4960_v36 }
 0x945   :  { %3493 = vmatpush3.msra.mxu1 %v2317_v31  ;;  %v2913_v31 = vld [vmem:[%s3882_s4 + $0x28] sm:$0xff] }
 0x946   :  { %3494 = vmatprep.subr.mxu1 %v4960_v36 }
 0x947   :  { %3495 = vmatpush3.msra.mxu1 %v2316_v32  ;;  %v3198_v32 = vld [vmem:[%s5037_s11] ss:$0 sm:$0xff] }
 0x948   :  { %3496 = vmatprep.subr.mxu1 %v4960_v36 }
 0x949   :  { %3497 = vmatpush3.msra.mxu1 %v2315_v33  ;;  %v2912_v33 = vld [vmem:[%s3882_s4 + $0x20] sm:$0xff] }
 0x94a   :  { %3498 = vmatprep.subr.mxu1 %v4960_v36 }
 0x94b   :  { %3499 = vmatpush3.msra.mxu1 %v2314_v26  ;;  %v2910_v26 = vld [vmem:[%s3882_s4 + $0x10] sm:$0xff] }
 0x94c   :  { %3500 = vmatprep.subr.mxu1 %v4960_v36 }
 0x94d   :  { %3501 = vmatpush3.msra.mxu1 %v2313_v39 }
 0x94e   :  { %3534 = vmatprep.subr.mxu1 %v4960_v36 }
 0x9fe   :  { %v2273_v35 = vpop.f32.mrf.mxu1 }
 0x9ff   :  { %v2274_v38 = vadd.f32 %v2273_v35, %v2202_v34  ;;  %v2911_v34 = vld [vmem:[%s3882_s4 + $0x18] sm:$0xff] }
 0xa00   :  { %v3485_v37 = vpop.f32.mrf.mxu1 }
 0xa01   :  { %2277 = vst.msk [vmem:[#allocation4] sm:$0x1] %vm1307_vm1, %v2274_v38  ;;  %2298 = vrot.lane.b32.xlu0 %v2274_v38, %s3722_s5  ;;  %2291 = vrot.lane.b32.xlu1 %v2274_v38, %s3723_s9  ;;  %v2909_v37 = vld [vmem:[%s3882_s4 + $0x8] sm:$0xff] }
 0xa05   :  { %2279 = vrot.lane.b32.xlu0 %v2274_v38, %s3724_s13  ;;  %2305 = vrot.lane.b32.xlu1 %v2274_v38, %s3725_s25 }
 0xa09   :  { %2287 = vrot.lane.b32.xlu0 %v2274_v38, %s3726_s29  ;;  %2283 = vrot.lane.b32.xlu1 %v2274_v38, %s3727_s3 }
 0xa73   :  { %v2299_v43 = vpop.permute.xlu0 %2298  ;;  %v2292_v42 = vpop.permute.xlu1 %2291 }
 0xa74   :  { %2301 = vst.msk [vmem:[#allocation4 + $0x2] sm:$0x1] %vm1307_vm1, %v2299_v43  ;;  %2294 = vst.msk [vmem:[#allocation4 + $0x1] sm:$0x1] %vm1307_vm1, %v2292_v42 }
 0xa75   :  { %2302 = vst.msk [vmem:[#allocation4 + $0x1] sm:$0x2] %vm1313_vm2, %v2292_v42  ;;  %2295 = vst.msk [vmem:[#allocation4] sm:$0x2] %vm1313_vm2, %v2274_v38 }
 0xa76   :  { %2303 = vst.msk [vmem:[#allocation4] sm:$0x4] %vm1318_vm3, %v2274_v38 }
 0xa77   :  { %v2280_v57 = vpop.permute.xlu0 %2279  ;;  %v2306_v45 = vpop.permute.xlu1 %2305 }
 0xa78   :  { %2282 = vst.msk [vmem:[#allocation4 - $0x1] sm:$0x2] %vm1313_vm2, %v2280_v57 }
 0xa79   :  { %2296 = vst.msk [vmem:[#allocation4 - $0x1] sm:$0x4] %vm1318_vm3, %v2280_v57 }
 0xa7a   :  { %2304 = vst.msk [vmem:[#allocation4 - $0x1] sm:$0x8] %vm1323_vm4, %v2280_v57  ;;  %v3190_v57 = vld [vmem:[%s5038_s15] ss:$0 sm:$0xff] }
 0xa7b   :  { %2308 = vst.msk [vmem:[#allocation4 + $0x3] sm:$0x1] %vm1307_vm1, %v2306_v45  ;;  %v2288_v41 = vpop.permute.xlu0 %2287  ;;  %v2284_v44 = vpop.permute.xlu1 %2283 }
 0xa7c   :  { %2309 = vst.msk [vmem:[#allocation4 + $0x2] sm:$0x2] %vm1313_vm2, %v2299_v43  ;;  %v2908_v43 = vld [vmem:[%s3882_s4] sm:$0xff] }
 0xa7d   :  { %2310 = vst.msk [vmem:[#allocation4 + $0x1] sm:$0x4] %vm1318_vm3, %v2292_v42  ;;  %2286 = vst.msk [vmem:[#allocation4 - $0x2] sm:$0x4] %vm1318_vm3, %v2284_v44 }
 0xa7e   :  { %2311 = vst.msk [vmem:[#allocation4] sm:$0x8] %vm1323_vm4, %v2274_v38  ;;  %2297 = vst.msk [vmem:[#allocation4 - $0x2] sm:$0x8] %vm1323_vm4, %v2284_v44  ;;  %v3199_v38 = vld [vmem:[%s3877_s30] ss:$0 sm:$0xff] }
 0xa7f   :  { %2290 = vst.msk [vmem:[#allocation4 - $0x3] sm:$0x8] %vm1323_vm4, %v2288_v41  ;;  %v2996_v44 = vld [vmem:[%s5039_s16] sm:$0xf] }
 0xa86   :  { %v2312_v52 = vld [vmem:[#allocation4] sm:$0xf] }
 0xa87   :  { %3503 = vmatmul.mubr.msk.f32.vlgmr.msra.gmra.mxu1 %vm1191_vm14, %v2312_v52  ;;  %v3200_v52 = vld [vmem:[%s3887_s21] ss:$0 sm:$0xff]  ;;  %s3728_s21 = smov [#allocation8]  }
 0xa88   :  { %3535 = vmatpush3.msra.mxu1 %v2659_v54  ;;  %3542 = vmatprep.mubr.msk.f32.mxu1 %vm3721_vm15, %v4960_v36  ;;  %s3124_s30 = sshll.u32 %s3728_s21, 4  ;;  %s3125_s30 = int_to_ptr.vmem [resolvable:$true] %s3124_s30 }
 0xa89   :  { %3536 = vmatprep.subr.mxu1 %v4960_v36  ;;  %s3660_s4 = scalar_lea.vmem %s3125_s30, 16  ;;  %s3664_s18 = scalar_lea.vmem %s3125_s30, 32 }
 0xa8a   :  { %3537 = vmatpush3.msra.mxu1 %v2658_v22  ;;  %p3661_p5 = scmp.ne.s32.totalorder %s3125_s30, %s3660_s4  ;;  %p3665_p6 = scmp.lt.s32.totalorder %s3125_s30, %s3125_s30 }
 0xa8b   :  { %3538 = vmatprep.subr.mxu1 %v4960_v36  ;;  %p3666_p7 = scmp.lt.s32.totalorder %s3664_s18, %s3660_s4 }
 0xa8c   :  { %3539 = vmatpush3.msra.mxu1 %v2657_v49 }
 0xa8d   :  { %3540 = vmatprep.subr.mxu1 %v4960_v36  ;;  %p3667_p8 = por %p3666_p7, %p3665_p6 }
 0xa8e   :  { %3541 = vmatpush3.msra.mxu1 %v2656_v47 }
 0xa8f   :  { %3543 = vmatmul.mubr.msk.f32.vlgmr.msra.gmra.mxu1 %vm2667_vm11, %v1691_v48  ;;  %3545 = vmatprep.subr.mxu1 %v4960_v36  ;;  %p3668_p9 = pnand %p3667_p8, %p3661_p5 }
 0xa90   :  { %3547 = vmatprep.mubr.msk.f32.mxu1 %vm3721_vm15, %v4960_v36 }
 0xb47   :  { %v2397_v55 = vpop.f32.mrf.mxu1 }
 0xb48   :  { %v2398_v56 = vadd.f32 %v3182_v51, %v2397_v55 }
 0xb49   :  { %v3504_v58 = vpop.f32.mrf.mxu1 }
 0xb4a   :  { %3506 = vmatpush3.msk.msra.mxu0 %vm675_vm7, %v2398_v56 }
 0xb4b   :  { %3508 = vmatmul.mubr.msk.f32.vlgmr.msra.gmra.mxu0 %vm1435_vm5, %v4570_v53  ;;  %3510 = vmatprep.subr.mxu0 %v4960_v36 }
 0xb4c   :  { %3512 = vmatprep.mubr.msk.f32.mxu0 %vm3721_vm15, %v4960_v36 }
 0xb4f   :  { %v2737_v60 = vpop.f32.mrf.mxu1 }
 0xb50   :  { %v2738_v61 = vadd.f32 %v3192_v59, %v2737_v60 }
 0xb51   :  { %v3544_v62 = vpop.f32.mrf.mxu1 }
 0xb52   :  { %3546 = vmatpush3.msk.msra.mxu1 %vm675_vm7, %v2738_v61 }
 0xb53   :  { %3548 = vmatmul.mubr.msk.f32.vlgmr.msra.gmra.mxu1 %vm1435_vm5, %v4570_v53  ;;  %3550 = vmatprep.subr.mxu1 %v4960_v36 }
 0xb54   :  { %3552 = vmatprep.mubr.msk.f32.mxu1 %vm3721_vm15, %v4960_v36 }
 0xc0b   :  { %v2470_v63 = vpop.f32.mrf.mxu0 }
 0xc0c   :  { %v2474_v0 = vsub.f32 %v2398_v56, %v2470_v63 }
 0xc0d   :  { %v3509_v1 = vpop.f32.mrf.mxu0 }
 0xc0e   :  { %v2475_v2 = vmul.f32 %v2474_v0, %v2474_v0 }
 0xc10   :  { %3511 = vmatpush3.msk.msra.mxu0 %vm675_vm7, %v2475_v2 }
 0xc11   :  { %3513 = vmatmul.mubr.msk.f32.vlgmr.msra.gmra.mxu0 %vm1435_vm5, %v4570_v53  ;;  %3515 = vmatprep.subr.mxu0 %v4960_v36 }
 0xc12   :  { %3531 = vmatprep.mubr.msk.f32.mxu0 %vm3721_vm15, %v4960_v36  ;;  %3516 = vmatpush3.msra.mxu0 %v2575_v7 }
 0xc13   :  { %v2810_v3 = vpop.f32.mrf.mxu1  ;;  %3517 = vmatprep.subr.mxu0 %v4960_v36 }
 0xc14   :  { %v2814_v4 = vsub.f32 %v2738_v61, %v2810_v3  ;;  %3518 = vmatpush3.msra.mxu0 %v2574_v8 }
 0xc15   :  { %v3549_v5 = vpop.f32.mrf.mxu1  ;;  %3519 = vmatprep.subr.mxu0 %v4960_v36 }
 0xc16   :  { %v2815_v6 = vmul.f32 %v2814_v4, %v2814_v4  ;;  %3520 = vmatpush3.msra.mxu0 %v2573_v9 }
 0xc17   :  { %3521 = vmatprep.subr.mxu0 %v4960_v36 }
 0xc18   :  { %3551 = vmatpush3.msk.msra.mxu1 %vm675_vm7, %v2815_v6 }
 0xc19   :  { %3553 = vmatmul.mubr.msk.f32.vlgmr.msra.gmra.mxu1 %vm1435_vm5, %v4570_v53  ;;  %3574 = vmatprep.subr.mxu1 %v4960_v36  ;;  %v2572_v53 = vld [vmem:[%s5034_s2 + $0x20] sm:$0xff] }
 0xc1a   :  { %3576 = vmatprep.mubr.msk.f32.mxu1 %vm3721_vm15, %v4960_v36  ;;  %3522 = vmatpush3.msra.mxu0 %v2572_v53 }
 0xc1b   :  { %3523 = vmatprep.subr.mxu0 %v4960_v36 }
 0xc1c   :  { %3524 = vmatpush3.msra.mxu0 %v2571_v10 }
 0xc1d   :  { %3525 = vmatprep.subr.mxu0 %v4960_v36 }
 0xc1e   :  { %3526 = vmatpush3.msra.mxu0 %v2570_v25 }
 0xc1f   :  { %3527 = vmatprep.subr.mxu0 %v4960_v36 }
 0xc20   :  { %3528 = vmatpush3.msra.mxu0 %v2569_v11 }
 0xc21   :  { %3529 = vmatprep.subr.mxu0 %v4960_v36 }
 0xc22   :  { %3530 = vmatpush3.msra.mxu0 %v2568_v12 }
 0xc23   :  { %3555 = vmatprep.subr.mxu0 %v4960_v36 }
 0xcd1   :  { %v2545_v13 = vpop.f32.mrf.mxu0 }
 0xcd2   :  { %v2546_v14 = vadd.f32 1e-05, %v2545_v13 }
 0xcd3   :  { %v3514_v15 = vpop.f32.mrf.mxu0 }
 0xcd4   :  { %3628 = vrsqrt.f32 %v2546_v14 }
 0xcd9   :  { %v2885_v16 = vpop.f32.mrf.mxu1 }
 0xcda   :  { %v2886_v17 = vadd.f32 1e-05, %v2885_v16 }
 0xcdb   :  { %v3554_v18 = vpop.f32.mrf.mxu1 }
 0xcdc   :  { %3630 = vrsqrt.f32 %v2886_v17 }
 0xce1   :  { %v3629_v19 = vpop.eup %3628 }
 0xce2   :  { %v2550_v20 = vmul.f32 %v3629_v19, %v2474_v0 }
 0xce4   :  { %v2558_v23 = vmul.f32 %v3188_v50, %v2550_v20 }
 0xce6   :  { %v2566_v24 = vadd.f32 %v3189_v21, %v2558_v23 }
 0xce8   :  { %v2567_v27 = vmax.f32 %v2566_v24, 0.0 }
 0xce9   :  { %v3631_v28 = vpop.eup %3630 }
 0xcea   :  { %3532 = vmatmul.mubr.msk.f32.vlgmr.msra.gmra.mxu0 %vm1191_vm14, %v2567_v27  ;;  %v2890_v30 = vmul.f32 %v3631_v28, %v2814_v4 }
 0xceb   :  { %3556 = vmatpush3.msra.mxu0 %v2915_v40  ;;  %3571 = vmatprep.mubr.msk.f32.mxu0 %vm3721_vm15, %v4960_v36 }
 0xcec   :  { %3557 = vmatprep.subr.mxu0 %v4960_v36  ;;  %v2898_v35 = vmul.f32 %v3198_v32, %v2890_v30 }
 0xced   :  { %3558 = vmatpush3.msra.mxu0 %v2914_v29 }
 0xcee   :  { %3559 = vmatprep.subr.mxu0 %v4960_v36  ;;  %v2906_v39 = vadd.f32 %v3199_v38, %v2898_v35 }
 0xcef   :  { %3560 = vmatpush3.msra.mxu0 %v2913_v31 }
 0xcf0   :  { %3561 = vmatprep.subr.mxu0 %v4960_v36  ;;  %v2907_v42 = vmax.f32 %v2906_v39, 0.0 }
 0xcf1   :  { %3562 = vmatpush3.msra.mxu0 %v2912_v33 }
 0xcf2   :  { %3563 = vmatprep.subr.mxu0 %v4960_v36 }
 0xcf3   :  { %3564 = vmatpush3.msra.mxu0 %v2911_v34 }
 0xcf4   :  { %3565 = vmatprep.subr.mxu0 %v4960_v36 }
 0xcf5   :  { %3566 = vmatpush3.msra.mxu0 %v2910_v26 }
 0xcf6   :  { %3567 = vmatprep.subr.mxu0 %v4960_v36 }
 0xcf7   :  { %3568 = vmatpush3.msra.mxu0 %v2909_v37 }
 0xcf8   :  { %3569 = vmatprep.subr.mxu0 %v4960_v36 }
 0xcf9   :  { %3570 = vmatpush3.msra.mxu0 %v2908_v43 }
 0xcfa   :  { %3572 = vmatmul.mubr.msk.f32.vlgmr.msra.gmra.mxu0 %vm1191_vm14, %v2907_v42 }
 0xdaa   :  { %v2652_v45 = vpop.f32.mrf.mxu0 }
 0xdab   :  { %v2653_v41 = vadd.f32 %v3190_v57, %v2652_v45 }
 0xdac   :  { %v3533_v54 = vpop.f32.mrf.mxu0 }
 0xdad   :  { %3575 = vmatpush3.msk.msra.mxu1 %vm675_vm7, %v2653_v41 }
 0xdae   :  { %3577 = vmatmul.mubr.msk.f32.vlgmr.msra.gmra.mxu1 %vm1435_vm5, %v2996_v44 }
 0xdba   :  { %v2992_v22 = vpop.f32.mrf.mxu0 }
 0xdbb   :  { %v2993_v49 = vadd.f32 %v3200_v52, %v2992_v22 }
 0xdbc   :  { %v3573_v46 = vpop.f32.mrf.mxu0 }
 0xdbd   :  { %v3073_v47 = vmul.f32 %v2993_v49, %v2993_v49 }
 0xdbf   :  { %v3075_v36 = vsel %vm3074_vm6, %v3073_v47, 0.0 }
 0xdc0   :  { %3076 = vadd.xlane.f32.xlu1 %v3075_v36 }
 0xe49   :  { %v3077_v58 = vpop.xlane.xlu1 %3076 }
 0xe4a   :  { %3632 = vrsqrt.f32 %v3077_v58  ;;  %vm3080_vm8 = vcmp.eq.f32.partialorder %v3077_v58, inf  ;;  %v3083_v63 = vand.u32 2147483648, %v3077_v58  ;;  %vm3082_vm9 = vcmp.eq.f32.partialorder %v3077_v58, 0.0 }
 0xe57   :  { %v3633_v60 = vpop.eup %3632 }
 0xe58   :  { %v3079_v61 = vmul.f32 %v3633_v60, %v3077_v58 }
 0xe5a   :  { %v3081_v62 = vsel %vm3080_vm8, %v3077_v58, %v3079_v61 }
 0xe5b   :  { %v3084_v0 = vsel %vm3082_vm9, %v3083_v63, %v3081_v62 }
 0xe5c   :  { %v3085_v2 = vmax.f32 %v3084_v0, 1e-12 }
 0xe6e   :  { %v3069_v48 = vpop.f32.mrf.mxu1 }
 0xe6f   :  { %v3088_v51 = vmul.f32 %v3069_v48, %v3069_v48 }
 0xe70   :  { %v3578_v55 = vpop.f32.mrf.mxu1 }
 0xe71   :  { %v3089_v56 = vsel %vm3074_vm6, %v3088_v51, 0.0 }
 0xe72   :  { %3090 = vadd.xlane.f32.xlu0 %v3089_v56 }
 0xefb   :  { %v3091_v59 = vpop.xlane.xlu0 %3090 }
 0xefc   :  { %3634 = vrsqrt.f32 %v3091_v59  ;;  %vm3094_vm10 = vcmp.eq.f32.partialorder %v3091_v59, inf  ;;  %v3097_v4 = vand.u32 2147483648, %v3091_v59  ;;  %vm3096_vm12 = vcmp.eq.f32.partialorder %v3091_v59, 0.0 }
 0xefd   :  { %3636 = vrcp.f32 %v3085_v2 }
 0xf09   :  { %v3635_v1 = vpop.eup %3634 }
 0xf0a   :  { %v3093_v3 = vmul.f32 %v3635_v1, %v3091_v59  ;;  %v3637_v8 = vpop.eup %3636 }
 0xf0b   :  { %v3087_v53 = vmul.f32 %v3637_v8, %v2993_v49 }
 0xf0c   :  { %v3095_v5 = vsel %vm3094_vm10, %v3091_v59, %v3093_v3 }
 0xf0d   :  { %v3098_v6 = vsel %vm3096_vm12, %v3097_v4, %v3095_v5 }
 0xf0e   :  { %v3099_v7 = vmax.f32 %v3098_v6, 1e-12 }
 0xf10   :  { %3638 = vrcp.f32 %v3099_v7 }
 0xf1d   :  { %v3639_v9 = vpop.eup %3638 }
 0xf1e   :  { %v3101_v10 = vmul.f32 %v3639_v9, %v3069_v48 }
 0xf20   :  { %v3102_v25 = vmul.f32 %v3101_v10, %v3087_v53 }
 0xf22   :  { %v3103_v11 = vsel %vm3074_vm6, %v3102_v25, 0.0 }
 0xf23   :  { %3104 = vadd.xlane.f32.xlu0 %v3103_v11 }
 0xfac   :  { %v3105_v12 = vpop.xlane.xlu0 %3104 }
 0xfad   :  { %v3106_v13 = vmul.f32 2.0, %v3105_v12 }
 0xfaf   :  { %v3107_v14 = vsub.f32 2.0, %v3106_v13 }
 0xfb1   :  { %v3108_v15 = vsel %vm675_vm7, %v3107_v14, 0.0 }
 0xfb2   :  { %v3109_v16 = vrot.slane %v3108_v15, 4 }
 0xfb4   :  { %v3110_v17 = vadd.f32 %v3109_v16, %v3108_v15 }
 0xfb6   :  { %v3111_v18 = vrot.slane %v3110_v17, 2 }
 0xfb8   :  { %v3112_v19 = vadd.f32 %v3111_v18, %v3110_v17 }
 0xfba   :  { %v3113_v50 = vrot.slane %v3112_v19, 1 }
 0xfbc   :  { %v3114_v20 = vadd.f32 %v3113_v50, %v3112_v19 }
 0xfbe   :  { %v3115_v21 = vmul.f32 0.5, %v3114_v20 }
 0xfc0   :  { %3117 = vst.msk [vmem:[#allocation8] sm:$0x1] %vm3116_vm13, %v3115_v21 }
 0xfc1   :  { %3671 = shalt.err (!%p3668_p9)
}
 0xfc2   :  { %3127 = dma.vmem_to_hbm [thread:$0]  %s3125_s30, 16, %s3892_s12, [#allocation7]  }
 0xfc3   :  { %3682 = dma.done.wait [#allocation7], 16  }
 0xfc4   :  { %3683 = vsyncadd [#allocation7], 4294967280 }
 0xfc5   :  { %3131 = vsyncpa [#allocation6], 1 }
 0xfc6   :  { %3132 = vsyncpa [#allocation7], 1 }

</bundles_post_ra>
